<compile_context>
chip_gen: v7x
topology: tpu7x:2x2x1
jax: 0.10.0
libtpu: 0.0.40
codegen_flags: <defaults>
</compile_context>

<pallas_src>
import jax
import jax.numpy as jnp
from jax.experimental import pallas as pl
from jax.experimental.pallas import tpu as pltpu


# ---------------------------------------------------------------------------
# Helpers
# ---------------------------------------------------------------------------
def _full_spec(shape):
    """BlockSpec covering the whole array (block index fixed at the origin).

    The index_map takes *args so it works both with and without scalar-prefetch refs.
    """
    n = len(shape)
    return pl.BlockSpec(tuple(shape), lambda *_args, _n=n: (0,) * _n)


# ---------------------------------------------------------------------------
# Encoder kernel: in-kernel global-average-pool (VPU/XLU) + fc (MXU) + ReLU
# ---------------------------------------------------------------------------
def encoder_kernel(img_ref, w_ref, b_ref, out_ref):
    # img_ref: (TILE_B, C, HW) ; w_ref: (C, E) pre-transposed ; b_ref: (1, E)
    hw = img_ref.shape[-1]
    pooled = jnp.sum(img_ref[...], axis=-1) * (1.0 / hw)        # mean pool -> (TILE_B, C)
    feat = jnp.dot(pooled, w_ref[...],
                   preferred_element_type=jnp.float32) + b_ref[...]
    out_ref[...] = jnp.maximum(feat, 0.0)                       # ReLU (dropout = identity)


def run_encoder(images, fc_w_t, fc_b):
    b, c, h, w = images.shape
    hw = h * w
    e = fc_w_t.shape[1]
    img3 = images.reshape(b, c, hw)                             # (B, C, HW), lane axis = HW

    tile_b = b if b <= 256 else 256                             # MXU-height batch tile
    grid = (pl.cdiv(b, tile_b),)
    return pl.pallas_call(
        encoder_kernel,
        out_shape=jax.ShapeDtypeStruct((b, e), jnp.float32),
        grid_spec=pltpu.PrefetchScalarGridSpec(
            num_scalar_prefetch=0,
            grid=grid,
            in_specs=[pl.BlockSpec((tile_b, c, hw), lambda i: (i, 0, 0)),
                      _full_spec((c, e)),
                      _full_spec((1, e))],
            out_specs=pl.BlockSpec((tile_b, e), lambda i: (i, 0)),
        ),
        compiler_params=pltpu.CompilerParams(
            dimension_semantics=("parallel",),
            vmem_limit_bytes=32 * 1024 * 1024),
    )(img3, fc_w_t, fc_b)


# ---------------------------------------------------------------------------
# Fused decoder kernel:
#   scalar-prefetched token ids -> in-VMEM embedding gather -> split layer-0 input
#   projection -> unrolled LSTM layers -> vocab-tiled final linear
# ---------------------------------------------------------------------------
def make_decoder_kernel(num_layers, hidden, seq_len, cap_len):
    n_extra = 3 * (num_layers - 1)

    def run_recurrence(gx, whh_ref):
        # gx: (S, 4H) hoisted x-projection + bias, kept as a register value.
        whh = whh_ref[...]                                       # load W_hh once
        h = jnp.zeros((1, hidden), jnp.float32)
        c = jnp.zeros((1, hidden), jnp.float32)
        rows = []
        # Fully unrolled static recurrence (seq_len ~ 8).
        # TODO(synk): for long sequences switch to lax.fori_loop(..., unroll=4..8)
        #             to bound vreg live ranges.
        for t in range(seq_len):
            g = gx[t:t + 1, :] + jnp.dot(h, whh, preferred_element_type=jnp.float32)
            i_g = jax.nn.sigmoid(g[:, 0 * hidden:1 * hidden])    # PyTorch gate order i,f,g,o
            f_g = jax.nn.sigmoid(g[:, 1 * hidden:2 * hidden])
            g_g = jnp.tanh(g[:, 2 * hidden:3 * hidden])
            o_g = jax.nn.sigmoid(g[:, 3 * hidden:4 * hidden])
            c = f_g * c + i_g * g_g
            h = o_g * jnp.tanh(c)
            rows.append(h)
        # Single (S, H) value instead of S masked single-sublane stores.
        return rows[0] if seq_len == 1 else jnp.concatenate(rows, axis=0)

    def kernel(tok_ref, feat_ref, emb_ref, wih0f_ref, wih0c_ref, whh0_ref, b0_ref, *rest):
        layer_refs = rest[:n_extra]
        wlin_ref, blin_ref, out_ref, hseq_scr = rest[n_extra:n_extra + 4]

        @pl.when(pl.program_id(0) == 0)
        def _():
            # --- Fused embedding gather: ids from SMEM, rows from the VMEM table. ---
            cap_rows = []
            for b in range(seq_len):
                parts = [emb_ref[pl.ds(tok_ref[b * cap_len + t], 1), :]   # (1, E)
                         for t in range(cap_len)]
                cap_rows.append(parts[0] if cap_len == 1
                                else jnp.concatenate(parts, axis=1))      # (1, T*E)
            cap = (cap_rows[0] if seq_len == 1
                   else jnp.concatenate(cap_rows, axis=0))                # (S, T*E)

            # Layer 0: split input projection so the features||cap_embed concat is never
            # materialized; bias folded in once; gates kept as a value (no scratch).
            gx = (jnp.dot(feat_ref[...], wih0f_ref[...], preferred_element_type=jnp.float32)
                  + jnp.dot(cap, wih0c_ref[...], preferred_element_type=jnp.float32)
                  + b0_ref[...])
            h_seq = run_recurrence(gx, whh0_ref)

            # Layers 1..L-1: hoisted (S, H) x (H, 4H) projection, then recurrence.
            for l in range(num_layers - 1):
                wih_ref = layer_refs[3 * l]
                whh_ref = layer_refs[3 * l + 1]
                b_ref = layer_refs[3 * l + 2]
                gx = (jnp.dot(h_seq, wih_ref[...], preferred_element_type=jnp.float32)
                      + b_ref[...])
                h_seq = run_recurrence(gx, whh_ref)

            # Final hidden sequence persists in VMEM scratch across vocab tiles.
            hseq_scr[...] = h_seq

        # Final linear, tiled over the vocab axis (lane-dense, wide unmasked stores).
        out_ref[...] = (jnp.dot(hseq_scr[...], wlin_ref[...],
                                preferred_element_type=jnp.float32) + blin_ref[...])

    return kernel


def run_decoder(features, tokens_flat, params, *, tile_v=512):
    s, e = features.shape
    hidden = params["lstm"][0]["w_hh"].shape[0]
    v = params["dec_lin_w"].shape[1]
    num_layers = len(params["lstm"])
    emb = params["embed"]
    cap_len = tokens_flat.shape[0] // s
    tile_v = min(tile_v, v)                     # 512-wide vocab tiles (multiple of 256)

    wih0 = params["lstm"][0]["w_ih"]            # ((T+1)*E, 4H), pre-transposed
    wih0_feat, wih0_cap = wih0[:e, :], wih0[e:, :]

    # Clamp out-of-range ids so the in-kernel gather has defined behavior.
    tok = jnp.clip(tokens_flat.astype(jnp.int32), 0, emb.shape[0] - 1)

    inputs = [features, emb, wih0_feat, wih0_cap,
              params["lstm"][0]["w_hh"], params["lstm"][0]["b"]]
    for l in range(1, num_layers):
        layer = params["lstm"][l]
        inputs += [layer["w_ih"], layer["w_hh"], layer["b"]]
    inputs += [params["dec_lin_w"], params["dec_lin_b"]]

    in_specs = [_full_spec(x.shape) for x in inputs[:-2]]
    in_specs += [pl.BlockSpec((hidden, tile_v), lambda j, *_: (0, j)),  # W_lin streamed/tile
                 pl.BlockSpec((1, tile_v), lambda j, *_: (0, j))]

    kernel = make_decoder_kernel(num_layers, hidden, s, cap_len)
    return pl.pallas_call(
        kernel,
        out_shape=jax.ShapeDtypeStruct((s, v), jnp.float32),
        grid_spec=pltpu.PrefetchScalarGridSpec(
            num_scalar_prefetch=1,              # token ids land in SMEM
            grid=(pl.cdiv(v, tile_v),),
            in_specs=in_specs,
            out_specs=pl.BlockSpec((s, tile_v), lambda j, *_: (0, j)),
            scratch_shapes=[pltpu.VMEM((s, hidden), jnp.float32)],      # final hidden seq
        ),
        compiler_params=pltpu.CompilerParams(
            # vocab axis MUST stay "arbitrary": the LSTM scratch written at j == 0 is
            # reused by every later vocab tile.
            dimension_semantics=("arbitrary",),
            vmem_limit_bytes=48 * 1024 * 1024),
    )(tok, *inputs)


# ---------------------------------------------------------------------------
# Forward
# ---------------------------------------------------------------------------
@jax.jit
def encoder_decoder_forward(images, captions, params):
    features = run_encoder(images, params["enc_fc_w"], params["enc_fc_b"])   # (B, E)
    # Fused decoder: embedding gather + split layer-0 projection + LSTM layers +
    # vocab-tiled linear — one pallas_call, no HBM round trip for cap_embed.
    out = run_decoder(features, captions.reshape(-1), params)                # (B, V)
    return out


def init_params(key, *, in_channels, embed_size, hidden_size, vocab_size,
                num_layers, cap_len):
    ks = jax.random.split(key, 4 + 3 * num_layers)
    scale = 0.1
    params = {
        # pre-transposed: (C, E)
        "enc_fc_w": scale * jax.random.normal(ks[0], (in_channels, embed_size), jnp.float32),
        "enc_fc_b": scale * jax.random.normal(ks[1], (1, embed_size), jnp.float32),
        "embed": scale * jax.random.normal(ks[2], (vocab_size, embed_size), jnp.float32),
        # pre-transposed: (H, V)
        "dec_lin_w": scale * jax.random.normal(ks[3], (hidden_size, vocab_size), jnp.float32),
        "dec_lin_b": jnp.zeros((1, vocab_size), jnp.float32),
        "lstm": [],
    }
    d_in0 = (cap_len + 1) * embed_size
    for l in range(num_layers):
        d_in = d_in0 if l == 0 else hidden_size
        k_ih, k_hh, k_b = ks[4 + 3 * l], ks[5 + 3 * l], ks[6 + 3 * l]
        params["lstm"].append({
            # pre-transposed: (D_in, 4H) / (H, 4H)
            "w_ih": scale * jax.random.normal(k_ih, (d_in, 4 * hidden_size), jnp.float32),
            "w_hh": scale * jax.random.normal(k_hh, (hidden_size, 4 * hidden_size), jnp.float32),
            # PyTorch has b_ih + b_hh; they always add -> single combined bias
            "b": scale * jax.random.normal(k_b, (1, 4 * hidden_size), jnp.float32),
        })
    return params


if __name__ == "__main__":
    # Small, lane/sublane-aligned config: B multiple of 8; E/H/V multiples of 128.
    B, C, H, W = 8, 4, 16, 16
    EMBED, HIDDEN, VOCAB, NUM_LAYERS, CAP_LEN = 128, 128, 256, 2, 3

    key = jax.random.PRNGKey(0)
    k_img, k_cap, k_par = jax.random.split(key, 3)

    images = jax.random.normal(k_img, (B, C, H, W), jnp.float32)              # NCHW
    captions = jax.random.randint(k_cap, (B, CAP_LEN), 0, VOCAB, jnp.int32)

    params = init_params(k_par, in_channels=C, embed_size=EMBED, hidden_size=HIDDEN,
                         vocab_size=VOCAB, num_layers=NUM_LAYERS, cap_len=CAP_LEN)

    out = encoder_decoder_forward(images, captions, params)
    out = jax.block_until_ready(out)
    assert out.shape == (B, VOCAB), out.shape
    assert jnp.all(jnp.isfinite(out))
    print("KERNEL_OK")
</pallas_src>

<mosaic_0001>
module attributes {stable_mosaic.version = 11 : i64} {
  func.func @encoder_kernel(%arg0: i32, %arg1: memref<8x4x256xf32, #tpu.memory_space<vmem>>, %arg2: memref<4x128xf32, #tpu.memory_space<vmem>>, %arg3: memref<1x128xf32, #tpu.memory_space<vmem>>, %arg4: memref<8x128xf32, #tpu.memory_space<vmem>>) attributes {dimension_semantics = [#tpu.dimension_semantics<parallel>], iteration_bounds = array<i64: 1>, scalar_prefetch = 0 : i64, scratch_operands = 0 : i64, tpu.core_type = #tpu.core_type<tc>, window_params = [{transform_indices = @transform_0, window_bounds = array<i64: 8, 4, 256>}, {pipeline_mode = #tpu.pipeline_mode<synchronous>, transform_indices = @transform_1, window_bounds = array<i64: 4, 128>}, {pipeline_mode = #tpu.pipeline_mode<synchronous>, transform_indices = @transform_2, window_bounds = array<i64: 1, 128>}, {transform_indices = @transform_3, window_bounds = array<i64: 8, 128>}]} {
    %c0 = arith.constant 0 : index
    %c0_0 = arith.constant 0 : index
    %c0_1 = arith.constant 0 : index
    %0 = vector.load %arg1[%c0, %c0_0, %c0_1] : memref<8x4x256xf32, #tpu.memory_space<vmem>>, vector<8x4x256xf32>
    %cst = arith.constant dense<0.000000e+00> : vector<8x4xf32>
    %1 = vector.multi_reduction <add>, %0, %cst [2] : vector<8x4x256xf32> to vector<8x4xf32>
    %cst_2 = arith.constant 3.906250e-03 : f32
    %2 = vector.broadcast %cst_2 : f32 to vector<8x4xf32>
    %3 = arith.mulf %1, %2 : vector<8x4xf32>
    %c0_3 = arith.constant 0 : index
    %c0_4 = arith.constant 0 : index
    %4 = vector.load %arg2[%c0_3, %c0_4] : memref<4x128xf32, #tpu.memory_space<vmem>>, vector<4x128xf32>
    %cst_5 = arith.constant dense<0.000000e+00> : vector<8x128xf32>
    %5 = tpu.matmul %3, %4, %cst_5 {dimension_numbers = #tpu.dot_dimension_numbers<[1], [0], [0], [1], [0, 0, 1, 1], [], []>} : vector<8x4xf32>, vector<4x128xf32>, vector<8x128xf32> -> vector<8x128xf32>
    %c0_6 = arith.constant 0 : index
    %c0_7 = arith.constant 0 : index
    %6 = vector.load %arg3[%c0_6, %c0_7] : memref<1x128xf32, #tpu.memory_space<vmem>>, vector<1x128xf32>
    %7 = vector.broadcast %6 : vector<1x128xf32> to vector<8x128xf32>
    %8 = arith.addf %5, %7 : vector<8x128xf32>
    %cst_8 = arith.constant 0.000000e+00 : f32
    %9 = vector.broadcast %cst_8 : f32 to vector<8x128xf32>
    %10 = arith.maximumf %8, %9 : vector<8x128xf32>
    %c0_9 = arith.constant 0 : index
    %c0_10 = arith.constant 0 : index
    %11 = vector.load %arg4[%c0_9, %c0_10] : memref<8x128xf32, #tpu.memory_space<vmem>>, vector<8x128xf32>
    tpu.vector_store %arg4[%c0_9, %c0_10], %10 {strides = array<i32>} : memref<8x128xf32, #tpu.memory_space<vmem>>, vector<8x128xf32>,
    return
  }
  func.func @transform_0(%arg0: i32) -> (i32, i32, i32) {
    %c0_i32 = arith.constant 0 : i32
    %c0_i32_0 = arith.constant 0 : i32
    %c0_i32_1 = arith.constant 0 : i32
    return %arg0, %c0_i32, %c0_i32_0 : i32, i32, i32
  }
  func.func @transform_1(%arg0: i32) -> (i32, i32) {
    %c0_i32 = arith.constant 0 : i32
    %c0_i32_0 = arith.constant 0 : i32
    %c0_i32_1 = arith.constant 0 : i32
    return %c0_i32, %c0_i32_0 : i32, i32
  }
  func.func @transform_2(%arg0: i32) -> (i32, i32) {
    %c0_i32 = arith.constant 0 : i32
    %c0_i32_0 = arith.constant 0 : i32
    %c0_i32_1 = arith.constant 0 : i32
    return %c0_i32, %c0_i32_0 : i32, i32
  }
  func.func @transform_3(%arg0: i32) -> (i32, i32) {
    %c0_i32 = arith.constant 0 : i32
    %c0_i32_0 = arith.constant 0 : i32
    return %arg0, %c0_i32 : i32, i32
  }
}

module attributes {stable_mosaic.version = 11 : i64} {
  func.func @kernel(%arg0: i32, %arg1: memref<24xi32, #tpu.memory_space<smem>>, %arg2: memref<8x128xf32, #tpu.memory_space<vmem>>, %arg3: memref<256x128xf32, #tpu.memory_space<vmem>>, %arg4: memref<128x512xf32, #tpu.memory_space<vmem>>, %arg5: memref<384x512xf32, #tpu.memory_space<vmem>>, %arg6: memref<128x512xf32, #tpu.memory_space<vmem>>, %arg7: memref<1x512xf32, #tpu.memory_space<vmem>>, %arg8: memref<128x512xf32, #tpu.memory_space<vmem>>, %arg9: memref<128x512xf32, #tpu.memory_space<vmem>>, %arg10: memref<1x512xf32, #tpu.memory_space<vmem>>, %arg11: memref<128x256xf32, #tpu.memory_space<vmem>>, %arg12: memref<1x256xf32, #tpu.memory_space<vmem>>, %arg13: memref<8x256xf32, #tpu.memory_space<vmem>>, %arg14: memref<8x128xf32, #tpu.memory_space<vmem>>) attributes {dimension_semantics = [#tpu.dimension_semantics<arbitrary>], iteration_bounds = array<i64: 1>, scalar_prefetch = 1 : i64, scratch_operands = 1 : i64, tpu.core_type = #tpu.core_type<tc>, window_params = [{pipeline_mode = #tpu.pipeline_mode<synchronous>, transform_indices = @transform_0, window_bounds = array<i64: 8, 128>}, {pipeline_mode = #tpu.pipeline_mode<synchronous>, transform_indices = @transform_1, window_bounds = array<i64: 256, 128>}, {pipeline_mode = #tpu.pipeline_mode<synchronous>, transform_indices = @transform_2, window_bounds = array<i64: 128, 512>}, {pipeline_mode = #tpu.pipeline_mode<synchronous>, transform_indices = @transform_3, window_bounds = array<i64: 384, 512>}, {pipeline_mode = #tpu.pipeline_mode<synchronous>, transform_indices = @transform_4, window_bounds = array<i64: 128, 512>}, {pipeline_mode = #tpu.pipeline_mode<synchronous>, transform_indices = @transform_5, window_bounds = array<i64: 1, 512>}, {pipeline_mode = #tpu.pipeline_mode<synchronous>, transform_indices = @transform_6, window_bounds = array<i64: 128, 512>}, {pipeline_mode = #tpu.pipeline_mode<synchronous>, transform_indices = @transform_7, window_bounds = array<i64: 128, 512>}, {pipeline_mode = #tpu.pipeline_mode<synchronous>, transform_indices = @transform_8, window_bounds = array<i64: 1, 512>}, {transform_indices = @transform_9, window_bounds = array<i64: 128, 256>}, {transform_indices = @transform_10, window_bounds = array<i64: 1, 256>}, {transform_indices = @transform_11, window_bounds = array<i64: 8, 256>}]} {
    %c0_i32 = arith.constant 0 : i32
    %0 = arith.cmpi eq, %arg0, %c0_i32 : i32
    %1 = arith.extui %0 : i1 to i32
    %c0_i32_0 = arith.constant 0 : i32
    %2 = arith.cmpi ne, %1, %c0_i32_0 : i32
    scf.if %2 {
      %c0_8 = arith.constant 0 : index
      %10 = memref.load %arg1[%c0_8] : memref<24xi32, #tpu.memory_space<smem>>
      %11 = arith.index_cast %10 : i32 to index
      %c0_9 = arith.constant 0 : index
      %12 = vector.load %arg3[%11, %c0_9] : memref<256x128xf32, #tpu.memory_space<vmem>>, vector<1x128xf32>
      %c1 = arith.constant 1 : index
      %13 = memref.load %arg1[%c1] : memref<24xi32, #tpu.memory_space<smem>>
      %14 = arith.index_cast %13 : i32 to index
      %c0_10 = arith.constant 0 : index
      %15 = vector.load %arg3[%14, %c0_10] : memref<256x128xf32, #tpu.memory_space<vmem>>, vector<1x128xf32>
      %c2 = arith.constant 2 : index
      %16 = memref.load %arg1[%c2] : memref<24xi32, #tpu.memory_space<smem>>
      %17 = arith.index_cast %16 : i32 to index
      %c0_11 = arith.constant 0 : index
      %18 = vector.load %arg3[%17, %c0_11] : memref<256x128xf32, #tpu.memory_space<vmem>>, vector<1x128xf32>
      %19 = tpu.concatenate %12, %15, %18 in 1 : vector<1x128xf32>, vector<1x128xf32>, vector<1x128xf32> -> vector<1x384xf32>
      %c3 = arith.constant 3 : index
      %20 = memref.load %arg1[%c3] : memref<24xi32, #tpu.memory_space<smem>>
      %21 = arith.index_cast %20 : i32 to index
      %c0_12 = arith.constant 0 : index
      %22 = vector.load %arg3[%21, %c0_12] : memref<256x128xf32, #tpu.memory_space<vmem>>, vector<1x128xf32>
      %c4 = arith.constant 4 : index
      %23 = memref.load %arg1[%c4] : memref<24xi32, #tpu.memory_space<smem>>
      %24 = arith.index_cast %23 : i32 to index
      %c0_13 = arith.constant 0 : index
      %25 = vector.load %arg3[%24, %c0_13] : memref<256x128xf32, #tpu.memory_space<vmem>>, vector<1x128xf32>
      %c5 = arith.constant 5 : index
      %26 = memref.load %arg1[%c5] : memref<24xi32, #tpu.memory_space<smem>>
      %27 = arith.index_cast %26 : i32 to index
      %c0_14 = arith.constant 0 : index
      %28 = vector.load %arg3[%27, %c0_14] : memref<256x128xf32, #tpu.memory_space<vmem>>, vector<1x128xf32>
      %29 = tpu.concatenate %22, %25, %28 in 1 : vector<1x128xf32>, vector<1x128xf32>, vector<1x128xf32> -> vector<1x384xf32>
      %c6 = arith.constant 6 : index
      %30 = memref.load %arg1[%c6] : memref<24xi32, #tpu.memory_space<smem>>
      %31 = arith.index_cast %30 : i32 to index
      %c0_15 = arith.constant 0 : index
      %32 = vector.load %arg3[%31, %c0_15] : memref<256x128xf32, #tpu.memory_space<vmem>>, vector<1x128xf32>
      %c7 = arith.constant 7 : index
      %33 = memref.load %arg1[%c7] : memref<24xi32, #tpu.memory_space<smem>>
      %34 = arith.index_cast %33 : i32 to index
      %c0_16 = arith.constant 0 : index
      %35 = vector.load %arg3[%34, %c0_16] : memref<256x128xf32, #tpu.memory_space<vmem>>, vector<1x128xf32>
      %c8 = arith.constant 8 : index
      %36 = memref.load %arg1[%c8] : memref<24xi32, #tpu.memory_space<smem>>
      %37 = arith.index_cast %36 : i32 to index
      %c0_17 = arith.constant 0 : index
      %38 = vector.load %arg3[%37, %c0_17] : memref<256x128xf32, #tpu.memory_space<vmem>>, vector<1x128xf32>
      %39 = tpu.concatenate %32, %35, %38 in 1 : vector<1x128xf32>, vector<1x128xf32>, vector<1x128xf32> -> vector<1x384xf32>
      %c9 = arith.constant 9 : index
      %40 = memref.load %arg1[%c9] : memref<24xi32, #tpu.memory_space<smem>>
      %41 = arith.index_cast %40 : i32 to index
      %c0_18 = arith.constant 0 : index
      %42 = vector.load %arg3[%41, %c0_18] : memref<256x128xf32, #tpu.memory_space<vmem>>, vector<1x128xf32>
      %c10 = arith.constant 10 : index
      %43 = memref.load %arg1[%c10] : memref<24xi32, #tpu.memory_space<smem>>
      %44 = arith.index_cast %43 : i32 to index
      %c0_19 = arith.constant 0 : index
      %45 = vector.load %arg3[%44, %c0_19] : memref<256x128xf32, #tpu.memory_space<vmem>>, vector<1x128xf32>
      %c11 = arith.constant 11 : index
      %46 = memref.load %arg1[%c11] : memref<24xi32, #tpu.memory_space<smem>>
      %47 = arith.index_cast %46 : i32 to index
      %c0_20 = arith.constant 0 : index
      %48 = vector.load %arg3[%47, %c0_20] : memref<256x128xf32, #tpu.memory_space<vmem>>, vector<1x128xf32>
      %49 = tpu.concatenate %42, %45, %48 in 1 : vector<1x128xf32>, vector<1x128xf32>, vector<1x128xf32> -> vector<1x384xf32>
      %c12 = arith.constant 12 : index
      %50 = memref.load %arg1[%c12] : memref<24xi32, #tpu.memory_space<smem>>
      %51 = arith.index_cast %50 : i32 to index
      %c0_21 = arith.constant 0 : index
      %52 = vector.load %arg3[%51, %c0_21] : memref<256x128xf32, #tpu.memory_space<vmem>>, vector<1x128xf32>
      %c13 = arith.constant 13 : index
      %53 = memref.load %arg1[%c13] : memref<24xi32, #tpu.memory_space<smem>>
      %54 = arith.index_cast %53 : i32 to index
      %c0_22 = arith.constant 0 : index
      %55 = vector.load %arg3[%54, %c0_22] : memref<256x128xf32, #tpu.memory_space<vmem>>, vector<1x128xf32>
      %c14 = arith.constant 14 : index
      %56 = memref.load %arg1[%c14] : memref<24xi32, #tpu.memory_space<smem>>
      %57 = arith.index_cast %56 : i32 to index
      %c0_23 = arith.constant 0 : index
      %58 = vector.load %arg3[%57, %c0_23] : memref<256x128xf32, #tpu.memory_space<vmem>>, vector<1x128xf32>
      %59 = tpu.concatenate %52, %55, %58 in 1 : vector<1x128xf32>, vector<1x128xf32>, vector<1x128xf32> -> vector<1x384xf32>
      %c15 = arith.constant 15 : index
      %60 = memref.load %arg1[%c15] : memref<24xi32, #tpu.memory_space<smem>>
      %61 = arith.index_cast %60 : i32 to index
      %c0_24 = arith.constant 0 : index
      %62 = vector.load %arg3[%61, %c0_24] : memref<256x128xf32, #tpu.memory_space<vmem>>, vector<1x128xf32>
      %c16 = arith.constant 16 : index
      %63 = memref.load %arg1[%c16] : memref<24xi32, #tpu.memory_space<smem>>
      %64 = arith.index_cast %63 : i32 to index
      %c0_25 = arith.constant 0 : index
      %65 = vector.load %arg3[%64, %c0_25] : memref<256x128xf32, #tpu.memory_space<vmem>>, vector<1x128xf32>
      %c17 = arith.constant 17 : index
      %66 = memref.load %arg1[%c17] : memref<24xi32, #tpu.memory_space<smem>>
      %67 = arith.index_cast %66 : i32 to index
      %c0_26 = arith.constant 0 : index
      %68 = vector.load %arg3[%67, %c0_26] : memref<256x128xf32, #tpu.memory_space<vmem>>, vector<1x128xf32>
      %69 = tpu.concatenate %62, %65, %68 in 1 : vector<1x128xf32>, vector<1x128xf32>, vector<1x128xf32> -> vector<1x384xf32>
      %c18 = arith.constant 18 : index
      %70 = memref.load %arg1[%c18] : memref<24xi32, #tpu.memory_space<smem>>
      %71 = arith.index_cast %70 : i32 to index
      %c0_27 = arith.constant 0 : index
      %72 = vector.load %arg3[%71, %c0_27] : memref<256x128xf32, #tpu.memory_space<vmem>>, vector<1x128xf32>
      %c19 = arith.constant 19 : index
      %73 = memref.load %arg1[%c19] : memref<24xi32, #tpu.memory_space<smem>>
      %74 = arith.index_cast %73 : i32 to index
      %c0_28 = arith.constant 0 : index
      %75 = vector.load %arg3[%74, %c0_28] : memref<256x128xf32, #tpu.memory_space<vmem>>, vector<1x128xf32>
      %c20 = arith.constant 20 : index
      %76 = memref.load %arg1[%c20] : memref<24xi32, #tpu.memory_space<smem>>
      %77 = arith.index_cast %76 : i32 to index
      %c0_29 = arith.constant 0 : index
      %78 = vector.load %arg3[%77, %c0_29] : memref<256x128xf32, #tpu.memory_space<vmem>>, vector<1x128xf32>
      %79 = tpu.concatenate %72, %75, %78 in 1 : vector<1x128xf32>, vector<1x128xf32>, vector<1x128xf32> -> vector<1x384xf32>
      %c21 = arith.constant 21 : index
      %80 = memref.load %arg1[%c21] : memref<24xi32, #tpu.memory_space<smem>>
      %81 = arith.index_cast %80 : i32 to index
      %c0_30 = arith.constant 0 : index
      %82 = vector.load %arg3[%81, %c0_30] : memref<256x128xf32, #tpu.memory_space<vmem>>, vector<1x128xf32>
      %c22 = arith.constant 22 : index
      %83 = memref.load %arg1[%c22] : memref<24xi32, #tpu.memory_space<smem>>
      %84 = arith.index_cast %83 : i32 to index
      %c0_31 = arith.constant 0 : index
      %85 = vector.load %arg3[%84, %c0_31] : memref<256x128xf32, #tpu.memory_space<vmem>>, vector<1x128xf32>
      %c23 = arith.constant 23 : index
      %86 = memref.load %arg1[%c23] : memref<24xi32, #tpu.memory_space<smem>>
      %87 = arith.index_cast %86 : i32 to index
      %c0_32 = arith.constant 0 : index
      %88 = vector.load %arg3[%87, %c0_32] : memref<256x128xf32, #tpu.memory_space<vmem>>, vector<1x128xf32>
      %89 = tpu.concatenate %82, %85, %88 in 1 : vector<1x128xf32>, vector<1x128xf32>, vector<1x128xf32> -> vector<1x384xf32>
      %90 = tpu.concatenate %19, %29, %39, %49, %59, %69, %79, %89 in 0 : vector<1x384xf32>, vector<1x384xf32>, vector<1x384xf32>, vector<1x384xf32>, vector<1x384xf32>, vector<1x384xf32>, vector<1x384xf32>, vector<1x384xf32> -> vector<8x384xf32>
      %c0_33 = arith.constant 0 : index
      %c0_34 = arith.constant 0 : index
      %91 = vector.load %arg2[%c0_33, %c0_34] : memref<8x128xf32, #tpu.memory_space<vmem>>, vector<8x128xf32>
      %c0_35 = arith.constant 0 : index
      %c0_36 = arith.constant 0 : index
      %92 = vector.load %arg4[%c0_35, %c0_36] : memref<128x512xf32, #tpu.memory_space<vmem>>, vector<128x512xf32>
      %cst_37 = arith.constant dense<0.000000e+00> : vector<8x512xf32>
      %93 = tpu.matmul %91, %92, %cst_37 {dimension_numbers = #tpu.dot_dimension_numbers<[1], [0], [0], [1], [0, 0, 1, 1], [], []>} : vector<8x128xf32>, vector<128x512xf32>, vector<8x512xf32> -> vector<8x512xf32>
      %c0_38 = arith.constant 0 : index
      %c0_39 = arith.constant 0 : index
      %94 = vector.load %arg5[%c0_38, %c0_39] : memref<384x512xf32, #tpu.memory_space<vmem>>, vector<384x512xf32>
      %cst_40 = arith.constant dense<0.000000e+00> : vector<8x512xf32>
      %95 = tpu.matmul %90, %94, %cst_40 {dimension_numbers = #tpu.dot_dimension_numbers<[1], [0], [0], [1], [0, 0, 1, 1], [], []>} : vector<8x384xf32>, vector<384x512xf32>, vector<8x512xf32> -> vector<8x512xf32>
      %96 = arith.addf %93, %95 : vector<8x512xf32>
      %c0_41 = arith.constant 0 : index
      %c0_42 = arith.constant 0 : index
      %97 = vector.load %arg7[%c0_41, %c0_42] : memref<1x512xf32, #tpu.memory_space<vmem>>, vector<1x512xf32>
      %98 = vector.broadcast %97 : vector<1x512xf32> to vector<8x512xf32>
      %99 = arith.addf %96, %98 : vector<8x512xf32>
      %c0_43 = arith.constant 0 : index
      %c0_44 = arith.constant 0 : index
      %100 = vector.load %arg6[%c0_43, %c0_44] : memref<128x512xf32, #tpu.memory_space<vmem>>, vector<128x512xf32>
      %cst_45 = arith.constant 0.000000e+00 : f32
      %101 = vector.broadcast %cst_45 : f32 to vector<1x128xf32>
      %cst_46 = arith.constant 0.000000e+00 : f32
      %102 = vector.broadcast %cst_46 : f32 to vector<1x128xf32>
      %103 = vector.extract_strided_slice %99 {offsets = [0, 0], sizes = [1, 512], strides = [1, 1]} : vector<8x512xf32> to vector<1x512xf32>
      %cst_47 = arith.constant dense<0.000000e+00> : vector<1x512xf32>
      %104 = tpu.matmul %101, %100, %cst_47 {dimension_numbers = #tpu.dot_dimension_numbers<[1], [0], [0], [1], [0, 0, 1, 1], [], []>} : vector<1x128xf32>, vector<128x512xf32>, vector<1x512xf32> -> vector<1x512xf32>
      %105 = arith.addf %103, %104 : vector<1x512xf32>
      %106 = vector.extract_strided_slice %105 {offsets = [0, 0], sizes = [1, 128], strides = [1, 1]} : vector<1x512xf32> to vector<1x128xf32>
      %107 = arith.negf %106 : vector<1x128xf32>
      %108 = math.exp %107 : vector<1x128xf32>
      %cst_48 = arith.constant 1.000000e+00 : f32
      %109 = vector.broadcast %cst_48 : f32 to vector<1x128xf32>
      %110 = arith.addf %109, %108 : vector<1x128xf32>
      %111 = arith.divf %109, %110 : vector<1x128xf32>
      %112 = vector.extract_strided_slice %105 {offsets = [0, 128], sizes = [1, 128], strides = [1, 1]} : vector<1x512xf32> to vector<1x128xf32>
      %113 = arith.negf %112 : vector<1x128xf32>
      %114 = math.exp %113 : vector<1x128xf32>
      %cst_49 = arith.constant 1.000000e+00 : f32
      %115 = vector.broadcast %cst_49 : f32 to vector<1x128xf32>
      %116 = arith.addf %115, %114 : vector<1x128xf32>
      %117 = arith.divf %115, %116 : vector<1x128xf32>
      %118 = vector.extract_strided_slice %105 {offsets = [0, 256], sizes = [1, 128], strides = [1, 1]} : vector<1x512xf32> to vector<1x128xf32>
      %119 = math.tanh %118 : vector<1x128xf32>
      %120 = vector.extract_strided_slice %105 {offsets = [0, 384], sizes = [1, 128], strides = [1, 1]} : vector<1x512xf32> to vector<1x128xf32>
      %121 = arith.negf %120 : vector<1x128xf32>
      %122 = math.exp %121 : vector<1x128xf32>
      %cst_50 = arith.constant 1.000000e+00 : f32
      %123 = vector.broadcast %cst_50 : f32 to vector<1x128xf32>
      %124 = arith.addf %123, %122 : vector<1x128xf32>
      %125 = arith.divf %123, %124 : vector<1x128xf32>
      %126 = arith.mulf %117, %102 : vector<1x128xf32>
      %127 = arith.mulf %111, %119 : vector<1x128xf32>
      %128 = arith.addf %126, %127 : vector<1x128xf32>
      %129 = math.tanh %128 : vector<1x128xf32>
      %130 = arith.mulf %125, %129 : vector<1x128xf32>
      %131 = vector.extract_strided_slice %99 {offsets = [1, 0], sizes = [1, 512], strides = [1, 1]} : vector<8x512xf32> to vector<1x512xf32>
      %cst_51 = arith.constant dense<0.000000e+00> : vector<1x512xf32>
      %132 = tpu.matmul %130, %100, %cst_51 {dimension_numbers = #tpu.dot_dimension_numbers<[1], [0], [0], [1], [0, 0, 1, 1], [], []>} : vector<1x128xf32>, vector<128x512xf32>, vector<1x512xf32> -> vector<1x512xf32>
      %133 = arith.addf %131, %132 : vector<1x512xf32>
      %134 = vector.extract_strided_slice %133 {offsets = [0, 0], sizes = [1, 128], strides = [1, 1]} : vector<1x512xf32> to vector<1x128xf32>
      %135 = arith.negf %134 : vector<1x128xf32>
      %136 = math.exp %135 : vector<1x128xf32>
      %cst_52 = arith.constant 1.000000e+00 : f32
      %137 = vector.broadcast %cst_52 : f32 to vector<1x128xf32>
      %138 = arith.addf %137, %136 : vector<1x128xf32>
      %139 = arith.divf %137, %138 : vector<1x128xf32>
      %140 = vector.extract_strided_slice %133 {offsets = [0, 128], sizes = [1, 128], strides = [1, 1]} : vector<1x512xf32> to vector<1x128xf32>
      %141 = arith.negf %140 : vector<1x128xf32>
      %142 = math.exp %141 : vector<1x128xf32>
      %cst_53 = arith.constant 1.000000e+00 : f32
      %143 = vector.broadcast %cst_53 : f32 to vector<1x128xf32>
      %144 = arith.addf %143, %142 : vector<1x128xf32>
      %145 = arith.divf %143, %144 : vector<1x128xf32>
      %146 = vector.extract_strided_slice %133 {offsets = [0, 256], sizes = [1, 128], strides = [1, 1]} : vector<1x512xf32> to vector<1x128xf32>
      %147 = math.tanh %146 : vector<1x128xf32>
      %148 = vector.extract_strided_slice %133 {offsets = [0, 384], sizes = [1, 128], strides = [1, 1]} : vector<1x512xf32> to vector<1x128xf32>
      %149 = arith.negf %148 : vector<1x128xf32>
      %150 = math.exp %149 : vector<1x128xf32>
      %cst_54 = arith.constant 1.000000e+00 : f32
      %151 = vector.broadcast %cst_54 : f32 to vector<1x128xf32>
      %152 = arith.addf %151, %150 : vector<1x128xf32>
      %153 = arith.divf %151, %152 : vector<1x128xf32>
      %154 = arith.mulf %145, %128 : vector<1x128xf32>
      %155 = arith.mulf %139, %147 : vector<1x128xf32>
      %156 = arith.addf %154, %155 : vector<1x128xf32>
      %157 = math.tanh %156 : vector<1x128xf32>
      %158 = arith.mulf %153, %157 : vector<1x128xf32>
      %159 = vector.extract_strided_slice %99 {offsets = [2, 0], sizes = [1, 512], strides = [1, 1]} : vector<8x512xf32> to vector<1x512xf32>
      %cst_55 = arith.constant dense<0.000000e+00> : vector<1x512xf32>
      %160 = tpu.matmul %158, %100, %cst_55 {dimension_numbers = #tpu.dot_dimension_numbers<[1], [0], [0], [1], [0, 0, 1, 1], [], []>} : vector<1x128xf32>, vector<128x512xf32>, vector<1x512xf32> -> vector<1x512xf32>
      %161 = arith.addf %159, %160 : vector<1x512xf32>
      %162 = vector.extract_strided_slice %161 {offsets = [0, 0], sizes = [1, 128], strides = [1, 1]} : vector<1x512xf32> to vector<1x128xf32>
      %163 = arith.negf %162 : vector<1x128xf32>
      %164 = math.exp %163 : vector<1x128xf32>
      %cst_56 = arith.constant 1.000000e+00 : f32
      %165 = vector.broadcast %cst_56 : f32 to vector<1x128xf32>
      %166 = arith.addf %165, %164 : vector<1x128xf32>
      %167 = arith.divf %165, %166 : vector<1x128xf32>
      %168 = vector.extract_strided_slice %161 {offsets = [0, 128], sizes = [1, 128], strides = [1, 1]} : vector<1x512xf32> to vector<1x128xf32>
      %169 = arith.negf %168 : vector<1x128xf32>
      %170 = math.exp %169 : vector<1x128xf32>
      %cst_57 = arith.constant 1.000000e+00 : f32
      %171 = vector.broadcast %cst_57 : f32 to vector<1x128xf32>
      %172 = arith.addf %171, %170 : vector<1x128xf32>
      %173 = arith.divf %171, %172 : vector<1x128xf32>
      %174 = vector.extract_strided_slice %161 {offsets = [0, 256], sizes = [1, 128], strides = [1, 1]} : vector<1x512xf32> to vector<1x128xf32>
      %175 = math.tanh %174 : vector<1x128xf32>
      %176 = vector.extract_strided_slice %161 {offsets = [0, 384], sizes = [1, 128], strides = [1, 1]} : vector<1x512xf32> to vector<1x128xf32>
      %177 = arith.negf %176 : vector<1x128xf32>
      %178 = math.exp %177 : vector<1x128xf32>
      %cst_58 = arith.constant 1.000000e+00 : f32
      %179 = vector.broadcast %cst_58 : f32 to vector<1x128xf32>
      %180 = arith.addf %179, %178 : vector<1x128xf32>
      %181 = arith.divf %179, %180 : vector<1x128xf32>
      %182 = arith.mulf %173, %156 : vector<1x128xf32>
      %183 = arith.mulf %167, %175 : vector<1x128xf32>
      %184 = arith.addf %182, %183 : vector<1x128xf32>
      %185 = math.tanh %184 : vector<1x128xf32>
      %186 = arith.mulf %181, %185 : vector<1x128xf32>
      %187 = vector.extract_strided_slice %99 {offsets = [3, 0], sizes = [1, 512], strides = [1, 1]} : vector<8x512xf32> to vector<1x512xf32>
      %cst_59 = arith.constant dense<0.000000e+00> : vector<1x512xf32>
      %188 = tpu.matmul %186, %100, %cst_59 {dimension_numbers = #tpu.dot_dimension_numbers<[1], [0], [0], [1], [0, 0, 1, 1], [], []>} : vector<1x128xf32>, vector<128x512xf32>, vector<1x512xf32> -> vector<1x512xf32>
      %189 = arith.addf %187, %188 : vector<1x512xf32>
      %190 = vector.extract_strided_slice %189 {offsets = [0, 0], sizes = [1, 128], strides = [1, 1]} : vector<1x512xf32> to vector<1x128xf32>
      %191 = arith.negf %190 : vector<1x128xf32>
      %192 = math.exp %191 : vector<1x128xf32>
      %cst_60 = arith.constant 1.000000e+00 : f32
      %193 = vector.broadcast %cst_60 : f32 to vector<1x128xf32>
      %194 = arith.addf %193, %192 : vector<1x128xf32>
      %195 = arith.divf %193, %194 : vector<1x128xf32>
      %196 = vector.extract_strided_slice %189 {offsets = [0, 128], sizes = [1, 128], strides = [1, 1]} : vector<1x512xf32> to vector<1x128xf32>
      %197 = arith.negf %196 : vector<1x128xf32>
      %198 = math.exp %197 : vector<1x128xf32>
      %cst_61 = arith.constant 1.000000e+00 : f32
      %199 = vector.broadcast %cst_61 : f32 to vector<1x128xf32>
      %200 = arith.addf %199, %198 : vector<1x128xf32>
      %201 = arith.divf %199, %200 : vector<1x128xf32>
      %202 = vector.extract_strided_slice %189 {offsets = [0, 256], sizes = [1, 128], strides = [1, 1]} : vector<1x512xf32> to vector<1x128xf32>
      %203 = math.tanh %202 : vector<1x128xf32>
      %204 = vector.extract_strided_slice %189 {offsets = [0, 384], sizes = [1, 128], strides = [1, 1]} : vector<1x512xf32> to vector<1x128xf32>
      %205 = arith.negf %204 : vector<1x128xf32>
      %206 = math.exp %205 : vector<1x128xf32>
      %cst_62 = arith.constant 1.000000e+00 : f32
      %207 = vector.broadcast %cst_62 : f32 to vector<1x128xf32>
      %208 = arith.addf %207, %206 : vector<1x128xf32>
      %209 = arith.divf %207, %208 : vector<1x128xf32>
      %210 = arith.mulf %201, %184 : vector<1x128xf32>
      %211 = arith.mulf %195, %203 : vector<1x128xf32>
      %212 = arith.addf %210, %211 : vector<1x128xf32>
      %213 = math.tanh %212 : vector<1x128xf32>
      %214 = arith.mulf %209, %213 : vector<1x128xf32>
      %215 = vector.extract_strided_slice %99 {offsets = [4, 0], sizes = [1, 512], strides = [1, 1]} : vector<8x512xf32> to vector<1x512xf32>
      %cst_63 = arith.constant dense<0.000000e+00> : vector<1x512xf32>
      %216 = tpu.matmul %214, %100, %cst_63 {dimension_numbers = #tpu.dot_dimension_numbers<[1], [0], [0], [1], [0, 0, 1, 1], [], []>} : vector<1x128xf32>, vector<128x512xf32>, vector<1x512xf32> -> vector<1x512xf32>
      %217 = arith.addf %215, %216 : vector<1x512xf32>
      %218 = vector.extract_strided_slice %217 {offsets = [0, 0], sizes = [1, 128], strides = [1, 1]} : vector<1x512xf32> to vector<1x128xf32>
      %219 = arith.negf %218 : vector<1x128xf32>
      %220 = math.exp %219 : vector<1x128xf32>
      %cst_64 = arith.constant 1.000000e+00 : f32
      %221 = vector.broadcast %cst_64 : f32 to vector<1x128xf32>
      %222 = arith.addf %221, %220 : vector<1x128xf32>
      %223 = arith.divf %221, %222 : vector<1x128xf32>
      %224 = vector.extract_strided_slice %217 {offsets = [0, 128], sizes = [1, 128], strides = [1, 1]} : vector<1x512xf32> to vector<1x128xf32>
      %225 = arith.negf %224 : vector<1x128xf32>
      %226 = math.exp %225 : vector<1x128xf32>
      %cst_65 = arith.constant 1.000000e+00 : f32
      %227 = vector.broadcast %cst_65 : f32 to vector<1x128xf32>
      %228 = arith.addf %227, %226 : vector<1x128xf32>
      %229 = arith.divf %227, %228 : vector<1x128xf32>
      %230 = vector.extract_strided_slice %217 {offsets = [0, 256], sizes = [1, 128], strides = [1, 1]} : vector<1x512xf32> to vector<1x128xf32>
      %231 = math.tanh %230 : vector<1x128xf32>
      %232 = vector.extract_strided_slice %217 {offsets = [0, 384], sizes = [1, 128], strides = [1, 1]} : vector<1x512xf32> to vector<1x128xf32>
      %233 = arith.negf %232 : vector<1x128xf32>
      %234 = math.exp %233 : vector<1x128xf32>
      %cst_66 = arith.constant 1.000000e+00 : f32
      %235 = vector.broadcast %cst_66 : f32 to vector<1x128xf32>
      %236 = arith.addf %235, %234 : vector<1x128xf32>
      %237 = arith.divf %235, %236 : vector<1x128xf32>
      %238 = arith.mulf %229, %212 : vector<1x128xf32>
      %239 = arith.mulf %223, %231 : vector<1x128xf32>
      %240 = arith.addf %238, %239 : vector<1x128xf32>
      %241 = math.tanh %240 : vector<1x128xf32>
      %242 = arith.mulf %237, %241 : vector<1x128xf32>
      %243 = vector.extract_strided_slice %99 {offsets = [5, 0], sizes = [1, 512], strides = [1, 1]} : vector<8x512xf32> to vector<1x512xf32>
      %cst_67 = arith.constant dense<0.000000e+00> : vector<1x512xf32>
      %244 = tpu.matmul %242, %100, %cst_67 {dimension_numbers = #tpu.dot_dimension_numbers<[1], [0], [0], [1], [0, 0, 1, 1], [], []>} : vector<1x128xf32>, vector<128x512xf32>, vector<1x512xf32> -> vector<1x512xf32>
      %245 = arith.addf %243, %244 : vector<1x512xf32>
      %246 = vector.extract_strided_slice %245 {offsets = [0, 0], sizes = [1, 128], strides = [1, 1]} : vector<1x512xf32> to vector<1x128xf32>
      %247 = arith.negf %246 : vector<1x128xf32>
      %248 = math.exp %247 : vector<1x128xf32>
      %cst_68 = arith.constant 1.000000e+00 : f32
      %249 = vector.broadcast %cst_68 : f32 to vector<1x128xf32>
      %250 = arith.addf %249, %248 : vector<1x128xf32>
      %251 = arith.divf %249, %250 : vector<1x128xf32>
      %252 = vector.extract_strided_slice %245 {offsets = [0, 128], sizes = [1, 128], strides = [1, 1]} : vector<1x512xf32> to vector<1x128xf32>
      %253 = arith.negf %252 : vector<1x128xf32>
      %254 = math.exp %253 : vector<1x128xf32>
      %cst_69 = arith.constant 1.000000e+00 : f32
      %255 = vector.broadcast %cst_69 : f32 to vector<1x128xf32>
      %256 = arith.addf %255, %254 : vector<1x128xf32>
      %257 = arith.divf %255, %256 : vector<1x128xf32>
      %258 = vector.extract_strided_slice %245 {offsets = [0, 256], sizes = [1, 128], strides = [1, 1]} : vector<1x512xf32> to vector<1x128xf32>
      %259 = math.tanh %258 : vector<1x128xf32>
      %260 = vector.extract_strided_slice %245 {offsets = [0, 384], sizes = [1, 128], strides = [1, 1]} : vector<1x512xf32> to vector<1x128xf32>
      %261 = arith.negf %260 : vector<1x128xf32>
      %262 = math.exp %261 : vector<1x128xf32>
      %cst_70 = arith.constant 1.000000e+00 : f32
      %263 = vector.broadcast %cst_70 : f32 to vector<1x128xf32>
      %264 = arith.addf %263, %262 : vector<1x128xf32>
      %265 = arith.divf %263, %264 : vector<1x128xf32>
      %266 = arith.mulf %257, %240 : vector<1x128xf32>
      %267 = arith.mulf %251, %259 : vector<1x128xf32>
      %268 = arith.addf %266, %267 : vector<1x128xf32>
      %269 = math.tanh %268 : vector<1x128xf32>
      %270 = arith.mulf %265, %269 : vector<1x128xf32>
      %271 = vector.extract_strided_slice %99 {offsets = [6, 0], sizes = [1, 512], strides = [1, 1]} : vector<8x512xf32> to vector<1x512xf32>
      %cst_71 = arith.constant dense<0.000000e+00> : vector<1x512xf32>
      %272 = tpu.matmul %270, %100, %cst_71 {dimension_numbers = #tpu.dot_dimension_numbers<[1], [0], [0], [1], [0, 0, 1, 1], [], []>} : vector<1x128xf32>, vector<128x512xf32>, vector<1x512xf32> -> vector<1x512xf32>
      %273 = arith.addf %271, %272 : vector<1x512xf32>
      %274 = vector.extract_strided_slice %273 {offsets = [0, 0], sizes = [1, 128], strides = [1, 1]} : vector<1x512xf32> to vector<1x128xf32>
      %275 = arith.negf %274 : vector<1x128xf32>
      %276 = math.exp %275 : vector<1x128xf32>
      %cst_72 = arith.constant 1.000000e+00 : f32
      %277 = vector.broadcast %cst_72 : f32 to vector<1x128xf32>
      %278 = arith.addf %277, %276 : vector<1x128xf32>
      %279 = arith.divf %277, %278 : vector<1x128xf32>
      %280 = vector.extract_strided_slice %273 {offsets = [0, 128], sizes = [1, 128], strides = [1, 1]} : vector<1x512xf32> to vector<1x128xf32>
      %281 = arith.negf %280 : vector<1x128xf32>
      %282 = math.exp %281 : vector<1x128xf32>
      %cst_73 = arith.constant 1.000000e+00 : f32
      %283 = vector.broadcast %cst_73 : f32 to vector<1x128xf32>
      %284 = arith.addf %283, %282 : vector<1x128xf32>
      %285 = arith.divf %283, %284 : vector<1x128xf32>
      %286 = vector.extract_strided_slice %273 {offsets = [0, 256], sizes = [1, 128], strides = [1, 1]} : vector<1x512xf32> to vector<1x128xf32>
      %287 = math.tanh %286 : vector<1x128xf32>
      %288 = vector.extract_strided_slice %273 {offsets = [0, 384], sizes = [1, 128], strides = [1, 1]} : vector<1x512xf32> to vector<1x128xf32>
      %289 = arith.negf %288 : vector<1x128xf32>
      %290 = math.exp %289 : vector<1x128xf32>
      %cst_74 = arith.constant 1.000000e+00 : f32
      %291 = vector.broadcast %cst_74 : f32 to vector<1x128xf32>
      %292 = arith.addf %291, %290 : vector<1x128xf32>
      %293 = arith.divf %291, %292 : vector<1x128xf32>
      %294 = arith.mulf %285, %268 : vector<1x128xf32>
      %295 = arith.mulf %279, %287 : vector<1x128xf32>
      %296 = arith.addf %294, %295 : vector<1x128xf32>
      %297 = math.tanh %296 : vector<1x128xf32>
      %298 = arith.mulf %293, %297 : vector<1x128xf32>
      %299 = vector.extract_strided_slice %99 {offsets = [7, 0], sizes = [1, 512], strides = [1, 1]} : vector<8x512xf32> to vector<1x512xf32>
      %cst_75 = arith.constant dense<0.000000e+00> : vector<1x512xf32>
      %300 = tpu.matmul %298, %100, %cst_75 {dimension_numbers = #tpu.dot_dimension_numbers<[1], [0], [0], [1], [0, 0, 1, 1], [], []>} : vector<1x128xf32>, vector<128x512xf32>, vector<1x512xf32> -> vector<1x512xf32>
      %301 = arith.addf %299, %300 : vector<1x512xf32>
      %302 = vector.extract_strided_slice %301 {offsets = [0, 0], sizes = [1, 128], strides = [1, 1]} : vector<1x512xf32> to vector<1x128xf32>
      %303 = arith.negf %302 : vector<1x128xf32>
      %304 = math.exp %303 : vector<1x128xf32>
      %cst_76 = arith.constant 1.000000e+00 : f32
      %305 = vector.broadcast %cst_76 : f32 to vector<1x128xf32>
      %306 = arith.addf %305, %304 : vector<1x128xf32>
      %307 = arith.divf %305, %306 : vector<1x128xf32>
      %308 = vector.extract_strided_slice %301 {offsets = [0, 128], sizes = [1, 128], strides = [1, 1]} : vector<1x512xf32> to vector<1x128xf32>
      %309 = arith.negf %308 : vector<1x128xf32>
      %310 = math.exp %309 : vector<1x128xf32>
      %cst_77 = arith.constant 1.000000e+00 : f32
      %311 = vector.broadcast %cst_77 : f32 to vector<1x128xf32>
      %312 = arith.addf %311, %310 : vector<1x128xf32>
      %313 = arith.divf %311, %312 : vector<1x128xf32>
      %314 = vector.extract_strided_slice %301 {offsets = [0, 256], sizes = [1, 128], strides = [1, 1]} : vector<1x512xf32> to vector<1x128xf32>
      %315 = math.tanh %314 : vector<1x128xf32>
      %316 = vector.extract_strided_slice %301 {offsets = [0, 384], sizes = [1, 128], strides = [1, 1]} : vector<1x512xf32> to vector<1x128xf32>
      %317 = arith.negf %316 : vector<1x128xf32>
      %318 = math.exp %317 : vector<1x128xf32>
      %cst_78 = arith.constant 1.000000e+00 : f32
      %319 = vector.broadcast %cst_78 : f32 to vector<1x128xf32>
      %320 = arith.addf %319, %318 : vector<1x128xf32>
      %321 = arith.divf %319, %320 : vector<1x128xf32>
      %322 = arith.mulf %313, %296 : vector<1x128xf32>
      %323 = arith.mulf %307, %315 : vector<1x128xf32>
      %324 = arith.addf %322, %323 : vector<1x128xf32>
      %325 = math.tanh %324 : vector<1x128xf32>
      %326 = arith.mulf %321, %325 : vector<1x128xf32>
      %327 = tpu.concatenate %130, %158, %186, %214, %242, %270, %298, %326 in 0 : vector<1x128xf32>, vector<1x128xf32>, vector<1x128xf32>, vector<1x128xf32>, vector<1x128xf32>, vector<1x128xf32>, vector<1x128xf32>, vector<1x128xf32> -> vector<8x128xf32>
      %c0_79 = arith.constant 0 : index
      %c0_80 = arith.constant 0 : index
      %328 = vector.load %arg8[%c0_79, %c0_80] : memref<128x512xf32, #tpu.memory_space<vmem>>, vector<128x512xf32>
      %cst_81 = arith.constant dense<0.000000e+00> : vector<8x512xf32>
      %329 = tpu.matmul %327, %328, %cst_81 {dimension_numbers = #tpu.dot_dimension_numbers<[1], [0], [0], [1], [0, 0, 1, 1], [], []>} : vector<8x128xf32>, vector<128x512xf32>, vector<8x512xf32> -> vector<8x512xf32>
      %c0_82 = arith.constant 0 : index
      %c0_83 = arith.constant 0 : index
      %330 = vector.load %arg10[%c0_82, %c0_83] : memref<1x512xf32, #tpu.memory_space<vmem>>, vector<1x512xf32>
      %331 = vector.broadcast %330 : vector<1x512xf32> to vector<8x512xf32>
      %332 = arith.addf %329, %331 : vector<8x512xf32>
      %c0_84 = arith.constant 0 : index
      %c0_85 = arith.constant 0 : index
      %333 = vector.load %arg9[%c0_84, %c0_85] : memref<128x512xf32, #tpu.memory_space<vmem>>, vector<128x512xf32>
      %cst_86 = arith.constant 0.000000e+00 : f32
      %334 = vector.broadcast %cst_86 : f32 to vector<1x128xf32>
      %cst_87 = arith.constant 0.000000e+00 : f32
      %335 = vector.broadcast %cst_87 : f32 to vector<1x128xf32>
      %336 = vector.extract_strided_slice %332 {offsets = [0, 0], sizes = [1, 512], strides = [1, 1]} : vector<8x512xf32> to vector<1x512xf32>
      %cst_88 = arith.constant dense<0.000000e+00> : vector<1x512xf32>
      %337 = tpu.matmul %334, %333, %cst_88 {dimension_numbers = #tpu.dot_dimension_numbers<[1], [0], [0], [1], [0, 0, 1, 1], [], []>} : vector<1x128xf32>, vector<128x512xf32>, vector<1x512xf32> -> vector<1x512xf32>
      %338 = arith.addf %336, %337 : vector<1x512xf32>
      %339 = vector.extract_strided_slice %338 {offsets = [0, 0], sizes = [1, 128], strides = [1, 1]} : vector<1x512xf32> to vector<1x128xf32>
      %340 = arith.negf %339 : vector<1x128xf32>
      %341 = math.exp %340 : vector<1x128xf32>
      %cst_89 = arith.constant 1.000000e+00 : f32
      %342 = vector.broadcast %cst_89 : f32 to vector<1x128xf32>
      %343 = arith.addf %342, %341 : vector<1x128xf32>
      %344 = arith.divf %342, %343 : vector<1x128xf32>
      %345 = vector.extract_strided_slice %338 {offsets = [0, 128], sizes = [1, 128], strides = [1, 1]} : vector<1x512xf32> to vector<1x128xf32>
      %346 = arith.negf %345 : vector<1x128xf32>
      %347 = math.exp %346 : vector<1x128xf32>
      %cst_90 = arith.constant 1.000000e+00 : f32
      %348 = vector.broadcast %cst_90 : f32 to vector<1x128xf32>
      %349 = arith.addf %348, %347 : vector<1x128xf32>
      %350 = arith.divf %348, %349 : vector<1x128xf32>
      %351 = vector.extract_strided_slice %338 {offsets = [0, 256], sizes = [1, 128], strides = [1, 1]} : vector<1x512xf32> to vector<1x128xf32>
      %352 = math.tanh %351 : vector<1x128xf32>
      %353 = vector.extract_strided_slice %338 {offsets = [0, 384], sizes = [1, 128], strides = [1, 1]} : vector<1x512xf32> to vector<1x128xf32>
      %354 = arith.negf %353 : vector<1x128xf32>
      %355 = math.exp %354 : vector<1x128xf32>
      %cst_91 = arith.constant 1.000000e+00 : f32
      %356 = vector.broadcast %cst_91 : f32 to vector<1x128xf32>
      %357 = arith.addf %356, %355 : vector<1x128xf32>
      %358 = arith.divf %356, %357 : vector<1x128xf32>
      %359 = arith.mulf %350, %335 : vector<1x128xf32>
      %360 = arith.mulf %344, %352 : vector<1x128xf32>
      %361 = arith.addf %359, %360 : vector<1x128xf32>
      %362 = math.tanh %361 : vector<1x128xf32>
      %363 = arith.mulf %358, %362 : vector<1x128xf32>
      %364 = vector.extract_strided_slice %332 {offsets = [1, 0], sizes = [1, 512], strides = [1, 1]} : vector<8x512xf32> to vector<1x512xf32>
      %cst_92 = arith.constant dense<0.000000e+00> : vector<1x512xf32>
      %365 = tpu.matmul %363, %333, %cst_92 {dimension_numbers = #tpu.dot_dimension_numbers<[1], [0], [0], [1], [0, 0, 1, 1], [], []>} : vector<1x128xf32>, vector<128x512xf32>, vector<1x512xf32> -> vector<1x512xf32>
      %366 = arith.addf %364, %365 : vector<1x512xf32>
      %367 = vector.extract_strided_slice %366 {offsets = [0, 0], sizes = [1, 128], strides = [1, 1]} : vector<1x512xf32> to vector<1x128xf32>
      %368 = arith.negf %367 : vector<1x128xf32>
      %369 = math.exp %368 : vector<1x128xf32>
      %cst_93 = arith.constant 1.000000e+00 : f32
      %370 = vector.broadcast %cst_93 : f32 to vector<1x128xf32>
      %371 = arith.addf %370, %369 : vector<1x128xf32>
      %372 = arith.divf %370, %371 : vector<1x128xf32>
      %373 = vector.extract_strided_slice %366 {offsets = [0, 128], sizes = [1, 128], strides = [1, 1]} : vector<1x512xf32> to vector<1x128xf32>
      %374 = arith.negf %373 : vector<1x128xf32>
      %375 = math.exp %374 : vector<1x128xf32>
      %cst_94 = arith.constant 1.000000e+00 : f32
      %376 = vector.broadcast %cst_94 : f32 to vector<1x128xf32>
      %377 = arith.addf %376, %375 : vector<1x128xf32>
      %378 = arith.divf %376, %377 : vector<1x128xf32>
      %379 = vector.extract_strided_slice %366 {offsets = [0, 256], sizes = [1, 128], strides = [1, 1]} : vector<1x512xf32> to vector<1x128xf32>
      %380 = math.tanh %379 : vector<1x128xf32>
      %381 = vector.extract_strided_slice %366 {offsets = [0, 384], sizes = [1, 128], strides = [1, 1]} : vector<1x512xf32> to vector<1x128xf32>
      %382 = arith.negf %381 : vector<1x128xf32>
      %383 = math.exp %382 : vector<1x128xf32>
      %cst_95 = arith.constant 1.000000e+00 : f32
      %384 = vector.broadcast %cst_95 : f32 to vector<1x128xf32>
      %385 = arith.addf %384, %383 : vector<1x128xf32>
      %386 = arith.divf %384, %385 : vector<1x128xf32>
      %387 = arith.mulf %378, %361 : vector<1x128xf32>
      %388 = arith.mulf %372, %380 : vector<1x128xf32>
      %389 = arith.addf %387, %388 : vector<1x128xf32>
      %390 = math.tanh %389 : vector<1x128xf32>
      %391 = arith.mulf %386, %390 : vector<1x128xf32>
      %392 = vector.extract_strided_slice %332 {offsets = [2, 0], sizes = [1, 512], strides = [1, 1]} : vector<8x512xf32> to vector<1x512xf32>
      %cst_96 = arith.constant dense<0.000000e+00> : vector<1x512xf32>
      %393 = tpu.matmul %391, %333, %cst_96 {dimension_numbers = #tpu.dot_dimension_numbers<[1], [0], [0], [1], [0, 0, 1, 1], [], []>} : vector<1x128xf32>, vector<128x512xf32>, vector<1x512xf32> -> vector<1x512xf32>
      %394 = arith.addf %392, %393 : vector<1x512xf32>
      %395 = vector.extract_strided_slice %394 {offsets = [0, 0], sizes = [1, 128], strides = [1, 1]} : vector<1x512xf32> to vector<1x128xf32>
      %396 = arith.negf %395 : vector<1x128xf32>
      %397 = math.exp %396 : vector<1x128xf32>
      %cst_97 = arith.constant 1.000000e+00 : f32
      %398 = vector.broadcast %cst_97 : f32 to vector<1x128xf32>
      %399 = arith.addf %398, %397 : vector<1x128xf32>
      %400 = arith.divf %398, %399 : vector<1x128xf32>
      %401 = vector.extract_strided_slice %394 {offsets = [0, 128], sizes = [1, 128], strides = [1, 1]} : vector<1x512xf32> to vector<1x128xf32>
      %402 = arith.negf %401 : vector<1x128xf32>
      %403 = math.exp %402 : vector<1x128xf32>
      %cst_98 = arith.constant 1.000000e+00 : f32
      %404 = vector.broadcast %cst_98 : f32 to vector<1x128xf32>
      %405 = arith.addf %404, %403 : vector<1x128xf32>
      %406 = arith.divf %404, %405 : vector<1x128xf32>
      %407 = vector.extract_strided_slice %394 {offsets = [0, 256], sizes = [1, 128], strides = [1, 1]} : vector<1x512xf32> to vector<1x128xf32>
      %408 = math.tanh %407 : vector<1x128xf32>
      %409 = vector.extract_strided_slice %394 {offsets = [0, 384], sizes = [1, 128], strides = [1, 1]} : vector<1x512xf32> to vector<1x128xf32>
      %410 = arith.negf %409 : vector<1x128xf32>
      %411 = math.exp %410 : vector<1x128xf32>
      %cst_99 = arith.constant 1.000000e+00 : f32
      %412 = vector.broadcast %cst_99 : f32 to vector<1x128xf32>
      %413 = arith.addf %412, %411 : vector<1x128xf32>
      %414 = arith.divf %412, %413 : vector<1x128xf32>
      %415 = arith.mulf %406, %389 : vector<1x128xf32>
      %416 = arith.mulf %400, %408 : vector<1x128xf32>
      %417 = arith.addf %415, %416 : vector<1x128xf32>
      %418 = math.tanh %417 : vector<1x128xf32>
      %419 = arith.mulf %414, %418 : vector<1x128xf32>
      %420 = vector.extract_strided_slice %332 {offsets = [3, 0], sizes = [1, 512], strides = [1, 1]} : vector<8x512xf32> to vector<1x512xf32>
      %cst_100 = arith.constant dense<0.000000e+00> : vector<1x512xf32>
      %421 = tpu.matmul %419, %333, %cst_100 {dimension_numbers = #tpu.dot_dimension_numbers<[1], [0], [0], [1], [0, 0, 1, 1], [], []>} : vector<1x128xf32>, vector<128x512xf32>, vector<1x512xf32> -> vector<1x512xf32>
      %422 = arith.addf %420, %421 : vector<1x512xf32>
      %423 = vector.extract_strided_slice %422 {offsets = [0, 0], sizes = [1, 128], strides = [1, 1]} : vector<1x512xf32> to vector<1x128xf32>
      %424 = arith.negf %423 : vector<1x128xf32>
      %425 = math.exp %424 : vector<1x128xf32>
      %cst_101 = arith.constant 1.000000e+00 : f32
      %426 = vector.broadcast %cst_101 : f32 to vector<1x128xf32>
      %427 = arith.addf %426, %425 : vector<1x128xf32>
      %428 = arith.divf %426, %427 : vector<1x128xf32>
      %429 = vector.extract_strided_slice %422 {offsets = [0, 128], sizes = [1, 128], strides = [1, 1]} : vector<1x512xf32> to vector<1x128xf32>
      %430 = arith.negf %429 : vector<1x128xf32>
      %431 = math.exp %430 : vector<1x128xf32>
      %cst_102 = arith.constant 1.000000e+00 : f32
      %432 = vector.broadcast %cst_102 : f32 to vector<1x128xf32>
      %433 = arith.addf %432, %431 : vector<1x128xf32>
      %434 = arith.divf %432, %433 : vector<1x128xf32>
      %435 = vector.extract_strided_slice %422 {offsets = [0, 256], sizes = [1, 128], strides = [1, 1]} : vector<1x512xf32> to vector<1x128xf32>
      %436 = math.tanh %435 : vector<1x128xf32>
      %437 = vector.extract_strided_slice %422 {offsets = [0, 384], sizes = [1, 128], strides = [1, 1]} : vector<1x512xf32> to vector<1x128xf32>
      %438 = arith.negf %437 : vector<1x128xf32>
      %439 = math.exp %438 : vector<1x128xf32>
      %cst_103 = arith.constant 1.000000e+00 : f32
      %440 = vector.broadcast %cst_103 : f32 to vector<1x128xf32>
      %441 = arith.addf %440, %439 : vector<1x128xf32>
      %442 = arith.divf %440, %441 : vector<1x128xf32>
      %443 = arith.mulf %434, %417 : vector<1x128xf32>
      %444 = arith.mulf %428, %436 : vector<1x128xf32>
      %445 = arith.addf %443, %444 : vector<1x128xf32>
      %446 = math.tanh %445 : vector<1x128xf32>
      %447 = arith.mulf %442, %446 : vector<1x128xf32>
      %448 = vector.extract_strided_slice %332 {offsets = [4, 0], sizes = [1, 512], strides = [1, 1]} : vector<8x512xf32> to vector<1x512xf32>
      %cst_104 = arith.constant dense<0.000000e+00> : vector<1x512xf32>
      %449 = tpu.matmul %447, %333, %cst_104 {dimension_numbers = #tpu.dot_dimension_numbers<[1], [0], [0], [1], [0, 0, 1, 1], [], []>} : vector<1x128xf32>, vector<128x512xf32>, vector<1x512xf32> -> vector<1x512xf32>
      %450 = arith.addf %448, %449 : vector<1x512xf32>
      %451 = vector.extract_strided_slice %450 {offsets = [0, 0], sizes = [1, 128], strides = [1, 1]} : vector<1x512xf32> to vector<1x128xf32>
      %452 = arith.negf %451 : vector<1x128xf32>
      %453 = math.exp %452 : vector<1x128xf32>
      %cst_105 = arith.constant 1.000000e+00 : f32
      %454 = vector.broadcast %cst_105 : f32 to vector<1x128xf32>
      %455 = arith.addf %454, %453 : vector<1x128xf32>
      %456 = arith.divf %454, %455 : vector<1x128xf32>
      %457 = vector.extract_strided_slice %450 {offsets = [0, 128], sizes = [1, 128], strides = [1, 1]} : vector<1x512xf32> to vector<1x128xf32>
      %458 = arith.negf %457 : vector<1x128xf32>
      %459 = math.exp %458 : vector<1x128xf32>
      %cst_106 = arith.constant 1.000000e+00 : f32
      %460 = vector.broadcast %cst_106 : f32 to vector<1x128xf32>
      %461 = arith.addf %460, %459 : vector<1x128xf32>
      %462 = arith.divf %460, %461 : vector<1x128xf32>
      %463 = vector.extract_strided_slice %450 {offsets = [0, 256], sizes = [1, 128], strides = [1, 1]} : vector<1x512xf32> to vector<1x128xf32>
      %464 = math.tanh %463 : vector<1x128xf32>
      %465 = vector.extract_strided_slice %450 {offsets = [0, 384], sizes = [1, 128], strides = [1, 1]} : vector<1x512xf32> to vector<1x128xf32>
      %466 = arith.negf %465 : vector<1x128xf32>
      %467 = math.exp %466 : vector<1x128xf32>
      %cst_107 = arith.constant 1.000000e+00 : f32
      %468 = vector.broadcast %cst_107 : f32 to vector<1x128xf32>
      %469 = arith.addf %468, %467 : vector<1x128xf32>
      %470 = arith.divf %468, %469 : vector<1x128xf32>
      %471 = arith.mulf %462, %445 : vector<1x128xf32>
      %472 = arith.mulf %456, %464 : vector<1x128xf32>
      %473 = arith.addf %471, %472 : vector<1x128xf32>
      %474 = math.tanh %473 : vector<1x128xf32>
      %475 = arith.mulf %470, %474 : vector<1x128xf32>
      %476 = vector.extract_strided_slice %332 {offsets = [5, 0], sizes = [1, 512], strides = [1, 1]} : vector<8x512xf32> to vector<1x512xf32>
      %cst_108 = arith.constant dense<0.000000e+00> : vector<1x512xf32>
      %477 = tpu.matmul %475, %333, %cst_108 {dimension_numbers = #tpu.dot_dimension_numbers<[1], [0], [0], [1], [0, 0, 1, 1], [], []>} : vector<1x128xf32>, vector<128x512xf32>, vector<1x512xf32> -> vector<1x512xf32>
      %478 = arith.addf %476, %477 : vector<1x512xf32>
      %479 = vector.extract_strided_slice %478 {offsets = [0, 0], sizes = [1, 128], strides = [1, 1]} : vector<1x512xf32> to vector<1x128xf32>
      %480 = arith.negf %479 : vector<1x128xf32>
      %481 = math.exp %480 : vector<1x128xf32>
      %cst_109 = arith.constant 1.000000e+00 : f32
      %482 = vector.broadcast %cst_109 : f32 to vector<1x128xf32>
      %483 = arith.addf %482, %481 : vector<1x128xf32>
      %484 = arith.divf %482, %483 : vector<1x128xf32>
      %485 = vector.extract_strided_slice %478 {offsets = [0, 128], sizes = [1, 128], strides = [1, 1]} : vector<1x512xf32> to vector<1x128xf32>
      %486 = arith.negf %485 : vector<1x128xf32>
      %487 = math.exp %486 : vector<1x128xf32>
      %cst_110 = arith.constant 1.000000e+00 : f32
      %488 = vector.broadcast %cst_110 : f32 to vector<1x128xf32>
      %489 = arith.addf %488, %487 : vector<1x128xf32>
      %490 = arith.divf %488, %489 : vector<1x128xf32>
      %491 = vector.extract_strided_slice %478 {offsets = [0, 256], sizes = [1, 128], strides = [1, 1]} : vector<1x512xf32> to vector<1x128xf32>
      %492 = math.tanh %491 : vector<1x128xf32>
      %493 = vector.extract_strided_slice %478 {offsets = [0, 384], sizes = [1, 128], strides = [1, 1]} : vector<1x512xf32> to vector<1x128xf32>
      %494 = arith.negf %493 : vector<1x128xf32>
      %495 = math.exp %494 : vector<1x128xf32>
      %cst_111 = arith.constant 1.000000e+00 : f32
      %496 = vector.broadcast %cst_111 : f32 to vector<1x128xf32>
      %497 = arith.addf %496, %495 : vector<1x128xf32>
      %498 = arith.divf %496, %497 : vector<1x128xf32>
      %499 = arith.mulf %490, %473 : vector<1x128xf32>
      %500 = arith.mulf %484, %492 : vector<1x128xf32>
      %501 = arith.addf %499, %500 : vector<1x128xf32>
      %502 = math.tanh %501 : vector<1x128xf32>
      %503 = arith.mulf %498, %502 : vector<1x128xf32>
      %504 = vector.extract_strided_slice %332 {offsets = [6, 0], sizes = [1, 512], strides = [1, 1]} : vector<8x512xf32> to vector<1x512xf32>
      %cst_112 = arith.constant dense<0.000000e+00> : vector<1x512xf32>
      %505 = tpu.matmul %503, %333, %cst_112 {dimension_numbers = #tpu.dot_dimension_numbers<[1], [0], [0], [1], [0, 0, 1, 1], [], []>} : vector<1x128xf32>, vector<128x512xf32>, vector<1x512xf32> -> vector<1x512xf32>
      %506 = arith.addf %504, %505 : vector<1x512xf32>
      %507 = vector.extract_strided_slice %506 {offsets = [0, 0], sizes = [1, 128], strides = [1, 1]} : vector<1x512xf32> to vector<1x128xf32>
      %508 = arith.negf %507 : vector<1x128xf32>
      %509 = math.exp %508 : vector<1x128xf32>
      %cst_113 = arith.constant 1.000000e+00 : f32
      %510 = vector.broadcast %cst_113 : f32 to vector<1x128xf32>
      %511 = arith.addf %510, %509 : vector<1x128xf32>
      %512 = arith.divf %510, %511 : vector<1x128xf32>
      %513 = vector.extract_strided_slice %506 {offsets = [0, 128], sizes = [1, 128], strides = [1, 1]} : vector<1x512xf32> to vector<1x128xf32>
      %514 = arith.negf %513 : vector<1x128xf32>
      %515 = math.exp %514 : vector<1x128xf32>
      %cst_114 = arith.constant 1.000000e+00 : f32
      %516 = vector.broadcast %cst_114 : f32 to vector<1x128xf32>
      %517 = arith.addf %516, %515 : vector<1x128xf32>
      %518 = arith.divf %516, %517 : vector<1x128xf32>
      %519 = vector.extract_strided_slice %506 {offsets = [0, 256], sizes = [1, 128], strides = [1, 1]} : vector<1x512xf32> to vector<1x128xf32>
      %520 = math.tanh %519 : vector<1x128xf32>
      %521 = vector.extract_strided_slice %506 {offsets = [0, 384], sizes = [1, 128], strides = [1, 1]} : vector<1x512xf32> to vector<1x128xf32>
      %522 = arith.negf %521 : vector<1x128xf32>
      %523 = math.exp %522 : vector<1x128xf32>
      %cst_115 = arith.constant 1.000000e+00 : f32
      %524 = vector.broadcast %cst_115 : f32 to vector<1x128xf32>
      %525 = arith.addf %524, %523 : vector<1x128xf32>
      %526 = arith.divf %524, %525 : vector<1x128xf32>
      %527 = arith.mulf %518, %501 : vector<1x128xf32>
      %528 = arith.mulf %512, %520 : vector<1x128xf32>
      %529 = arith.addf %527, %528 : vector<1x128xf32>
      %530 = math.tanh %529 : vector<1x128xf32>
      %531 = arith.mulf %526, %530 : vector<1x128xf32>
      %532 = vector.extract_strided_slice %332 {offsets = [7, 0], sizes = [1, 512], strides = [1, 1]} : vector<8x512xf32> to vector<1x512xf32>
      %cst_116 = arith.constant dense<0.000000e+00> : vector<1x512xf32>
      %533 = tpu.matmul %531, %333, %cst_116 {dimension_numbers = #tpu.dot_dimension_numbers<[1], [0], [0], [1], [0, 0, 1, 1], [], []>} : vector<1x128xf32>, vector<128x512xf32>, vector<1x512xf32> -> vector<1x512xf32>
      %534 = arith.addf %532, %533 : vector<1x512xf32>
      %535 = vector.extract_strided_slice %534 {offsets = [0, 0], sizes = [1, 128], strides = [1, 1]} : vector<1x512xf32> to vector<1x128xf32>
      %536 = arith.negf %535 : vector<1x128xf32>
      %537 = math.exp %536 : vector<1x128xf32>
      %cst_117 = arith.constant 1.000000e+00 : f32
      %538 = vector.broadcast %cst_117 : f32 to vector<1x128xf32>
      %539 = arith.addf %538, %537 : vector<1x128xf32>
      %540 = arith.divf %538, %539 : vector<1x128xf32>
      %541 = vector.extract_strided_slice %534 {offsets = [0, 128], sizes = [1, 128], strides = [1, 1]} : vector<1x512xf32> to vector<1x128xf32>
      %542 = arith.negf %541 : vector<1x128xf32>
      %543 = math.exp %542 : vector<1x128xf32>
      %cst_118 = arith.constant 1.000000e+00 : f32
      %544 = vector.broadcast %cst_118 : f32 to vector<1x128xf32>
      %545 = arith.addf %544, %543 : vector<1x128xf32>
      %546 = arith.divf %544, %545 : vector<1x128xf32>
      %547 = vector.extract_strided_slice %534 {offsets = [0, 256], sizes = [1, 128], strides = [1, 1]} : vector<1x512xf32> to vector<1x128xf32>
      %548 = math.tanh %547 : vector<1x128xf32>
      %549 = vector.extract_strided_slice %534 {offsets = [0, 384], sizes = [1, 128], strides = [1, 1]} : vector<1x512xf32> to vector<1x128xf32>
      %550 = arith.negf %549 : vector<1x128xf32>
      %551 = math.exp %550 : vector<1x128xf32>
      %cst_119 = arith.constant 1.000000e+00 : f32
      %552 = vector.broadcast %cst_119 : f32 to vector<1x128xf32>
      %553 = arith.addf %552, %551 : vector<1x128xf32>
      %554 = arith.divf %552, %553 : vector<1x128xf32>
      %555 = arith.mulf %546, %529 : vector<1x128xf32>
      %556 = arith.mulf %540, %548 : vector<1x128xf32>
      %557 = arith.addf %555, %556 : vector<1x128xf32>
      %558 = math.tanh %557 : vector<1x128xf32>
      %559 = arith.mulf %554, %558 : vector<1x128xf32>
      %560 = tpu.concatenate %363, %391, %419, %447, %475, %503, %531, %559 in 0 : vector<1x128xf32>, vector<1x128xf32>, vector<1x128xf32>, vector<1x128xf32>, vector<1x128xf32>, vector<1x128xf32>, vector<1x128xf32>, vector<1x128xf32> -> vector<8x128xf32>
      %c0_120 = arith.constant 0 : index
      %c0_121 = arith.constant 0 : index
      %561 = vector.load %arg14[%c0_120, %c0_121] : memref<8x128xf32, #tpu.memory_space<vmem>>, vector<8x128xf32>
      tpu.vector_store %arg14[%c0_120, %c0_121], %560 {strides = array<i32>} : memref<8x128xf32, #tpu.memory_space<vmem>>, vector<8x128xf32>,
    } else {
    }
    %c0 = arith.constant 0 : index
    %c0_1 = arith.constant 0 : index
    %3 = vector.load %arg14[%c0, %c0_1] : memref<8x128xf32, #tpu.memory_space<vmem>>, vector<8x128xf32>
    %c0_2 = arith.constant 0 : index
    %c0_3 = arith.constant 0 : index
    %4 = vector.load %arg11[%c0_2, %c0_3] : memref<128x256xf32, #tpu.memory_space<vmem>>, vector<128x256xf32>
    %cst = arith.constant dense<0.000000e+00> : vector<8x256xf32>
    %5 = tpu.matmul %3, %4, %cst {dimension_numbers = #tpu.dot_dimension_numbers<[1], [0], [0], [1], [0, 0, 1, 1], [], []>} : vector<8x128xf32>, vector<128x256xf32>, vector<8x256xf32> -> vector<8x256xf32>
    %c0_4 = arith.constant 0 : index
    %c0_5 = arith.constant 0 : index
    %6 = vector.load %arg12[%c0_4, %c0_5] : memref<1x256xf32, #tpu.memory_space<vmem>>, vector<1x256xf32>
    %7 = vector.broadcast %6 : vector<1x256xf32> to vector<8x256xf32>
    %8 = arith.addf %5, %7 : vector<8x256xf32>
    %c0_6 = arith.constant 0 : index
    %c0_7 = arith.constant 0 : index
    %9 = vector.load %arg13[%c0_6, %c0_7] : memref<8x256xf32, #tpu.memory_space<vmem>>, vector<8x256xf32>
    tpu.vector_store %arg13[%c0_6, %c0_7], %8 {strides = array<i32>} : memref<8x256xf32, #tpu.memory_space<vmem>>, vector<8x256xf32>,
    return
  }
  func.func @transform_0(%arg0: i32, %arg1: memref<24xi32, #tpu.memory_space<smem>>) -> (i32, i32) {
    %c0_i32 = arith.constant 0 : i32
    %c0_i32_0 = arith.constant 0 : i32
    %c0_i32_1 = arith.constant 0 : i32
    return %c0_i32, %c0_i32_0 : i32, i32
  }
  func.func @transform_1(%arg0: i32, %arg1: memref<24xi32, #tpu.memory_space<smem>>) -> (i32, i32) {
    %c0_i32 = arith.constant 0 : i32
    %c0_i32_0 = arith.constant 0 : i32
    %c0_i32_1 = arith.constant 0 : i32
    return %c0_i32, %c0_i32_0 : i32, i32
  }
  func.func @transform_2(%arg0: i32, %arg1: memref<24xi32, #tpu.memory_space<smem>>) -> (i32, i32) {
    %c0_i32 = arith.constant 0 : i32
    %c0_i32_0 = arith.constant 0 : i32
    %c0_i32_1 = arith.constant 0 : i32
    return %c0_i32, %c0_i32_0 : i32, i32
  }
  func.func @transform_3(%arg0: i32, %arg1: memref<24xi32, #tpu.memory_space<smem>>) -> (i32, i32) {
    %c0_i32 = arith.constant 0 : i32
    %c0_i32_0 = arith.constant 0 : i32
    %c0_i32_1 = arith.constant 0 : i32
    return %c0_i32, %c0_i32_0 : i32, i32
  }
  func.func @transform_4(%arg0: i32, %arg1: memref<24xi32, #tpu.memory_space<smem>>) -> (i32, i32) {
    %c0_i32 = arith.constant 0 : i32
    %c0_i32_0 = arith.constant 0 : i32
    %c0_i32_1 = arith.constant 0 : i32
    return %c0_i32, %c0_i32_0 : i32, i32
  }
  func.func @transform_5(%arg0: i32, %arg1: memref<24xi32, #tpu.memory_space<smem>>) -> (i32, i32) {
    %c0_i32 = arith.constant 0 : i32
    %c0_i32_0 = arith.constant 0 : i32
    %c0_i32_1 = arith.constant 0 : i32
    return %c0_i32, %c0_i32_0 : i32, i32
  }
  func.func @transform_6(%arg0: i32, %arg1: memref<24xi32, #tpu.memory_space<smem>>) -> (i32, i32) {
    %c0_i32 = arith.constant 0 : i32
    %c0_i32_0 = arith.constant 0 : i32
    %c0_i32_1 = arith.constant 0 : i32
    return %c0_i32, %c0_i32_0 : i32, i32
  }
  func.func @transform_7(%arg0: i32, %arg1: memref<24xi32, #tpu.memory_space<smem>>) -> (i32, i32) {
    %c0_i32 = arith.constant 0 : i32
    %c0_i32_0 = arith.constant 0 : i32
    %c0_i32_1 = arith.constant 0 : i32
    return %c0_i32, %c0_i32_0 : i32, i32
  }
  func.func @transform_8(%arg0: i32, %arg1: memref<24xi32, #tpu.memory_space<smem>>) -> (i32, i32) {
    %c0_i32 = arith.constant 0 : i32
    %c0_i32_0 = arith.constant 0 : i32
    %c0_i32_1 = arith.constant 0 : i32
    return %c0_i32, %c0_i32_0 : i32, i32
  }
  func.func @transform_9(%arg0: i32, %arg1: memref<24xi32, #tpu.memory_space<smem>>) -> (i32, i32) {
    %c0_i32 = arith.constant 0 : i32
    %c0_i32_0 = arith.constant 0 : i32
    return %c0_i32, %arg0 : i32, i32
  }
  func.func @transform_10(%arg0: i32, %arg1: memref<24xi32, #tpu.memory_space<smem>>) -> (i32, i32) {
    %c0_i32 = arith.constant 0 : i32
    %c0_i32_0 = arith.constant 0 : i32
    return %c0_i32, %arg0 : i32, i32
  }
  func.func @transform_11(%arg0: i32, %arg1: memref<24xi32, #tpu.memory_space<smem>>) -> (i32, i32) {
    %c0_i32 = arith.constant 0 : i32
    %c0_i32_0 = arith.constant 0 : i32
    return %c0_i32, %arg0 : i32, i32
  }
}

</mosaic_0001>

<bundles_post_ra>
// kernel: encoder_decoder_forward.2
= control target key start
LH: loop header
LB: loop body
LE: loop exit
PB: predicated region body
PF: predicated region fallthrough
CT: control target
= control target key end

     0   :  { %vm46_vm0 = vcmask 1043456   ;;  %v261_v40 = vmov 0.0   ;;  %vm262_vm1 = vmmov 0   ;;  %v111_v42 = vlaneseq  ;;  %s333_s0 = inlined_call_operand.vmem [shape: f32[8,4,256], index: 0, kind: input, shape index: {}]   ;;  %s334_s1 = inlined_call_operand.vmem [shape: f32[4,128], index: 1, kind: input, shape index: {}]   ;;  %s335_s2 = inlined_call_operand.vmem [shape: f32[1,128], index: 2, kind: input, shape index: {}]   ;;  %s336_s3 = inlined_call_operand.vmem [shape: f32[8,128], index: 3, kind: output, shape index: {}]  }
   0x1   :  { %v14_v0 = vld [vmem:[%s333_s0] sm:$0xff]  ;;  %v16_v1 = vld [vmem:[%s333_s0 + $0x10] sm:$0xff]  ;;  %v15_v2 = vld [vmem:[%s333_s0 + $0x8] sm:$0xff]  ;;  %246 = vmatprep.subr.mxu0 %v261_v40  ;;  %248 = vmatprep.mubr.msk.f32.mxu0 %vm262_vm1, %v261_v40  ;;  %vm145_vm2 = vcmask 1041409   ;;  %vm147_vm3 = vcmask 1042434   ;;  %vm149_vm4 = vcmask 1043459  }
   0x2   :  { %v30_v3 = vcombine.high %v14_v0, %v14_v0  ;;  %v47_v4 = vsel %vm46_vm0, %v14_v0, 0.0  ;;  %v32_v5 = vcombine.high %v16_v1, %v16_v1  ;;  %v57_v6 = vsel %vm46_vm0, %v16_v1, 0.0  ;;  %v17_v7 = vld [vmem:[%s333_s0 + $0x18] sm:$0xff]  ;;  %v18_v8 = vld [vmem:[%s333_s0 + $0x20] sm:$0xff]  ;;  %v19_v12 = vld [vmem:[%s333_s0 + $0x28] sm:$0xff] }
   0x3   :  { %v31_v9 = vcombine.high %v15_v2, %v15_v2  ;;  %v52_v10 = vsel %vm46_vm0, %v15_v2, 0.0  ;;  %v33_v11 = vcombine.high %v17_v7, %v17_v7  ;;  %v62_v15 = vsel %vm46_vm0, %v17_v7, 0.0  ;;  %v20_v21 = vld [vmem:[%s333_s0 + $0x30] sm:$0xff]  ;;  %v21_v22 = vld [vmem:[%s333_s0 + $0x38] sm:$0xff]  ;;  %v95_v41 = vld [vmem:[%s334_s1] sm:$0xf] }
   0x4   :  { %v48_v13 = vsel %vm46_vm0, %v30_v3, 0.0  ;;  %v58_v14 = vsel %vm46_vm0, %v32_v5, 0.0  ;;  %v34_v16 = vcombine.high %v18_v8, %v18_v8  ;;  %v35_v23 = vcombine.high %v19_v12, %v19_v12  ;;  %247 = vmatpush3.msk.msra.mxu0 %vm46_vm0, %v95_v41 }
   0x5   :  { %v49_v17 = vadd.f32 %v48_v13, %v47_v4  ;;  %v59_v18 = vadd.f32 %v58_v14, %v57_v6  ;;  %v53_v19 = vsel %vm46_vm0, %v31_v9, 0.0  ;;  %v63_v20 = vsel %vm46_vm0, %v33_v11, 0.0  ;;  %v241_v13 = vld [vmem:[%s335_s2] ss:$0 sm:$0xff] }
   0x6   :  { %v54_v24 = vadd.f32 %v53_v19, %v52_v10  ;;  %v64_v25 = vadd.f32 %v63_v20, %v62_v15  ;;  %v67_v26 = vsel %vm46_vm0, %v18_v8, 0.0  ;;  %v68_v27 = vsel %vm46_vm0, %v34_v16, 0.0 }
   0x7   :  { %50 = vadd.xlane.f32.xlu0 %v49_v17  ;;  %60 = vadd.xlane.f32.xlu1 %v59_v18  ;;  %v72_v28 = vsel %vm46_vm0, %v19_v12, 0.0  ;;  %v73_v29 = vsel %vm46_vm0, %v35_v23, 0.0  ;;  %v36_v30 = vcombine.high %v20_v21, %v20_v21  ;;  %v37_v31 = vcombine.high %v21_v22, %v21_v22 }
   0x8   :  { %v69_v32 = vadd.f32 %v68_v27, %v67_v26  ;;  %v74_v33 = vadd.f32 %v73_v29, %v72_v28  ;;  %v77_v34 = vsel %vm46_vm0, %v20_v21, 0.0  ;;  %v82_v36 = vsel %vm46_vm0, %v21_v22, 0.0 }
   0x9   :  { %v78_v35 = vsel %vm46_vm0, %v36_v30, 0.0  ;;  %v83_v37 = vsel %vm46_vm0, %v37_v31, 0.0  ;;  %v112_v43 = vand.u32 127, %v111_v42  ;;  %v114_v44 = vshrl.u32 %v111_v42, 7 }
   0xa   :  { %v79_v38 = vadd.f32 %v78_v35, %v77_v34  ;;  %v84_v39 = vadd.f32 %v83_v37, %v82_v36  ;;  %vm151_vm5 = vcmask 1044484   ;;  %vm153_vm6 = vcmask 1045509  }
   0xb   :  { %55 = vadd.xlane.f32.xlu0 %v54_v24  ;;  %65 = vadd.xlane.f32.xlu1 %v64_v25  ;;  %v115_v47 = vsub.s32 %v112_v43, %v114_v44  ;;  %vm155_vm7 = vcmask 1046534   ;;  %vm157_vm8 = vcmask 1047559   ;;  %vm159_vm9 = vcmask 31744  }
   0xf   :  { %70 = vadd.xlane.f32.xlu0 %v69_v32  ;;  %75 = vadd.xlane.f32.xlu1 %v74_v33 }
  0x13   :  { %80 = vadd.xlane.f32.xlu0 %v79_v38  ;;  %85 = vadd.xlane.f32.xlu1 %v84_v39 }
  0x94   :  { %v51_v45 = vpop.xlane.xlu0 %50  ;;  %v61_v46 = vpop.xlane.xlu1 %60 }
  0x95   :  { %v87_v48 = vmul.f32 0.00390625, %v51_v45  ;;  %v89_v49 = vmul.f32 0.00390625, %v61_v46 }
  0x97   :  { %v116_v54 = vrot.slane %v87_v48, %v115_v47  ;;  %v124_v57 = vrot.slane %v89_v49, %v115_v47 }
  0x98   :  { %v56_v50 = vpop.xlane.xlu0 %55  ;;  %v66_v51 = vpop.xlane.xlu1 %65 }
  0x99   :  { %v88_v52 = vmul.f32 0.00390625, %v56_v50  ;;  %v90_v53 = vmul.f32 0.00390625, %v66_v51 }
  0x9b   :  { %v120_v55 = vrot.slane %v88_v52, %v115_v47  ;;  %v128_v56 = vrot.slane %v90_v53, %v115_v47 }
  0x9c   :  { %v71_v58 = vpop.xlane.xlu0 %70  ;;  %v76_v59 = vpop.xlane.xlu1 %75 }
  0x9d   :  { %v146_v60 = vsel %vm145_vm2, %v120_v55, %v116_v54  ;;  %v91_v61 = vmul.f32 0.00390625, %v71_v58  ;;  %v92_v62 = vmul.f32 0.00390625, %v76_v59 }
  0x9e   :  { %v148_v63 = vsel %vm147_vm3, %v124_v57, %v146_v60 }
  0x9f   :  { %v150_v0 = vsel %vm149_vm4, %v128_v56, %v148_v63  ;;  %v132_v1 = vrot.slane %v91_v61, %v115_v47  ;;  %v136_v2 = vrot.slane %v92_v62, %v115_v47 }
  0xa0   :  { %v81_v3 = vpop.xlane.xlu0 %80  ;;  %v86_v4 = vpop.xlane.xlu1 %85 }
  0xa1   :  { %v152_v5 = vsel %vm151_vm5, %v132_v1, %v150_v0  ;;  %v93_v6 = vmul.f32 0.00390625, %v81_v3  ;;  %v94_v7 = vmul.f32 0.00390625, %v86_v4 }
  0xa2   :  { %v154_v10 = vsel %vm153_vm6, %v136_v2, %v152_v5 }
  0xa3   :  { %v140_v8 = vrot.slane %v93_v6, %v115_v47  ;;  %v144_v9 = vrot.slane %v94_v7, %v115_v47 }
  0xa5   :  { %v156_v11 = vsel %vm155_vm7, %v140_v8, %v154_v10 }
  0xa6   :  { %v158_v12 = vsel %vm157_vm8, %v144_v9, %v156_v11 }
  0xa7   :  { %249 = vmatmul.mubr.msk.f32.vlgmr.msra.gmra.mrb[0].mxu0 %vm159_vm9, %v158_v12 }
 0x17a   :  { %v231_v14 = vpop.f32.mrb[0].mxu0 }
 0x17b   :  { %v232_v15 = vadd.f32 %v241_v13, %v231_v14  ;;  %v250_v16 = vpop.f32.mrb[1].mxu0 }
 0x17d   :  { %v235_v17 = vmax.f32 %v232_v15, 0.0 }
 0x17f   :  { %236 = vst [vmem:[%s336_s3] sm:$0xff] %v235_v17 }

// kernel: encoder_decoder_forward.3
= control target key start
LH: loop header
LB: loop body
LE: loop exit
PB: predicated region body
PF: predicated region fallthrough
CT: control target
= control target key end

     0   :  { %s8823_s0 = inlined_call_operand.vmem [shape: s32[24], index: 0, kind: input, shape index: {}]   ;;  %s8824_s1 = inlined_call_operand.vmem [shape: f32[8,128], index: 1, kind: input, shape index: {}]   ;;  %s8825_s2 = inlined_call_operand.vmem [shape: f32[256,128], index: 2, kind: input, shape index: {}]   ;;  %s8826_s3 = inlined_call_operand.vmem [shape: f32[128,512], index: 3, kind: input, shape index: {}]   ;;  %s8827_s4 = inlined_call_operand.vmem [shape: f32[384,512], index: 4, kind: input, shape index: {}]   ;;  %s8828_s5 = inlined_call_operand.vmem [shape: f32[128,512], index: 5, kind: input, shape index: {}]   ;;  %s8829_s6 = inlined_call_operand.vmem [shape: f32[1,512], index: 6, kind: input, shape index: {}]   ;;  %s8830_s7 = inlined_call_operand.vmem [shape: f32[128,512], index: 7, kind: input, shape index: {}]   ;;  %s8831_s8 = inlined_call_operand.vmem [shape: f32[128,512], index: 8, kind: input, shape index: {}]   ;;  %s8832_s9 = inlined_call_operand.vmem [shape: f32[1,512], index: 9, kind: input, shape index: {}]   ;;  %s8833_s10 = inlined_call_operand.vmem [shape: f32[128,256], index: 10, kind: input, shape index: {}]   ;;  %s8834_s11 = inlined_call_operand.vmem [shape: f32[1,256], index: 11, kind: input, shape index: {}]   ;;  %s8835_s12 = inlined_call_operand.hbm [shape: f32[8,256], index: 12, kind: output, shape index: {}]  }
   0x1   :  { %8841 = sst [smem:[#allocation9_spill]] %s8824_s1  ;;  %s17_s23 = sshll.u32 %s8823_s0, 4  ;;  %s18_s23 = int_to_ptr.vmem [resolvable:$true] %s17_s23 }
   0x2   :  { %8842 = sst [smem:[#allocation10_spill]] %s8828_s5  ;;  %s6129_s24 = scalar_lea.vmem %s18_s23, 16 }
   0x3   :  { %8843 = sst [smem:[#allocation11_spill]] %s8829_s6  ;;  %p6130_p0 = scmp.ne.s32.totalorder %s18_s23, %s6129_s24 }
   0x4   :  { %8844 = sst [smem:[#allocation12_spill]] %s8830_s7  ;;  %p6134_p1 = scmp.lt.s32.totalorder %s18_s23, %s18_s23 }
   0x5   :  { %8845 = sst [smem:[#allocation13_spill]] %s8831_s8  ;;  %p6135_p2 = scmp.lt.s32.totalorder %s6129_s24, %s6129_s24 }
   0x6   :  { %8846 = sst [smem:[#allocation14_spill]] %s8832_s9 }
   0x7   :  { %8847 = sst [smem:[#allocation15_spill]] %s8833_s10  ;;  %p6136_p3 = por %p6135_p2, %p6134_p1 }
   0x8   :  { %8848 = sst [smem:[#allocation16_spill]] %s8834_s11 }
   0x9   :  { %8849 = sst [smem:[#allocation17_spill]] %s8835_s12  ;;  %p6137_p4 = pnand %p6136_p3, %p6130_p0 }
   0xb   :  { %6140 = shalt.err (!%p6137_p4)  }
   0xc   :  { %s6167_s25 = smov [#allocation4]  }
   0xd   :  { %20 = dma.vmem_to_smem %s18_s23, 16, %s6167_s25, [#allocation3] }
   0xe   :  { %6163 = dma.done.wait [#allocation3], 16 }
   0xf   :  { %6164 = vsyncadd [#allocation3], 4294967280 }
  0x10   :  { %22 = sfence }
  0x11   :  { %v279_v0 = vld [vmem:[%s8827_s4 + $0x8] sm:$0xff]  ;;  %v281_v2 = vld [vmem:[%s8827_s4 + $0x18] sm:$0xff]  ;;  %v278_v5 = vld [vmem:[%s8827_s4] sm:$0xff]  ;;  %s6436_s25 = sld [smem:[#allocation4 + $0x1]]  ;;  %s6453_s17 = sld [smem:[#allocation4 + $0x4]]  ;;  %vm185_vm0 = vcmask 1040384  }
  0x12   :  { %v283_v1 = vld [vmem:[%s8827_s4 + $0x28] sm:$0xff]  ;;  %v285_v4 = vld [vmem:[%s8827_s4 + $0x38] sm:$0xff]  ;;  %v282_v6 = vld [vmem:[%s8827_s4 + $0x20] sm:$0xff]  ;;  %s6464_s24 = sld [smem:[#allocation4 + $0x7]]  ;;  %s6472_s0 = sld [smem:[#allocation4 + $0xa]]  ;;  %vm189_vm1 = vcmask 1041408  }
  0x13   :  { %v4486_v3 = vpack.c.bf16 %v283_v1, %v279_v0  ;;  %v4582_v7 = vpack.c.bf16 %v285_v4, %v281_v2  ;;  %v4488_v8 = vpack.c.bf16 %v282_v6, %v278_v5  ;;  %v280_v9 = vld [vmem:[%s8827_s4 + $0x10] sm:$0xff]  ;;  %v287_v11 = vld [vmem:[%s8827_s4 + $0x48] sm:$0xff]  ;;  %v289_v14 = vld [vmem:[%s8827_s4 + $0x58] sm:$0xff]  ;;  %s6474_s30 = sld [smem:[#allocation4 + $0xd]]  ;;  %s6476_s13 = sld [smem:[#allocation4 + $0x10]]  ;;  %vm193_vm2 = vcmask 1042432  }
  0x14   :  { %v284_v10 = vld [vmem:[%s8827_s4 + $0x30] sm:$0xff]  ;;  %v291_v13 = vld [vmem:[%s8827_s4 + $0x68] sm:$0xff]  ;;  %v293_v15 = vld [vmem:[%s8827_s4 + $0x78] sm:$0xff]  ;;  %s6487_s21 = sld [smem:[#allocation4 + $0x13]]  ;;  %s6508_s23 = sld [smem:[#allocation4 + $0x16]]  ;;  %vm197_vm3 = vcmask 1043456  }
  0x15   :  { %4487 = vmatprep.subr.bf16.mxu0 %v4486_v3  ;;  %v4584_v12 = vpack.c.bf16 %v284_v10, %v280_v9  ;;  %4583 = vmatprep.subr.bf16.mxu1 %v4582_v7  ;;  %v4490_v16 = vpack.c.bf16 %v291_v13, %v287_v11  ;;  %v4586_v17 = vpack.c.bf16 %v293_v15, %v289_v14  ;;  %v286_v18 = vld [vmem:[%s8827_s4 + $0x40] sm:$0xff]  ;;  %v288_v20 = vld [vmem:[%s8827_s4 + $0x50] sm:$0xff]  ;;  %v295_v23 = vld [vmem:[%s8827_s4 + $0x88] sm:$0xff]  ;;  %s6510_s26 = sld [smem:[#allocation4 + $0x3]]  ;;  %s6512_s27 = sld [smem:[#allocation4 + $0x6]]  ;;  %vm201_vm4 = vcmask 1044480  }
  0x16   :  { %4489 = vmatpush1.bf16.msra.mxu0 %v4488_v8  ;;  %v290_v19 = vld [vmem:[%s8827_s4 + $0x60] sm:$0xff]  ;;  %v292_v22 = vld [vmem:[%s8827_s4 + $0x70] sm:$0xff]  ;;  %v299_v24 = vld [vmem:[%s8827_s4 + $0xa8] sm:$0xff]  ;;  %s6514_s28 = sld [smem:[#allocation4 + $0x9]]  ;;  %s6529_s11 = sld [smem:[#allocation4 + $0xc]]  ;;  %vm205_vm5 = vcmask 1045504  }
  0x17   :  { %4585 = vmatpush1.bf16.msra.mxu1 %v4584_v12  ;;  %v4492_v21 = vpack.c.bf16 %v290_v19, %v286_v18  ;;  %4491 = vmatprep.subr.bf16.mxu0 %v4490_v16  ;;  %v4588_v25 = vpack.c.bf16 %v292_v22, %v288_v20  ;;  %v4494_v26 = vpack.c.bf16 %v299_v24, %v295_v23  ;;  %v297_v27 = vld [vmem:[%s8827_s4 + $0x98] sm:$0xff]  ;;  %v294_v29 = vld [vmem:[%s8827_s4 + $0x80] sm:$0xff]  ;;  %v296_v32 = vld [vmem:[%s8827_s4 + $0x90] sm:$0xff]  ;;  %s6544_s22 = sld [smem:[#allocation4]]  ;;  %s6575_s19 = sld [smem:[#allocation4 + $0xf]]  ;;  %vm209_vm6 = vcmask 1046528  }
  0x18   :  { %4587 = vmatprep.subr.bf16.mxu1 %v4586_v17  ;;  %v301_v28 = vld [vmem:[%s8827_s4 + $0xb8] sm:$0xff]  ;;  %v298_v31 = vld [vmem:[%s8827_s4 + $0xa0] sm:$0xff]  ;;  %v300_v33 = vld [vmem:[%s8827_s4 + $0xb0] sm:$0xff]  ;;  %s6590_s15 = sld [smem:[#allocation4 + $0x12]]  ;;  %s8850_s7 = scalar_lea.vmem %s8825_s2, %s6436_s25 }
  0x19   :  { %v4590_v30 = vpack.c.bf16 %v301_v28, %v297_v27  ;;  %v4496_v34 = vpack.c.bf16 %v298_v31, %v294_v29  ;;  %v303_v35 = vld [vmem:[%s8827_s4 + $0xc8] sm:$0xff]  ;;  %v305_v37 = vld [vmem:[%s8827_s4 + $0xd8] sm:$0xff]  ;;  %v4592_v38 = vpack.c.bf16 %v300_v33, %v296_v32  ;;  %v302_v41 = vld [vmem:[%s8827_s4 + $0xc0] sm:$0xff]  ;;  %s8851_s9 = scalar_lea.vmem %s8825_s2, %s6453_s17  ;;  %s8852_s16 = scalar_lea.vmem %s8825_s2, %s6464_s24 }
  0x1a   :  { %4493 = vmatpush1.bf16.msra.mxu0 %v4492_v21  ;;  %v307_v36 = vld [vmem:[%s8827_s4 + $0xe8] sm:$0xff]  ;;  %v309_v40 = vld [vmem:[%s8827_s4 + $0xf8] sm:$0xff]  ;;  %v306_v42 = vld [vmem:[%s8827_s4 + $0xe0] sm:$0xff]  ;;  %s108_s18 = scalar_lea.vmem %s8825_s2, %s6487_s21  ;;  %s6603_s21 = sld [smem:[#allocation4 + $0x15]] }
  0x1b   :  { %4589 = vmatpush1.bf16.msra.mxu1 %v4588_v25  ;;  %4495 = vmatprep.subr.bf16.mxu0 %v4494_v26  ;;  %v4498_v39 = vpack.c.bf16 %v307_v36, %v303_v35  ;;  %v4594_v43 = vpack.c.bf16 %v309_v40, %v305_v37  ;;  %v304_v44 = vld [vmem:[%s8827_s4 + $0xd0] sm:$0xff]  ;;  %v311_v46 = vld [vmem:[%s8827_s4 + $0x108] sm:$0xff]  ;;  %v313_v48 = vld [vmem:[%s8827_s4 + $0x118] sm:$0xff]  ;;  %v4500_v50 = vpack.c.bf16 %v306_v42, %v302_v41  ;;  %s8853_s8 = scalar_lea.vmem %s8825_s2, %s6472_s0  ;;  %s117_s20 = scalar_lea.vmem %s8825_s2, %s6508_s23 }
  0x1c   :  { %4591 = vmatprep.subr.bf16.mxu1 %v4590_v30  ;;  %v308_v45 = vld [vmem:[%s8827_s4 + $0xf0] sm:$0xff]  ;;  %v315_v47 = vld [vmem:[%s8827_s4 + $0x128] sm:$0xff]  ;;  %v317_v49 = vld [vmem:[%s8827_s4 + $0x138] sm:$0xff]  ;;  %s8854_s6 = scalar_lea.vmem %s8825_s2, %s6474_s30  ;;  %s8855_s1 = scalar_lea.vmem %s8825_s2, %s6476_s13 }
  0x1d   :  { %v4596_v51 = vpack.c.bf16 %v308_v45, %v304_v44  ;;  %v4502_v52 = vpack.c.bf16 %v315_v47, %v311_v46  ;;  %v310_v53 = vld [vmem:[%s8827_s4 + $0x100] sm:$0xff]  ;;  %v312_v55 = vld [vmem:[%s8827_s4 + $0x110] sm:$0xff]  ;;  %v4598_v56 = vpack.c.bf16 %v317_v49, %v313_v48  ;;  %v319_v58 = vld [vmem:[%s8827_s4 + $0x148] sm:$0xff]  ;;  %s60_s23 = scalar_lea.vmem %s8825_s2, %s6510_s26  ;;  %s78_s12 = scalar_lea.vmem %s8825_s2, %s6514_s28 }
  0x1e   :  { %4497 = vmatpush1.bf16.msra.mxu0 %v4496_v34  ;;  %v314_v54 = vld [vmem:[%s8827_s4 + $0x120] sm:$0xff]  ;;  %v316_v57 = vld [vmem:[%s8827_s4 + $0x130] sm:$0xff]  ;;  %v323_v59 = vld [vmem:[%s8827_s4 + $0x168] sm:$0xff]  ;;  %s51_s29 = scalar_lea.vmem %s8825_s2, %s6544_s22  ;;  %s96_s13 = scalar_lea.vmem %s8825_s2, %s6575_s19 }
  0x1f   :  { %4593 = vmatpush1.bf16.msra.mxu1 %v4592_v38  ;;  %4499 = vmatprep.subr.bf16.mxu0 %v4498_v39  ;;  %v321_v60 = vld [vmem:[%s8827_s4 + $0x158] sm:$0xff]  ;;  %v4504_v62 = vpack.c.bf16 %v314_v54, %v310_v53  ;;  %v4600_v63 = vpack.c.bf16 %v316_v57, %v312_v55  ;;  %v4506_v0 = vpack.c.bf16 %v323_v59, %v319_v58  ;;  %v318_v1 = vld [vmem:[%s8827_s4 + $0x140] sm:$0xff]  ;;  %v320_v3 = vld [vmem:[%s8827_s4 + $0x150] sm:$0xff]  ;;  %s6793_s30 = sld [smem:[#allocation4 + $0x5]]  ;;  %s6823_s24 = sld [smem:[#allocation4 + $0x2]] }
  0x20   :  { %4595 = vmatprep.subr.bf16.mxu1 %v4594_v43  ;;  %v325_v61 = vld [vmem:[%s8827_s4 + $0x178] sm:$0xff]  ;;  %v322_v2 = vld [vmem:[%s8827_s4 + $0x160] sm:$0xff]  ;;  %v324_v5 = vld [vmem:[%s8827_s4 + $0x170] sm:$0xff] }
  0x21   :  { %v4602_v4 = vpack.c.bf16 %v325_v61, %v321_v60  ;;  %v327_v6 = vld [vmem:[%s8827_s4 + $0x188] sm:$0xff]  ;;  %v329_v8 = vld [vmem:[%s8827_s4 + $0x198] sm:$0xff]  ;;  %v4508_v10 = vpack.c.bf16 %v322_v2, %v318_v1  ;;  %v4604_v11 = vpack.c.bf16 %v324_v5, %v320_v3  ;;  %v326_v13 = vld [vmem:[%s8827_s4 + $0x180] sm:$0xff] }
  0x22   :  { %4501 = vmatpush1.bf16.msra.mxu0 %v4500_v50  ;;  %v331_v7 = vld [vmem:[%s8827_s4 + $0x1a8] sm:$0xff]  ;;  %v333_v9 = vld [vmem:[%s8827_s4 + $0x1b8] sm:$0xff]  ;;  %v330_v14 = vld [vmem:[%s8827_s4 + $0x1a0] sm:$0xff] }
  0x23   :  { %4597 = vmatpush1.bf16.msra.mxu1 %v4596_v51  ;;  %4503 = vmatprep.subr.bf16.mxu0 %v4502_v52  ;;  %v4510_v12 = vpack.c.bf16 %v331_v7, %v327_v6  ;;  %v328_v15 = vld [vmem:[%s8827_s4 + $0x190] sm:$0xff]  ;;  %v4606_v16 = vpack.c.bf16 %v333_v9, %v329_v8  ;;  %v335_v18 = vld [vmem:[%s8827_s4 + $0x1c8] sm:$0xff]  ;;  %v337_v20 = vld [vmem:[%s8827_s4 + $0x1d8] sm:$0xff]  ;;  %v4512_v22 = vpack.c.bf16 %v330_v14, %v326_v13 }
  0x24   :  { %4599 = vmatprep.subr.bf16.mxu1 %v4598_v56  ;;  %v332_v17 = vld [vmem:[%s8827_s4 + $0x1b0] sm:$0xff]  ;;  %v339_v19 = vld [vmem:[%s8827_s4 + $0x1e8] sm:$0xff]  ;;  %v341_v21 = vld [vmem:[%s8827_s4 + $0x1f8] sm:$0xff] }
  0x25   :  { %v4608_v23 = vpack.c.bf16 %v332_v17, %v328_v15  ;;  %v4514_v24 = vpack.c.bf16 %v339_v19, %v335_v18  ;;  %v334_v25 = vld [vmem:[%s8827_s4 + $0x1c0] sm:$0xff]  ;;  %v336_v27 = vld [vmem:[%s8827_s4 + $0x1d0] sm:$0xff]  ;;  %v4610_v28 = vpack.c.bf16 %v341_v21, %v337_v20  ;;  %v343_v30 = vld [vmem:[%s8827_s4 + $0x208] sm:$0xff]  ;;  %s66_s26 = scalar_lea.vmem %s8825_s2, %s6793_s30  ;;  %s6945_s30 = sld [smem:[#allocation4 + $0x17]] }
  0x26   :  { %4505 = vmatpush1.bf16.msra.mxu0 %v4504_v62  ;;  %v338_v26 = vld [vmem:[%s8827_s4 + $0x1e0] sm:$0xff]  ;;  %v340_v29 = vld [vmem:[%s8827_s4 + $0x1f0] sm:$0xff]  ;;  %v347_v31 = vld [vmem:[%s8827_s4 + $0x228] sm:$0xff] }
  0x27   :  { %4601 = vmatpush1.bf16.msra.mxu1 %v4600_v63  ;;  %4507 = vmatprep.subr.bf16.mxu0 %v4506_v0  ;;  %v345_v32 = vld [vmem:[%s8827_s4 + $0x218] sm:$0xff]  ;;  %v4516_v34 = vpack.c.bf16 %v338_v26, %v334_v25  ;;  %v4612_v35 = vpack.c.bf16 %v340_v29, %v336_v27  ;;  %v4518_v36 = vpack.c.bf16 %v347_v31, %v343_v30  ;;  %v342_v37 = vld [vmem:[%s8827_s4 + $0x200] sm:$0xff]  ;;  %v344_v39 = vld [vmem:[%s8827_s4 + $0x210] sm:$0xff] }
  0x28   :  { %4603 = vmatprep.subr.bf16.mxu1 %v4602_v4  ;;  %v349_v33 = vld [vmem:[%s8827_s4 + $0x238] sm:$0xff]  ;;  %v346_v38 = vld [vmem:[%s8827_s4 + $0x220] sm:$0xff]  ;;  %v348_v41 = vld [vmem:[%s8827_s4 + $0x230] sm:$0xff] }
  0x29   :  { %v4614_v40 = vpack.c.bf16 %v349_v33, %v345_v32  ;;  %v351_v42 = vld [vmem:[%s8827_s4 + $0x248] sm:$0xff]  ;;  %v353_v44 = vld [vmem:[%s8827_s4 + $0x258] sm:$0xff]  ;;  %v4520_v46 = vpack.c.bf16 %v346_v38, %v342_v37  ;;  %v4616_v47 = vpack.c.bf16 %v348_v41, %v344_v39  ;;  %v350_v49 = vld [vmem:[%s8827_s4 + $0x240] sm:$0xff] }
  0x2a   :  { %4509 = vmatpush1.bf16.msra.mxu0 %v4508_v10  ;;  %v355_v43 = vld [vmem:[%s8827_s4 + $0x268] sm:$0xff]  ;;  %v357_v45 = vld [vmem:[%s8827_s4 + $0x278] sm:$0xff]  ;;  %v354_v50 = vld [vmem:[%s8827_s4 + $0x260] sm:$0xff] }
  0x2b   :  { %4605 = vmatpush1.bf16.msra.mxu1 %v4604_v11  ;;  %4511 = vmatprep.subr.bf16.mxu0 %v4510_v12  ;;  %v4522_v48 = vpack.c.bf16 %v355_v43, %v351_v42  ;;  %v352_v51 = vld [vmem:[%s8827_s4 + $0x250] sm:$0xff]  ;;  %v4618_v52 = vpack.c.bf16 %v357_v45, %v353_v44  ;;  %v359_v54 = vld [vmem:[%s8827_s4 + $0x288] sm:$0xff]  ;;  %v361_v56 = vld [vmem:[%s8827_s4 + $0x298] sm:$0xff]  ;;  %v4524_v58 = vpack.c.bf16 %v354_v50, %v350_v49 }
  0x2c   :  { %4607 = vmatprep.subr.bf16.mxu1 %v4606_v16  ;;  %v356_v53 = vld [vmem:[%s8827_s4 + $0x270] sm:$0xff]  ;;  %v363_v55 = vld [vmem:[%s8827_s4 + $0x2a8] sm:$0xff]  ;;  %v365_v57 = vld [vmem:[%s8827_s4 + $0x2b8] sm:$0xff] }
  0x2d   :  { %v4620_v59 = vpack.c.bf16 %v356_v53, %v352_v51  ;;  %v4526_v60 = vpack.c.bf16 %v363_v55, %v359_v54  ;;  %v358_v61 = vld [vmem:[%s8827_s4 + $0x280] sm:$0xff]  ;;  %v360_v63 = vld [vmem:[%s8827_s4 + $0x290] sm:$0xff]  ;;  %v4622_v0 = vpack.c.bf16 %v365_v57, %v361_v56  ;;  %v367_v2 = vld [vmem:[%s8827_s4 + $0x2c8] sm:$0xff] }
  0x2e   :  { %4513 = vmatpush1.bf16.msra.mxu0 %v4512_v22  ;;  %v362_v62 = vld [vmem:[%s8827_s4 + $0x2a0] sm:$0xff]  ;;  %v364_v1 = vld [vmem:[%s8827_s4 + $0x2b0] sm:$0xff]  ;;  %v371_v3 = vld [vmem:[%s8827_s4 + $0x2e8] sm:$0xff] }
  0x2f   :  { %4609 = vmatpush1.bf16.msra.mxu1 %v4608_v23  ;;  %4515 = vmatprep.subr.bf16.mxu0 %v4514_v24  ;;  %v369_v4 = vld [vmem:[%s8827_s4 + $0x2d8] sm:$0xff]  ;;  %v4528_v6 = vpack.c.bf16 %v362_v62, %v358_v61  ;;  %v366_v7 = vld [vmem:[%s8827_s4 + $0x2c0] sm:$0xff]  ;;  %v6569_v9 = vld [vmem:[%s8827_s4 + $0x2d0] sm:$0xff]  ;;  %v4624_v10 = vpack.c.bf16 %v364_v1, %v360_v63  ;;  %v4530_v11 = vpack.c.bf16 %v371_v3, %v367_v2 }
  0x30   :  { %4611 = vmatprep.subr.bf16.mxu1 %v4610_v28  ;;  %v373_v5 = vld [vmem:[%s8827_s4 + $0x2f8] sm:$0xff]  ;;  %v370_v8 = vld [vmem:[%s8827_s4 + $0x2e0] sm:$0xff]  ;;  %v372_v12 = vld [vmem:[%s8827_s4 + $0x2f0] sm:$0xff] }
  0x31   :  { %v375_v13 = vld [vmem:[%s8827_s4 + $0x308] sm:$0xff]  ;;  %v4626_v15 = vpack.c.bf16 %v373_v5, %v369_v4  ;;  %v377_v16 = vld [vmem:[%s8827_s4 + $0x318] sm:$0xff]  ;;  %v55_v18 = vld [vmem:[%s8850_s7] sm:$0x1]  ;;  %v4532_v25 = vpack.c.bf16 %v370_v8, %v366_v7  ;;  %v4628_v26 = vpack.c.bf16 %v372_v12, %v6569_v9  ;;  %s69_s7 = scalar_lea.vmem %s8825_s2, %s6512_s27  ;;  %s57_s27 = scalar_lea.vmem %s8825_s2, %s6823_s24 }
  0x32   :  { %4517 = vmatpush1.bf16.msra.mxu0 %v4516_v34  ;;  %v379_v14 = vld [vmem:[%s8827_s4 + $0x328] sm:$0xff]  ;;  %v381_v17 = vld [vmem:[%s8827_s4 + $0x338] sm:$0xff]  ;;  %v6608_v19 = vld [vmem:[%s8827_s4 + $0x300] sm:$0xff] }
  0x33   :  { %4613 = vmatpush1.bf16.msra.mxu1 %v4612_v35  ;;  %4519 = vmatprep.subr.bf16.mxu0 %v4518_v36  ;;  %v6613_v20 = vld [vmem:[%s8827_s4 + $0x320] sm:$0xff]  ;;  %v6618_v21 = vld [vmem:[%s8827_s4 + $0x310] sm:$0xff]  ;;  %v4534_v30 = vpack.c.bf16 %v379_v14, %v375_v13  ;;  %v383_v32 = vld [vmem:[%s8827_s4 + $0x348] sm:$0xff]  ;;  %v4630_v37 = vpack.c.bf16 %v381_v17, %v377_v16 }
  0x34   :  { %4615 = vmatprep.subr.bf16.mxu1 %v4614_v40  ;;  %v64_v22 = vld [vmem:[%s8851_s9] sm:$0x1]  ;;  %v380_v31 = vld [vmem:[%s8827_s4 + $0x330] sm:$0xff]  ;;  %v387_v33 = vld [vmem:[%s8827_s4 + $0x368] sm:$0xff] }
  0x35   :  { %v73_v23 = vld [vmem:[%s8852_s16] sm:$0x1]  ;;  %v126_v34 = vrot.slane %v64_v22, 7  ;;  %v385_v38 = vld [vmem:[%s8827_s4 + $0x358] sm:$0xff]  ;;  %v4632_v49 = vpack.c.bf16 %v380_v31, %v6618_v21  ;;  %v4538_v54 = vpack.c.bf16 %v387_v33, %v383_v32  ;;  %v384_v56 = vld [vmem:[%s8827_s4 + $0x350] sm:$0xff] }
  0x36   :  { %4521 = vmatpush1.bf16.msra.mxu0 %v4520_v46  ;;  %v82_v24 = vld [vmem:[%s8853_s8] sm:$0x1]  ;;  %v135_v35 = vrot.slane %v73_v23, 6  ;;  %v389_v39 = vld [vmem:[%s8827_s4 + $0x378] sm:$0xff]  ;;  %v388_v57 = vld [vmem:[%s8827_s4 + $0x370] sm:$0xff] }
  0x37   :  { %4617 = vmatpush1.bf16.msra.mxu1 %v4616_v47  ;;  %4523 = vmatprep.subr.bf16.mxu0 %v4522_v48  ;;  %v91_v27 = vld [vmem:[%s8854_s6] sm:$0x1]  ;;  %v144_v36 = vrot.slane %v82_v24, 5  ;;  %s87_s6 = scalar_lea.vmem %s8825_s2, %s6529_s11  ;;  %v187_v46 = vsel %vm185_vm0, %v55_v18, %v126_v34  ;;  %v4536_v48 = vpack.c.bf16 %v6613_v20, %v6608_v19  ;;  %v4634_v55 = vpack.c.bf16 %v389_v39, %v385_v38  ;;  %v391_v61 = vld [vmem:[%s8827_s4 + $0x388] sm:$0xff]  ;;  %v393_v3 = vld [vmem:[%s8827_s4 + $0x398] sm:$0xff] }
  0x38   :  { %4619 = vmatprep.subr.bf16.mxu1 %v4618_v52  ;;  %v100_v28 = vld [vmem:[%s8855_s1] sm:$0x1]  ;;  %v153_v41 = vrot.slane %v91_v27, 4  ;;  %v191_v50 = vsel %vm189_vm1, %v187_v46, %v135_v35  ;;  %v395_v62 = vld [vmem:[%s8827_s4 + $0x3a8] sm:$0xff]  ;;  %v397_v4 = vld [vmem:[%s8827_s4 + $0x3b8] sm:$0xff]  ;;  %s105_s1 = scalar_lea.vmem %s8825_s2, %s6590_s15  ;;  %v4636_v9 = vpack.c.bf16 %v388_v57, %v384_v56 }
  0x39   :  { %v6650_v29 = vld [vmem:[%s108_s18] sm:$0x1]  ;;  %v162_v44 = vrot.slane %v100_v28, 3  ;;  %v4542_v13 = vpack.c.bf16 %v395_v62, %v391_v61  ;;  %v396_v16 = vld [vmem:[%s8827_s4 + $0x3b0] sm:$0xff]  ;;  %v4638_v19 = vpack.c.bf16 %v397_v4, %v393_v3  ;;  %v399_v20 = vld [vmem:[%s8827_s4 + $0x3c8] sm:$0xff]  ;;  %s114_s18 = scalar_lea.vmem %s8825_s2, %s6603_s21 }
  0x3a   :  { %4525 = vmatpush1.bf16.msra.mxu0 %v4524_v58  ;;  %v118_v40 = vld [vmem:[%s117_s20] sm:$0x1]  ;;  %v171_v45 = vrot.slane %v6650_v29, 2  ;;  %v403_v21 = vld [vmem:[%s8827_s4 + $0x3e8] sm:$0xff]  ;;  %v400_v33 = vld [vmem:[%s8827_s4 + $0x3d0] sm:$0xff]  ;;  %s6921_s20 = sld [smem:[#allocation4 + $0x14]] }
  0x3b   :  { %4621 = vmatpush1.bf16.msra.mxu1 %v4620_v59  ;;  %4527 = vmatprep.subr.bf16.mxu0 %v4526_v60  ;;  %v6690_v42 = vld [vmem:[%s8827_s4 + $0x340] sm:$0xff]  ;;  %v180_v58 = vrot.slane %v118_v40, 1  ;;  %v195_v59 = vsel %vm193_vm2, %v191_v50, %v144_v36  ;;  %v4546_v31 = vpack.c.bf16 %v403_v21, %v399_v20  ;;  %v407_v38 = vld [vmem:[%s8827_s4 + $0x408] sm:$0xff]  ;;  %v408_v50 = vld [vmem:[%s8827_s4 + $0x410] sm:$0xff] }
  0x3c   :  { %4623 = vmatprep.subr.bf16.mxu1 %v4622_v0  ;;  %v6695_v43 = vld [vmem:[%s8827_s4 + $0x360] sm:$0xff]  ;;  %v199_v63 = vsel %vm197_vm3, %v195_v59, %v153_v41  ;;  %v411_v39 = vld [vmem:[%s8827_s4 + $0x428] sm:$0xff]  ;;  %v409_v41 = vld [vmem:[%s8827_s4 + $0x418] sm:$0xff] }
  0x3d   :  { %v61_v47 = vld [vmem:[%s60_s23] sm:$0x1]  ;;  %v203_v5 = vsel %vm201_vm4, %v199_v63, %v162_v44  ;;  %v4540_v8 = vpack.c.bf16 %v6695_v43, %v6690_v42  ;;  %v413_v42 = vld [vmem:[%s8827_s4 + $0x438] sm:$0xff]  ;;  %v4550_v46 = vpack.c.bf16 %v411_v39, %v407_v38  ;;  %v416_v63 = vld [vmem:[%s8827_s4 + $0x450] sm:$0xff] }
  0x3e   :  { %4529 = vmatpush1.bf16.msra.mxu0 %v4528_v6  ;;  %v70_v51 = vld [vmem:[%s69_s7] sm:$0x1]  ;;  %v125_v0 = vrot.slane %v61_v47, 7  ;;  %v421_v56 = vld [vmem:[%s8827_s4 + $0x478] sm:$0xff]  ;;  %v427_v3 = vld [vmem:[%s8827_s4 + $0x4a8] sm:$0xff] }
  0x3f   :  { %4625 = vmatpush1.bf16.msra.mxu1 %v4624_v10  ;;  %4531 = vmatprep.subr.bf16.mxu0 %v4530_v11  ;;  %v79_v52 = vld [vmem:[%s78_s12] sm:$0x1]  ;;  %v134_v1 = vrot.slane %v70_v51, 6  ;;  %v207_v11 = vsel %vm205_vm5, %v203_v5, %v171_v45  ;;  %v4646_v51 = vpack.c.bf16 %v413_v42, %v409_v41  ;;  %v425_v4 = vld [vmem:[%s8827_s4 + $0x498] sm:$0xff]  ;;  %s6894_s12 = sld [smem:[#allocation4 + $0x11]] }
  0x40   :  { %4627 = vmatprep.subr.bf16.mxu1 %v4626_v15  ;;  %v88_v53 = vld [vmem:[%s87_s6] sm:$0x1]  ;;  %v143_v2 = vrot.slane %v79_v52, 5  ;;  %v392_v15 = vld [vmem:[%s8827_s4 + $0x390] sm:$0xff]  ;;  %v211_v17 = vsel %vm209_vm6, %v207_v11, %v180_v58  ;;  %s6820_s6 = sld [smem:[#allocation4 + $0x8]]  ;;  %v429_v5 = vld [vmem:[%s8827_s4 + $0x4b8] sm:$0xff]  ;;  %s111_s24 = scalar_lea.vmem %s8825_s2, %s6921_s20 }
  0x41   :  { %v52_v60 = vld [vmem:[%s51_s29] sm:$0x1]  ;;  %v152_v7 = vrot.slane %v88_v53, 4  ;;  %534 = vmatprep.mubr.f32.mxu0 %v211_v17  ;;  %676 = vmatprep.mubr.f32.mxu1 %v211_v17  ;;  %v412_v52 = vld [vmem:[%s8827_s4 + $0x430] sm:$0xff]  ;;  %v415_v53 = vld [vmem:[%s8827_s4 + $0x448] sm:$0xff] }
  0x42   :  { %4533 = vmatpush1.bf16.msra.mxu0 %v4532_v25  ;;  %v97_v6 = vld [vmem:[%s96_s13] sm:$0x1]  ;;  %v186_v12 = vsel %vm185_vm0, %v52_v60, %v125_v0  ;;  %v401_v25 = vld [vmem:[%s8827_s4 + $0x3d8] sm:$0xff]  ;;  %v4648_v59 = vpack.c.bf16 %v412_v52, %v408_v50  ;;  %s6843_s13 = sld [smem:[#allocation4 + $0xb]]  ;;  %v424_v11 = vld [vmem:[%s8827_s4 + $0x490] sm:$0xff] }
  0x43   :  { %4629 = vmatpush1.bf16.msra.mxu1 %v4628_v26  ;;  %4535 = vmatprep.subr.bf16.mxu0 %v4534_v30  ;;  %v390_v10 = vld [vmem:[%s8827_s4 + $0x380] sm:$0xff]  ;;  %v190_v18 = vsel %vm189_vm1, %v186_v12, %v134_v1  ;;  %v161_v23 = vrot.slane %v97_v6, 3  ;;  %v405_v26 = vld [vmem:[%s8827_s4 + $0x3f8] sm:$0xff]  ;;  %v4640_v30 = vpack.c.bf16 %v396_v16, %v392_v15  ;;  %v420_v1 = vld [vmem:[%s8827_s4 + $0x470] sm:$0xff]  ;;  %v4654_v12 = vpack.c.bf16 %v429_v5, %v425_v4 }
  0x44   :  { %4631 = vmatprep.subr.bf16.mxu1 %v4630_v37  ;;  %v394_v14 = vld [vmem:[%s8827_s4 + $0x3a0] sm:$0xff]  ;;  %v194_v24 = vsel %vm193_vm2, %v190_v18, %v143_v2  ;;  %v4642_v36 = vpack.c.bf16 %v405_v26, %v401_v25  ;;  %v404_v37 = vld [vmem:[%s8827_s4 + $0x3f0] sm:$0xff]  ;;  %v423_v2 = vld [vmem:[%s8827_s4 + $0x488] sm:$0xff]  ;;  %v6168_v16 = vmov 0.0  }
  0x45   :  { %v106_v22 = vld [vmem:[%s105_s1] sm:$0x1]  ;;  %v198_v27 = vsel %vm197_vm3, %v194_v24, %v152_v7  ;;  %v4544_v28 = vpack.c.bf16 %v394_v14, %v390_v10  ;;  %v4644_v45 = vpack.c.bf16 %v404_v37, %v400_v33  ;;  %v4652_v7 = vpack.c.bf16 %v420_v1, %v416_v63  ;;  %s6864_s1 = sld [smem:[#allocation4 + $0xe]]  ;;  %v431_v14 = vld [vmem:[%s8827_s4 + $0x4c8] sm:$0xff]  ;;  %v433_v17 = vld [vmem:[%s8827_s4 + $0x4d8] sm:$0xff]  ;;  %s102_s9 = scalar_lea.vmem %s8825_s2, %s6894_s12 }
  0x46   :  { %4537 = vmatpush1.bf16.msra.mxu0 %v4536_v48  ;;  %v398_v29 = vld [vmem:[%s8827_s4 + $0x3c0] sm:$0xff]  ;;  %v170_v35 = vrot.slane %v106_v22, 2  ;;  %v202_v40 = vsel %vm201_vm4, %v198_v27, %v161_v23  ;;  %v435_v15 = vld [vmem:[%s8827_s4 + $0x4e8] sm:$0xff]  ;;  %v437_v18 = vld [vmem:[%s8827_s4 + $0x4f8] sm:$0xff]  ;;  %s75_s14 = scalar_lea.vmem %s8825_s2, %s6820_s6  ;;  %s120_s12 = scalar_lea.vmem %s8825_s2, %s6945_s30 }
  0x47   :  { %4633 = vmatpush1.bf16.msra.mxu1 %v4632_v49  ;;  %4539 = vmatprep.subr.bf16.mxu0 %v4538_v54  ;;  %v402_v32 = vld [vmem:[%s8827_s4 + $0x3e0] sm:$0xff]  ;;  %v419_v54 = vld [vmem:[%s8827_s4 + $0x468] sm:$0xff]  ;;  %v4562_v23 = vpack.c.bf16 %v435_v15, %v431_v14  ;;  %v432_v25 = vld [vmem:[%s8827_s4 + $0x4d0] sm:$0xff]  ;;  %v4658_v27 = vpack.c.bf16 %v437_v18, %v433_v17 }
  0x48   :  { %4635 = vmatprep.subr.bf16.mxu1 %v4634_v55  ;;  %v115_v34 = vld [vmem:[%s114_s18] sm:$0x1]  ;;  %v4548_v43 = vpack.c.bf16 %v402_v32, %v398_v29  ;;  %v206_v47 = vsel %vm205_vm5, %v202_v40, %v170_v35  ;;  %v417_v55 = vld [vmem:[%s8827_s4 + $0x458] sm:$0xff]  ;;  %v4554_v60 = vpack.c.bf16 %v419_v54, %v415_v53  ;;  %v436_v26 = vld [vmem:[%s8827_s4 + $0x4f0] sm:$0xff]  ;;  %s84_s29 = scalar_lea.vmem %s8825_s2, %s6843_s13 }
  0x49   :  { %v179_v44 = vrot.slane %v115_v34, 1  ;;  %v406_v48 = vld [vmem:[%s8827_s4 + $0x400] sm:$0xff]  ;;  %v4650_v0 = vpack.c.bf16 %v421_v56, %v417_v55  ;;  %v443_v29 = vld [vmem:[%s8827_s4 + $0x528] sm:$0xff]  ;;  %v441_v32 = vld [vmem:[%s8827_s4 + $0x518] sm:$0xff]  ;;  %v4660_v37 = vpack.c.bf16 %v436_v26, %v432_v25 }
  0x4a   :  { %4541 = vmatpush1.bf16.msra.mxu0 %v4540_v8  ;;  %v410_v49 = vld [vmem:[%s8827_s4 + $0x420] sm:$0xff]  ;;  %v4558_v8 = vpack.c.bf16 %v427_v3, %v423_v2  ;;  %v445_v33 = vld [vmem:[%s8827_s4 + $0x538] sm:$0xff]  ;;  %v440_v40 = vld [vmem:[%s8827_s4 + $0x510] sm:$0xff] }
  0x4b   :  { %4637 = vmatpush1.bf16.msra.mxu1 %v4636_v9  ;;  %4543 = vmatprep.subr.bf16.mxu0 %v4542_v13  ;;  %v210_v57 = vsel %vm209_vm6, %v206_v47, %v179_v44  ;;  %v4552_v58 = vpack.c.bf16 %v410_v49, %v406_v48  ;;  %v414_v61 = vld [vmem:[%s8827_s4 + $0x440] sm:$0xff]  ;;  %v428_v13 = vld [vmem:[%s8827_s4 + $0x4b0] sm:$0xff]  ;;  %v449_v48 = vld [vmem:[%s8827_s4 + $0x558] sm:$0xff] }
  0x4c   :  { %4639 = vmatprep.subr.bf16.mxu1 %v4638_v19  ;;  %v418_v62 = vld [vmem:[%s8827_s4 + $0x460] sm:$0xff]  ;;  %v4656_v22 = vpack.c.bf16 %v428_v13, %v424_v11  ;;  %v444_v44 = vld [vmem:[%s8827_s4 + $0x530] sm:$0xff]  ;;  %v453_v49 = vld [vmem:[%s8827_s4 + $0x578] sm:$0xff] }
  0x4d   :  { %v4556_v6 = vpack.c.bf16 %v418_v62, %v414_v61  ;;  %v422_v9 = vld [vmem:[%s8827_s4 + $0x480] sm:$0xff]  ;;  %v4664_v53 = vpack.c.bf16 %v444_v44, %v440_v40  ;;  %v455_v61 = vld [vmem:[%s8827_s4 + $0x588] sm:$0xff]  ;;  %v457_v63 = vld [vmem:[%s8827_s4 + $0x598] sm:$0xff] }
  0x4e   :  { %4545 = vmatpush1.bf16.msra.mxu0 %v4544_v28  ;;  %v426_v10 = vld [vmem:[%s8827_s4 + $0x4a0] sm:$0xff]  ;;  %v439_v28 = vld [vmem:[%s8827_s4 + $0x508] sm:$0xff]  ;;  %v465_v17 = vld [vmem:[%s8827_s4 + $0x5d8] sm:$0xff] }
  0x4f   :  { %4641 = vmatpush1.bf16.msra.mxu1 %v4640_v30  ;;  %4547 = vmatprep.subr.bf16.mxu0 %v4546_v31  ;;  %v67_v19 = vld [vmem:[%s66_s26] sm:$0x1]  ;;  %v4560_v20 = vpack.c.bf16 %v426_v10, %v422_v9  ;;  %v4566_v38 = vpack.c.bf16 %v443_v29, %v439_v28  ;;  %s93_s26 = scalar_lea.vmem %s8825_s2, %s6864_s1  ;;  %v459_v62 = vld [vmem:[%s8827_s4 + $0x5a8] sm:$0xff]  ;;  %v456_v9 = vld [vmem:[%s8827_s4 + $0x590] sm:$0xff] }
  0x50   :  { %4643 = vmatprep.subr.bf16.mxu1 %v4642_v36  ;;  %v430_v21 = vld [vmem:[%s8827_s4 + $0x4c0] sm:$0xff]  ;;  %v127_v31 = vrot.slane %v67_v19, 7  ;;  %v460_v10 = vld [vmem:[%s8827_s4 + $0x5b0] sm:$0xff]  ;;  %v467_v13 = vld [vmem:[%s8827_s4 + $0x5e8] sm:$0xff] }
  0x51   :  { %v434_v24 = vld [vmem:[%s8827_s4 + $0x4e0] sm:$0xff]  ;;  %v469_v18 = vld [vmem:[%s8827_s4 + $0x5f8] sm:$0xff]  ;;  %v464_v25 = vld [vmem:[%s8827_s4 + $0x5d0] sm:$0xff] }
  0x52   :  { %4549 = vmatpush1.bf16.msra.mxu0 %v4548_v43  ;;  %v76_v30 = vld [vmem:[%s75_s14] sm:$0x1]  ;;  %v4564_v35 = vpack.c.bf16 %v434_v24, %v430_v21  ;;  %v4662_v43 = vpack.c.bf16 %v445_v33, %v441_v32  ;;  %v4674_v28 = vpack.c.bf16 %v469_v18, %v465_v17  ;;  %v468_v29 = vld [vmem:[%s8827_s4 + $0x5f0] sm:$0xff]  ;;  %v217_v33 = vld [vmem:[%s8826_s3 + $0x18] sm:$0xff] }
  0x53   :  { %4645 = vmatpush1.bf16.msra.mxu1 %v4644_v45  ;;  %4551 = vmatprep.subr.bf16.mxu0 %v4550_v46  ;;  %v58_v34 = vld [vmem:[%s57_s27] sm:$0x1]  ;;  %v136_v42 = vrot.slane %v76_v30, 6  ;;  %v447_v45 = vld [vmem:[%s8827_s4 + $0x548] sm:$0xff]  ;;  %v220_v44 = vld [vmem:[%s8826_s3 + $0x30] sm:$0xff] }
  0x54   :  { %4647 = vmatprep.subr.bf16.mxu1 %v4646_v51  ;;  %v438_v36 = vld [vmem:[%s8827_s4 + $0x500] sm:$0xff]  ;;  %v451_v46 = vld [vmem:[%s8827_s4 + $0x568] sm:$0xff]  ;;  %v188_v47 = vsel %vm185_vm0, %v58_v34, %v127_v31  ;;  %v221_v34 = vld [vmem:[%s8826_s3 + $0x38] sm:$0xff] }
  0x55   :  { %535 = vmatmul.mubr.f32.vlgmr.msra.gmra.mrb[0].mxu0 %v210_v57  ;;  %v442_v39 = vld [vmem:[%s8827_s4 + $0x520] sm:$0xff]  ;;  %v4570_v54 = vpack.c.bf16 %v451_v46, %v447_v45  ;;  %v215_v30 = vld [vmem:[%s8826_s3 + $0x8] sm:$0xff]  ;;  %v244_v18 = vld [vmem:[%s8826_s3 + $0xf0] sm:$0xff] }
  0x56   :  { %4553 = vmatpush1.bf16.msra.mxu0 %v4552_v58  ;;  %677 = vmatmul.mubr.f32.vlgmr.msra.gmra.mrb[0].mxu1 %v210_v57  ;;  %v85_v41 = vld [vmem:[%s84_s29] sm:$0x1]  ;;  %v4568_v50 = vpack.c.bf16 %v442_v39, %v438_v36  ;;  %v448_v57 = vld [vmem:[%s8827_s4 + $0x550] sm:$0xff]  ;;  %v192_v58 = vsel %vm189_vm1, %v188_v47, %v136_v42  ;;  %v219_v31 = vld [vmem:[%s8826_s3 + $0x28] sm:$0xff] }
  0x57   :  { %4649 = vmatpush1.bf16.msra.mxu1 %v4648_v59  ;;  %4555 = vmatprep.subr.bf16.mxu0 %v4554_v60  ;;  %v94_v51 = vld [vmem:[%s93_s26] sm:$0x1]  ;;  %v145_v52 = vrot.slane %v85_v41, 5  ;;  %v4666_v59 = vpack.c.bf16 %v453_v49, %v449_v48  ;;  %v452_v60 = vld [vmem:[%s8827_s4 + $0x570] sm:$0xff]  ;;  %v223_v45 = vld [vmem:[%s8826_s3 + $0x48] sm:$0xff] }
  0x58   :  { %4651 = vmatprep.subr.bf16.mxu1 %v4650_v0  ;;  %605 = vmatprep.mubr.f32.mxu0 %v6168_v16  ;;  %v446_v55 = vld [vmem:[%s8827_s4 + $0x540] sm:$0xff]  ;;  %v461_v0 = vld [vmem:[%s8827_s4 + $0x5b8] sm:$0xff]  ;;  %v154_v2 = vrot.slane %v94_v51, 4  ;;  %v216_v42 = vld [vmem:[%s8826_s3 + $0x10] sm:$0xff] }
  0x59   :  { %747 = vmatprep.mubr.f32.mxu1 %v6168_v16  ;;  %v450_v56 = vld [vmem:[%s8827_s4 + $0x560] sm:$0xff]  ;;  %v196_v5 = vsel %vm193_vm2, %v192_v58, %v145_v52  ;;  %v4670_v11 = vpack.c.bf16 %v461_v0, %v457_v63  ;;  %v227_v46 = vld [vmem:[%s8826_s3 + $0x68] sm:$0xff]  ;;  %v225_v47 = vld [vmem:[%s8826_s3 + $0x58] sm:$0xff]  ;;  %v4712_v51 = vpack.c.bf16 %v220_v44, %v216_v42 }
  0x5a   :  { %4557 = vmatpush1.bf16.msra.mxu0 %v4556_v6  ;;  %v103_v1 = vld [vmem:[%s102_s9] sm:$0x1]  ;;  %v4572_v3 = vpack.c.bf16 %v450_v56, %v446_v55  ;;  %v4668_v6 = vpack.c.bf16 %v452_v60, %v448_v57  ;;  %v200_v19 = vsel %vm197_vm3, %v196_v5, %v154_v2  ;;  %v229_v48 = vld [vmem:[%s8826_s3 + $0x78] sm:$0xff]  ;;  %v4682_v52 = vpack.c.bf16 %v227_v46, %v223_v45  ;;  %v224_v55 = vld [vmem:[%s8826_s3 + $0x50] sm:$0xff] }
  0x5b   :  { %4653 = vmatpush1.bf16.msra.mxu1 %v4652_v7  ;;  %4559 = vmatprep.subr.bf16.mxu0 %v4558_v8  ;;  %v454_v4 = vld [vmem:[%s8827_s4 + $0x580] sm:$0xff]  ;;  %v4574_v7 = vpack.c.bf16 %v459_v62, %v455_v61  ;;  %v163_v15 = vrot.slane %v103_v1, 3  ;;  %v4714_v56 = vpack.c.bf16 %v229_v48, %v225_v47  ;;  %v228_v57 = vld [vmem:[%s8826_s3 + $0x70] sm:$0xff]  ;;  %v231_v58 = vld [vmem:[%s8826_s3 + $0x88] sm:$0xff] }
  0x5c   :  { %4655 = vmatprep.subr.bf16.mxu1 %v4654_v12  ;;  %v458_v8 = vld [vmem:[%s8827_s4 + $0x5a0] sm:$0xff]  ;;  %v463_v12 = vld [vmem:[%s8827_s4 + $0x5c8] sm:$0xff]  ;;  %v233_v60 = vld [vmem:[%s8826_s3 + $0x98] sm:$0xff]  ;;  %v4716_v63 = vpack.c.bf16 %v228_v57, %v224_v55 }
  0x5d   :  { %v112_v14 = vld [vmem:[%s111_s24] sm:$0x1]  ;;  %v204_v32 = vsel %vm201_vm4, %v200_v19, %v163_v15  ;;  %v237_v61 = vld [vmem:[%s8826_s3 + $0xb8] sm:$0xff]  ;;  %v236_v5 = vld [vmem:[%s8826_s3 + $0xb0] sm:$0xff] }
  0x5e   :  { %4561 = vmatpush1.bf16.msra.mxu0 %v4560_v20  ;;  %v4576_v20 = vpack.c.bf16 %v458_v8, %v454_v4  ;;  %v462_v21 = vld [vmem:[%s8827_s4 + $0x5c0] sm:$0xff]  ;;  %v4718_v4 = vpack.c.bf16 %v237_v61, %v233_v60  ;;  %v241_v8 = vld [vmem:[%s8826_s3 + $0xd8] sm:$0xff]  ;;  %v240_v15 = vld [vmem:[%s8826_s3 + $0xd0] sm:$0xff] }
  0x5f   :  { %4657 = vmatpush1.bf16.msra.mxu1 %v4656_v22  ;;  %4563 = vmatprep.subr.bf16.mxu0 %v4562_v23  ;;  %v4672_v22 = vpack.c.bf16 %v460_v10, %v456_v9  ;;  %v4578_v23 = vpack.c.bf16 %v467_v13, %v463_v12  ;;  %v466_v24 = vld [vmem:[%s8827_s4 + $0x5e0] sm:$0xff]  ;;  %v245_v9 = vld [vmem:[%s8826_s3 + $0xf8] sm:$0xff]  ;;  %v247_v19 = vld [vmem:[%s8826_s3 + $0x108] sm:$0xff] }
  0x60   :  { %4659 = vmatprep.subr.bf16.mxu1 %v4658_v27  ;;  %v121_v26 = vld [vmem:[%s120_s12] sm:$0x1]  ;;  %v172_v27 = vrot.slane %v112_v14, 2  ;;  %v4722_v17 = vpack.c.bf16 %v245_v9, %v241_v8  ;;  %v260_v42 = vld [vmem:[%s8826_s3 + $0x170] sm:$0xff]  ;;  %v267_v44 = vld [vmem:[%s8826_s3 + $0x1a8] sm:$0xff] }
  0x61   :  { %v181_v36 = vrot.slane %v121_v26, 1  ;;  %v214_v40 = vld [vmem:[%s8826_s3] sm:$0xff]  ;;  %v265_v45 = vld [vmem:[%s8826_s3 + $0x198] sm:$0xff] }
  0x62   :  { %4565 = vmatpush1.bf16.msra.mxu0 %v4564_v35  ;;  %v4580_v35 = vpack.c.bf16 %v466_v24, %v462_v21  ;;  %v208_v39 = vsel %vm205_vm5, %v204_v32, %v172_v27  ;;  %v218_v41 = vld [vmem:[%s8826_s3 + $0x20] sm:$0xff]  ;;  %v249_v21 = vld [vmem:[%s8826_s3 + $0x118] sm:$0xff]  ;;  %v4724_v24 = vpack.c.bf16 %v244_v18, %v240_v15  ;;  %v259_v32 = vld [vmem:[%s8826_s3 + $0x168] sm:$0xff] }
  0x63   :  { %4661 = vmatpush1.bf16.msra.mxu1 %v4660_v37  ;;  %4567 = vmatprep.subr.bf16.mxu0 %v4566_v38  ;;  %v4676_v37 = vpack.c.bf16 %v468_v29, %v464_v25  ;;  %v4678_v38 = vpack.c.bf16 %v219_v31, %v215_v30  ;;  %v212_v49 = vsel %vm209_vm6, %v208_v39, %v181_v36  ;;  %v230_v1 = vld [vmem:[%s8826_s3 + $0x80] sm:$0xff]  ;;  %v252_v30 = vld [vmem:[%s8826_s3 + $0x130] sm:$0xff]  ;;  %v255_v31 = vld [vmem:[%s8826_s3 + $0x148] sm:$0xff] }
  0x64   :  { %4663 = vmatprep.subr.bf16.mxu1 %v4662_v43  ;;  %v4710_v43 = vpack.c.bf16 %v221_v34, %v217_v33  ;;  %v234_v2 = vld [vmem:[%s8826_s3 + $0xa0] sm:$0xff]  ;;  %v257_v33 = vld [vmem:[%s8826_s3 + $0x158] sm:$0xff] }
  0x65   :  { %v4688_v10 = vpack.c.bf16 %v234_v2, %v230_v1  ;;  %v238_v13 = vld [vmem:[%s8826_s3 + $0xc0] sm:$0xff]  ;;  %v261_v34 = vld [vmem:[%s8826_s3 + $0x178] sm:$0xff] }
  0x66   :  { %4569 = vmatpush1.bf16.msra.mxu0 %v4568_v50  ;;  %v4680_v50 = vpack.c.bf16 %v218_v41, %v214_v40  ;;  %v242_v14 = vld [vmem:[%s8826_s3 + $0xe0] sm:$0xff]  ;;  %v256_v40 = vld [vmem:[%s8826_s3 + $0x150] sm:$0xff]  ;;  %v4730_v41 = vpack.c.bf16 %v261_v34, %v257_v33  ;;  %v269_v46 = vld [vmem:[%s8826_s3 + $0x1b8] sm:$0xff] }
  0x67   :  { %4665 = vmatpush1.bf16.msra.mxu1 %v4664_v53  ;;  %4571 = vmatprep.subr.bf16.mxu0 %v4570_v54  ;;  %v222_v53 = vld [vmem:[%s8826_s3 + $0x40] sm:$0xff] }
  0x68   :  { %4667 = vmatprep.subr.bf16.mxu1 %v4666_v59  ;;  %v226_v54 = vld [vmem:[%s8826_s3 + $0x60] sm:$0xff]  ;;  %v235_v59 = vld [vmem:[%s8826_s3 + $0xa8] sm:$0xff] }
  0x69   :  { %v4684_v62 = vpack.c.bf16 %v226_v54, %v222_v53  ;;  %v4686_v0 = vpack.c.bf16 %v235_v59, %v231_v58  ;;  %v246_v26 = vld [vmem:[%s8826_s3 + $0x100] sm:$0xff] }
  0x6a   :  { %4573 = vmatpush1.bf16.msra.mxu0 %v4572_v3  ;;  %v232_v3 = vld [vmem:[%s8826_s3 + $0x90] sm:$0xff]  ;;  %v250_v27 = vld [vmem:[%s8826_s3 + $0x120] sm:$0xff] }
  0x6b   :  { %4669 = vmatpush1.bf16.msra.mxu1 %v4668_v6  ;;  %4575 = vmatprep.subr.bf16.mxu0 %v4574_v7  ;;  %v239_v6 = vld [vmem:[%s8826_s3 + $0xc8] sm:$0xff]  ;;  %v258_v39 = vld [vmem:[%s8826_s3 + $0x160] sm:$0xff] }
  0x6c   :  { %4671 = vmatprep.subr.bf16.mxu1 %v4670_v11  ;;  %v243_v7 = vld [vmem:[%s8826_s3 + $0xe8] sm:$0xff]  ;;  %v4720_v11 = vpack.c.bf16 %v236_v5, %v232_v3 }
  0x6d   :  { %v4690_v12 = vpack.c.bf16 %v243_v7, %v239_v6 }
  0x6e   :  { %4577 = vmatpush1.bf16.msra.mxu0 %v4576_v20  ;;  %v251_v20 = vld [vmem:[%s8826_s3 + $0x128] sm:$0xff] }
  0x6f   :  { %4673 = vmatpush1.bf16.msra.mxu1 %v4672_v22  ;;  %4579 = vmatprep.subr.bf16.mxu0 %v4578_v23  ;;  %v253_v22 = vld [vmem:[%s8826_s3 + $0x138] sm:$0xff]  ;;  %v4692_v23 = vpack.c.bf16 %v242_v14, %v238_v13  ;;  %v4694_v25 = vpack.c.bf16 %v251_v20, %v247_v19 }
  0x70   :  { %4675 = vmatprep.subr.bf16.mxu1 %v4674_v28  ;;  %v248_v28 = vld [vmem:[%s8826_s3 + $0x110] sm:$0xff]  ;;  %v4726_v29 = vpack.c.bf16 %v253_v22, %v249_v21 }
  0x71   :  { %v4728_v36 = vpack.c.bf16 %v252_v30, %v248_v28 }
  0x72   :  { %4581 = vmatpush1.bf16.msra.mxu0 %v4580_v35  ;;  %v4696_v35 = vpack.c.bf16 %v250_v27, %v246_v26 }
  0x73   :  { %4677 = vmatpush1.bf16.msra.mxu1 %v4676_v37  ;;  %4679 = vmatprep.subr.bf16.mxu0 %v4678_v38  ;;  %v4698_v37 = vpack.c.bf16 %v259_v32, %v255_v31  ;;  %v254_v38 = vld [vmem:[%s8826_s3 + $0x140] sm:$0xff] }
  0x74   :  { %4711 = vmatprep.subr.bf16.mxu1 %v4710_v43  ;;  %v263_v43 = vld [vmem:[%s8826_s3 + $0x188] sm:$0xff]  ;;  %v4700_v47 = vpack.c.bf16 %v258_v39, %v254_v38 }
  0x75   :  { %606 = vmatmul.mubr.f32.vlgmr.msra.gmra.mrb[0].mxu0 %v212_v49 }
  0x76   :  { %748 = vmatmul.mubr.f32.vlgmr.msra.gmra.mrb[0].mxu1 %v212_v49  ;;  %4681 = vmatpush1.bf16.msra.mxu0 %v4680_v50 }
  0x77   :  { %4713 = vmatpush1.bf16.msra.mxu1 %v4712_v51  ;;  %4683 = vmatprep.subr.bf16.mxu0 %v4682_v52 }
  0x78   :  { %4715 = vmatprep.subr.bf16.mxu1 %v4714_v56  ;;  %818 = vmatprep.mubr.f32.mxu0 %v6168_v16 }
  0x79   :  { %889 = vmatprep.mubr.f32.mxu1 %v6168_v16 }
  0x7a   :  { %4685 = vmatpush1.bf16.msra.mxu0 %v4684_v62 }
  0x7b   :  { %4717 = vmatpush1.bf16.msra.mxu1 %v4716_v63  ;;  %4687 = vmatprep.subr.bf16.mxu0 %v4686_v0 }
  0x7c   :  { %4719 = vmatprep.subr.bf16.mxu1 %v4718_v4 }
  0x7e   :  { %4689 = vmatpush1.bf16.msra.mxu0 %v4688_v10 }
  0x7f   :  { %4721 = vmatpush1.bf16.msra.mxu1 %v4720_v11  ;;  %4691 = vmatprep.subr.bf16.mxu0 %v4690_v12 }
  0x80   :  { %4723 = vmatprep.subr.bf16.mxu1 %v4722_v17 }
  0x82   :  { %4693 = vmatpush1.bf16.msra.mxu0 %v4692_v23 }
  0x83   :  { %4725 = vmatpush1.bf16.msra.mxu1 %v4724_v24  ;;  %4695 = vmatprep.subr.bf16.mxu0 %v4694_v25 }
  0x84   :  { %4727 = vmatprep.subr.bf16.mxu1 %v4726_v29 }
  0x86   :  { %4697 = vmatpush1.bf16.msra.mxu0 %v4696_v35 }
  0x87   :  { %23 = vsyncpa [#allocation6], 0  ;;  %4729 = vmatpush1.bf16.msra.mxu1 %v4728_v36  ;;  %4699 = vmatprep.subr.bf16.mxu0 %v4698_v37  ;;  %v4732_v48 = vpack.c.bf16 %v260_v42, %v256_v40  ;;  %v4702_v49 = vpack.c.bf16 %v267_v44, %v263_v43  ;;  %v262_v50 = vld [vmem:[%s8826_s3 + $0x180] sm:$0xff]  ;;  %v264_v52 = vld [vmem:[%s8826_s3 + $0x190] sm:$0xff]  ;;  %v4734_v53 = vpack.c.bf16 %v269_v46, %v265_v45  ;;  %s8856_s9 = sld [smem:[#allocation10_spill]]  ;;  %s8857_s0 = sld [smem:[#allocation9_spill]] }
  0x88   :  { %v266_v51 = vld [vmem:[%s8826_s3 + $0x1a0] sm:$0xff]  ;;  %4731 = vmatprep.subr.bf16.mxu1 %v4730_v41  ;;  %v268_v54 = vld [vmem:[%s8826_s3 + $0x1b0] sm:$0xff]  ;;  %v271_v55 = vld [vmem:[%s8826_s3 + $0x1c8] sm:$0xff]  ;;  %s8858_s7 = sld [smem:[#allocation11_spill]]  ;;  %s8859_s26 = sld [smem:[#allocation12_spill]] }
  0x89   :  { %v275_v56 = vld [vmem:[%s8826_s3 + $0x1e8] sm:$0xff]  ;;  %v273_v57 = vld [vmem:[%s8826_s3 + $0x1d8] sm:$0xff]  ;;  %v4704_v59 = vpack.c.bf16 %v266_v51, %v262_v50  ;;  %v4736_v60 = vpack.c.bf16 %v268_v54, %v264_v52  ;;  %v270_v62 = vld [vmem:[%s8826_s3 + $0x1c0] sm:$0xff]  ;;  %s8860_s1 = sld [smem:[#allocation13_spill]]  ;;  %s8861_s29 = sld [smem:[#allocation14_spill]] }
  0x8a   :  { %v277_v58 = vld [vmem:[%s8826_s3 + $0x1f8] sm:$0xff]  ;;  %4701 = vmatpush1.bf16.msra.mxu0 %v4700_v47  ;;  %v4706_v61 = vpack.c.bf16 %v275_v56, %v271_v55  ;;  %v274_v63 = vld [vmem:[%s8826_s3 + $0x1e0] sm:$0xff]  ;;  %v272_v0 = vld [vmem:[%s8826_s3 + $0x1d0] sm:$0xff]  ;;  %s8862_s22 = sld [smem:[#allocation15_spill]]  ;;  %s6169_s12 = smov [#allocation5]  }
  0x8b   :  { %4733 = vmatpush1.bf16.msra.mxu1 %v4732_v48  ;;  %4703 = vmatprep.subr.bf16.mxu0 %v4702_v49  ;;  %v4738_v1 = vpack.c.bf16 %v277_v58, %v273_v57  ;;  %v276_v2 = vld [vmem:[%s8826_s3 + $0x1f0] sm:$0xff]  ;;  %v4708_v7 = vpack.c.bf16 %v274_v63, %v270_v62  ;;  %s8863_s3 = sld [smem:[#allocation16_spill]]  ;;  %s4383_s18 = sshll.u32 %s6169_s12, 4  ;;  %s4384_s18 = int_to_ptr.vmem [resolvable:$true] %s4383_s18 }
  0x8c   :  { %4735 = vmatprep.subr.bf16.mxu1 %v4734_v53  ;;  %v4740_v8 = vpack.c.bf16 %v276_v2, %v272_v0  ;;  %p6146_p6 = scmp.lt.s32.totalorder %s4384_s18, %s4384_s18 }
  0x8d   :  { %v923_v3 = vld [vmem:[%s8856_s9 + $0x8] sm:$0xff]  ;;  %v925_v5 = vld [vmem:[%s8856_s9 + $0x18] sm:$0xff]  ;;  %v922_v10 = vld [vmem:[%s8856_s9] sm:$0xff] }
  0x8e   :  { %v927_v4 = vld [vmem:[%s8856_s9 + $0x28] sm:$0xff]  ;;  %v929_v6 = vld [vmem:[%s8856_s9 + $0x38] sm:$0xff]  ;;  %4705 = vmatpush1.bf16.msra.mxu0 %v4704_v59  ;;  %v926_v11 = vld [vmem:[%s8856_s9 + $0x20] sm:$0xff] }
  0x8f   :  { %4737 = vmatpush1.bf16.msra.mxu1 %v4736_v60  ;;  %4707 = vmatprep.subr.bf16.mxu0 %v4706_v61  ;;  %v7238_v9 = vpack.c.bf16 %v927_v4, %v923_v3  ;;  %v924_v12 = vld [vmem:[%s8856_s9 + $0x10] sm:$0xff]  ;;  %v7249_v13 = vpack.c.bf16 %v929_v6, %v925_v5  ;;  %v931_v15 = vld [vmem:[%s8856_s9 + $0x48] sm:$0xff]  ;;  %v933_v18 = vld [vmem:[%s8856_s9 + $0x58] sm:$0xff]  ;;  %v7269_v21 = vpack.c.bf16 %v926_v11, %v922_v10 }
  0x90   :  { %4739 = vmatprep.subr.bf16.mxu1 %v4738_v1  ;;  %v928_v14 = vld [vmem:[%s8856_s9 + $0x30] sm:$0xff]  ;;  %v935_v17 = vld [vmem:[%s8856_s9 + $0x68] sm:$0xff]  ;;  %v937_v19 = vld [vmem:[%s8856_s9 + $0x78] sm:$0xff] }
  0x91   :  { %v213_v20 = vld [vmem:[%s8857_s0] sm:$0xff]  ;;  %v7272_v22 = vpack.c.bf16 %v928_v14, %v924_v12  ;;  %v7274_v23 = vpack.c.bf16 %v935_v17, %v931_v15  ;;  %v932_v26 = vld [vmem:[%s8856_s9 + $0x50] sm:$0xff]  ;;  %v7286_v27 = vpack.c.bf16 %v937_v19, %v933_v18  ;;  %v939_v29 = vld [vmem:[%s8856_s9 + $0x88] sm:$0xff] }
  0x92   :  { %4709 = vmatpush1.bf16.msra.mxu0 %v4708_v7  ;;  %v930_v24 = vld [vmem:[%s8856_s9 + $0x40] sm:$0xff]  ;;  %v936_v28 = vld [vmem:[%s8856_s9 + $0x70] sm:$0xff]  ;;  %v943_v30 = vld [vmem:[%s8856_s9 + $0xa8] sm:$0xff] }
  0x93   :  { %4741 = vmatpush1.bf16.msra.mxu1 %v4740_v8  ;;  %4743 = vmatprep.subr.bf16.mxu0 %v7238_v9  ;;  %v934_v25 = vld [vmem:[%s8856_s9 + $0x60] sm:$0xff]  ;;  %v941_v31 = vld [vmem:[%s8856_s9 + $0x98] sm:$0xff]  ;;  %v7308_v34 = vpack.c.bf16 %v936_v28, %v932_v26  ;;  %v7310_v35 = vpack.c.bf16 %v943_v30, %v939_v29  ;;  %v940_v38 = vld [vmem:[%s8856_s9 + $0x90] sm:$0xff] }
  0x94   :  { %4775 = vmatprep.subr.bf16.mxu1 %v7249_v13  ;;  %v945_v32 = vld [vmem:[%s8856_s9 + $0xb8] sm:$0xff]  ;;  %v7304_v33 = vpack.c.bf16 %v934_v25, %v930_v24  ;;  %v938_v36 = vld [vmem:[%s8856_s9 + $0x80] sm:$0xff]  ;;  %v944_v40 = vld [vmem:[%s8856_s9 + $0xb0] sm:$0xff] }
  0x95   :  { %819 = vmatmul.mubr.f32.vlgmr.msra.gmra.mrb[0].mxu0 %v213_v20  ;;  %v942_v37 = vld [vmem:[%s8856_s9 + $0xa0] sm:$0xff]  ;;  %v7322_v39 = vpack.c.bf16 %v945_v32, %v941_v31  ;;  %v947_v41 = vld [vmem:[%s8856_s9 + $0xc8] sm:$0xff]  ;;  %v949_v43 = vld [vmem:[%s8856_s9 + $0xd8] sm:$0xff]  ;;  %v7346_v46 = vpack.c.bf16 %v944_v40, %v940_v38 }
  0x96   :  { %890 = vmatmul.mubr.f32.vlgmr.msra.gmra.mrb[0].mxu1 %v213_v20  ;;  %4745 = vmatpush1.bf16.msra.mxu0 %v7269_v21  ;;  %v951_v42 = vld [vmem:[%s8856_s9 + $0xe8] sm:$0xff]  ;;  %v953_v44 = vld [vmem:[%s8856_s9 + $0xf8] sm:$0xff]  ;;  %v7342_v45 = vpack.c.bf16 %v942_v37, %v938_v36  ;;  %v946_v48 = vld [vmem:[%s8856_s9 + $0xc0] sm:$0xff] }
  0x97   :  { %4777 = vmatpush1.bf16.msra.mxu1 %v7272_v22  ;;  %4747 = vmatprep.subr.bf16.mxu0 %v7274_v23  ;;  %v7348_v47 = vpack.c.bf16 %v951_v42, %v947_v41  ;;  %v950_v49 = vld [vmem:[%s8856_s9 + $0xe0] sm:$0xff]  ;;  %v948_v50 = vld [vmem:[%s8856_s9 + $0xd0] sm:$0xff]  ;;  %v7360_v51 = vpack.c.bf16 %v953_v44, %v949_v43  ;;  %v955_v53 = vld [vmem:[%s8856_s9 + $0x108] sm:$0xff] }
  0x98   :  { %4779 = vmatprep.subr.bf16.mxu1 %v7286_v27  ;;  %1050 = vmatprep.mubr.f32.mxu0 %v6168_v16  ;;  %v952_v52 = vld [vmem:[%s8856_s9 + $0xf0] sm:$0xff]  ;;  %v959_v54 = vld [vmem:[%s8856_s9 + $0x128] sm:$0xff]  ;;  %v957_v55 = vld [vmem:[%s8856_s9 + $0x118] sm:$0xff]  ;;  %v7378_v57 = vpack.c.bf16 %v950_v49, %v946_v48 }
  0x99   :  { %1121 = vmatprep.mubr.f32.mxu1 %v6168_v16  ;;  %v961_v56 = vld [vmem:[%s8856_s9 + $0x138] sm:$0xff]  ;;  %v7382_v58 = vpack.c.bf16 %v952_v52, %v948_v50  ;;  %v7384_v59 = vpack.c.bf16 %v959_v54, %v955_v53  ;;  %v954_v60 = vld [vmem:[%s8856_s9 + $0x100] sm:$0xff]  ;;  %v956_v62 = vld [vmem:[%s8856_s9 + $0x110] sm:$0xff] }
  0x9a   :  { %4749 = vmatpush1.bf16.msra.mxu0 %v7304_v33  ;;  %v958_v61 = vld [vmem:[%s8856_s9 + $0x120] sm:$0xff]  ;;  %v7396_v63 = vpack.c.bf16 %v961_v56, %v957_v55  ;;  %v960_v0 = vld [vmem:[%s8856_s9 + $0x130] sm:$0xff]  ;;  %v963_v1 = vld [vmem:[%s8856_s9 + $0x148] sm:$0xff] }
  0x9b   :  { %4781 = vmatpush1.bf16.msra.mxu1 %v7308_v34  ;;  %4751 = vmatprep.subr.bf16.mxu0 %v7310_v35  ;;  %v967_v2 = vld [vmem:[%s8856_s9 + $0x168] sm:$0xff]  ;;  %v965_v3 = vld [vmem:[%s8856_s9 + $0x158] sm:$0xff]  ;;  %v7414_v5 = vpack.c.bf16 %v958_v61, %v954_v60  ;;  %v7418_v6 = vpack.c.bf16 %v960_v0, %v956_v62  ;;  %v962_v8 = vld [vmem:[%s8856_s9 + $0x140] sm:$0xff]  ;;  %v898_v61 = vlaneseq }
  0x9c   :  { %4783 = vmatprep.subr.bf16.mxu1 %v7322_v39  ;;  %v969_v4 = vld [vmem:[%s8856_s9 + $0x178] sm:$0xff]  ;;  %v7420_v7 = vpack.c.bf16 %v967_v2, %v963_v1  ;;  %v966_v10 = vld [vmem:[%s8856_s9 + $0x160] sm:$0xff]  ;;  %v964_v11 = vld [vmem:[%s8856_s9 + $0x150] sm:$0xff] }
  0x9d   :  { %v7432_v12 = vpack.c.bf16 %v969_v4, %v965_v3  ;;  %v968_v14 = vld [vmem:[%s8856_s9 + $0x170] sm:$0xff]  ;;  %v971_v15 = vld [vmem:[%s8856_s9 + $0x188] sm:$0xff]  ;;  %v973_v18 = vld [vmem:[%s8856_s9 + $0x198] sm:$0xff]  ;;  %v7450_v20 = vpack.c.bf16 %v966_v10, %v962_v8  ;;  %v7557_v62 = vshrl.u32 %v898_v61, 7 }
  0x9e   :  { %4753 = vmatpush1.bf16.msra.mxu0 %v7342_v45  ;;  %v975_v17 = vld [vmem:[%s8856_s9 + $0x1a8] sm:$0xff]  ;;  %v977_v19 = vld [vmem:[%s8856_s9 + $0x1b8] sm:$0xff]  ;;  %v7454_v24 = vpack.c.bf16 %v968_v14, %v964_v11  ;;  %v970_v26 = vld [vmem:[%s8856_s9 + $0x180] sm:$0xff] }
  0x9f   :  { %4785 = vmatpush1.bf16.msra.mxu1 %v7346_v46  ;;  %4755 = vmatprep.subr.bf16.mxu0 %v7348_v47  ;;  %v7456_v25 = vpack.c.bf16 %v975_v17, %v971_v15  ;;  %v974_v28 = vld [vmem:[%s8856_s9 + $0x1a0] sm:$0xff]  ;;  %v972_v29 = vld [vmem:[%s8856_s9 + $0x190] sm:$0xff]  ;;  %v7468_v30 = vpack.c.bf16 %v977_v19, %v973_v18  ;;  %v979_v32 = vld [vmem:[%s8856_s9 + $0x1c8] sm:$0xff]  ;;  %v7560_v0 = vsub.s32 0, %v7557_v62  ;;  %v7566_v2 = vsub.s32 1, %v7557_v62 }
  0xa0   :  { %4787 = vmatprep.subr.bf16.mxu1 %v7360_v51  ;;  %v976_v31 = vld [vmem:[%s8856_s9 + $0x1b0] sm:$0xff]  ;;  %v983_v36 = vld [vmem:[%s8856_s9 + $0x1e8] sm:$0xff]  ;;  %v981_v37 = vld [vmem:[%s8856_s9 + $0x1d8] sm:$0xff]  ;;  %v7486_v40 = vpack.c.bf16 %v974_v28, %v970_v26  ;;  %v912_v8 = vsub.s32 3, %v7557_v62 }
  0xa1   :  { %v985_v38 = vld [vmem:[%s8856_s9 + $0x1f8] sm:$0xff]  ;;  %v7490_v41 = vpack.c.bf16 %v976_v31, %v972_v29  ;;  %v7492_v42 = vpack.c.bf16 %v983_v36, %v979_v32  ;;  %v978_v43 = vld [vmem:[%s8856_s9 + $0x1c0] sm:$0xff]  ;;  %v980_v49 = vld [vmem:[%s8856_s9 + $0x1d0] sm:$0xff]  ;;  %v908_v29 = vsub.s32 2, %v7557_v62 }
  0xa2   :  { %4757 = vmatpush1.bf16.msra.mxu0 %v7378_v57  ;;  %v982_v44 = vld [vmem:[%s8856_s9 + $0x1e0] sm:$0xff]  ;;  %v7501_v48 = vpack.c.bf16 %v985_v38, %v981_v37  ;;  %v984_v50 = vld [vmem:[%s8856_s9 + $0x1f0] sm:$0xff]  ;;  %s6141_s9 = scalar_lea.vmem %s4384_s18, 256 }
  0xa3   :  { %4789 = vmatpush1.bf16.msra.mxu1 %v7382_v58  ;;  %4759 = vmatprep.subr.bf16.mxu0 %v7384_v59  ;;  %v7510_v52 = vpack.c.bf16 %v982_v44, %v978_v43  ;;  %v7514_v53 = vpack.c.bf16 %v984_v50, %v980_v49  ;;  %v896_v1 = vld [vmem:[%s8858_s7] sm:$0xf]  ;;  %p6142_p5 = scmp.ne.s32.totalorder %s4384_s18, %s6141_s9  ;;  %p6147_p7 = scmp.lt.s32.totalorder %s6141_s9, %s6141_s9 }
  0xa4   :  { %4791 = vmatprep.subr.bf16.mxu1 %v7396_v63  ;;  %v901_v3 = vrot.slane %v896_v1, %v7560_v0  ;;  %v905_v4 = vrot.slane %v896_v1, %v7566_v2  ;;  %v913_v19 = vrot.slane %v896_v1, %v912_v8  ;;  %v909_v37 = vrot.slane %v896_v1, %v908_v29 }
  0xa5   :  { %p6148_p8 = por %p6147_p7, %p6146_p6 }
  0xa6   :  { %4761 = vmatpush1.bf16.msra.mxu0 %v7414_v5 }
  0xa7   :  { %4793 = vmatpush1.bf16.msra.mxu1 %v7418_v6  ;;  %4763 = vmatprep.subr.bf16.mxu0 %v7420_v7  ;;  %p6149_p9 = pnand %p6148_p8, %p6142_p5 }
  0xa8   :  { %4795 = vmatprep.subr.bf16.mxu1 %v7432_v12 }
  0xaa   :  { %4765 = vmatpush1.bf16.msra.mxu0 %v7450_v20 }
  0xab   :  { %4797 = vmatpush1.bf16.msra.mxu1 %v7454_v24  ;;  %4767 = vmatprep.subr.bf16.mxu0 %v7456_v25 }
  0xac   :  { %4799 = vmatprep.subr.bf16.mxu1 %v7468_v30 }
  0xae   :  { %4769 = vmatpush1.bf16.msra.mxu0 %v7486_v40 }
  0xaf   :  { %4801 = vmatpush1.bf16.msra.mxu1 %v7490_v41  ;;  %4771 = vmatprep.subr.bf16.mxu0 %v7492_v42 }
  0xb0   :  { %4803 = vmatprep.subr.bf16.mxu1 %v7501_v48 }
  0xb2   :  { %4773 = vmatpush1.bf16.msra.mxu0 %v7510_v52 }
  0xb3   :  { %4805 = vmatpush1.bf16.msra.mxu1 %v7514_v53  ;;  %4807 = vmatprep.subr.bf16.mxu0 %v7238_v9 }
  0xb4   :  { %4839 = vmatprep.subr.bf16.mxu1 %v7249_v13 }
  0xb5   :  { %1051 = vmatmul.mubr.f32.vlgmr.msra.gmra.mrb[2].mxu0 %v6168_v16 }
  0xb6   :  { %1122 = vmatmul.mubr.f32.vlgmr.msra.gmra.mrb[2].mxu1 %v6168_v16  ;;  %4809 = vmatpush1.bf16.msra.mxu0 %v7269_v21 }
  0xb7   :  { %4841 = vmatpush1.bf16.msra.mxu1 %v7272_v22  ;;  %4811 = vmatprep.subr.bf16.mxu0 %v7274_v23 }
  0xb8   :  { %4843 = vmatprep.subr.bf16.mxu1 %v7286_v27  ;;  %1220 = vmatprep.mubr.f32.mxu0 %v6168_v16 }
  0xb9   :  { %1291 = vmatprep.mubr.f32.mxu1 %v6168_v16 }
  0xba   :  { %4813 = vmatpush1.bf16.msra.mxu0 %v7304_v33 }
  0xbb   :  { %4845 = vmatpush1.bf16.msra.mxu1 %v7308_v34  ;;  %4815 = vmatprep.subr.bf16.mxu0 %v7310_v35 }
  0xbc   :  { %4847 = vmatprep.subr.bf16.mxu1 %v7322_v39 }
  0xbe   :  { %4817 = vmatpush1.bf16.msra.mxu0 %v7342_v45 }
  0xbf   :  { %4849 = vmatpush1.bf16.msra.mxu1 %v7346_v46  ;;  %4819 = vmatprep.subr.bf16.mxu0 %v7348_v47 }
  0xc0   :  { %4851 = vmatprep.subr.bf16.mxu1 %v7360_v51 }
  0xc2   :  { %4821 = vmatpush1.bf16.msra.mxu0 %v7378_v57 }
  0xc3   :  { %4853 = vmatpush1.bf16.msra.mxu1 %v7382_v58  ;;  %4823 = vmatprep.subr.bf16.mxu0 %v7384_v59 }
  0xc4   :  { %4855 = vmatprep.subr.bf16.mxu1 %v7396_v63 }
  0xc6   :  { %4825 = vmatpush1.bf16.msra.mxu0 %v7414_v5 }
  0xc7   :  { %4857 = vmatpush1.bf16.msra.mxu1 %v7418_v6  ;;  %4827 = vmatprep.subr.bf16.mxu0 %v7420_v7 }
  0xc8   :  { %4859 = vmatprep.subr.bf16.mxu1 %v7432_v12 }
  0xca   :  { %4829 = vmatpush1.bf16.msra.mxu0 %v7450_v20 }
  0xcb   :  { %4861 = vmatpush1.bf16.msra.mxu1 %v7454_v24  ;;  %4831 = vmatprep.subr.bf16.mxu0 %v7456_v25 }
  0xcc   :  { %4863 = vmatprep.subr.bf16.mxu1 %v7468_v30 }
  0xce   :  { %4833 = vmatpush1.bf16.msra.mxu0 %v7486_v40 }
  0xcf   :  { %4865 = vmatpush1.bf16.msra.mxu1 %v7490_v41  ;;  %4835 = vmatprep.subr.bf16.mxu0 %v7492_v42 }
  0xd0   :  { %4867 = vmatprep.subr.bf16.mxu1 %v7501_v48 }
  0xd2   :  { %4837 = vmatpush1.bf16.msra.mxu0 %v7510_v52 }
  0xd3   :  { %4869 = vmatpush1.bf16.msra.mxu1 %v7514_v53  ;;  %4871 = vmatprep.subr.bf16.mxu0 %v7238_v9 }
  0xd4   :  { %4903 = vmatprep.subr.bf16.mxu1 %v7249_v13 }
 0x168   :  { %v820_v54 = vpop.f32.mrb[0].mxu0 }
 0x169   :  { %v891_v55 = vpop.f32.mrb[0].mxu1  ;;  %v822_v56 = vpop.f32.mrb[1].mxu0  ;;  %v7571_v10 = vadd.f32 %v901_v3, %v820_v54 }
 0x16a   :  { %v893_v60 = vpop.f32.mrb[1].mxu1  ;;  %v7573_v11 = vadd.f32 %v905_v4, %v822_v56  ;;  %v7585_v43 = vadd.f32 %v909_v37, %v891_v55 }
 0x16b   :  { %v7580_v36 = vadd.f32 %v913_v19, %v893_v60 }
 0x188   :  { %v1052_v14 = vpop.f32.mrb[2].mxu0 }
 0x189   :  { %v1128_v15 = vadd.f32 %v1052_v14, %v7571_v10  ;;  %v1123_v17 = vpop.f32.mrb[2].mxu1  ;;  %v1054_v18 = vpop.f32.mrb[3].mxu0 }
 0x18a   :  { %v1129_v26 = vadd.f32 %v1054_v18, %v7573_v11  ;;  %v1125_v28 = vpop.f32.mrb[3].mxu1  ;;  %v1130_v49 = vadd.f32 %v1123_v17, %v7585_v43 }
 0x18b   :  { %v4438_v31 = vmul.f32 -1.442695, %v1128_v15  ;;  %v1131_v38 = vadd.f32 %v1125_v28, %v7580_v36 }
 0x18c   :  { %v4439_v32 = vmul.f32 -1.442695, %v1129_v26 }
 0x18d   :  { %5873 = vpow2.f32 %v4438_v31  ;;  %v4440_v44 = vmul.f32 -1.442695, %v1131_v38 }
 0x18e   :  { %5875 = vpow2.f32 %v4439_v32 }
 0x18f   :  { %5877 = vpow2.f32 %v4440_v44 }
 0x190   :  { %5879 = vtanh.f32 %v1130_v49 }
 0x197   :  { %v5874_v50 = vpop.eup %5873 }
 0x198   :  { %v5876_v54 = vpop.eup %5875  ;;  %v1135_v56 = vadd.f32 1.0, %v5874_v50 }
 0x199   :  { %v1141_v61 = vadd.f32 1.0, %v5876_v54  ;;  %v5878_v60 = vpop.eup %5877 }
 0x19a   :  { %5881 = vrcp.f32 %v1135_v56  ;;  %v5880_v3 = vpop.eup %5879  ;;  %v1148_v15 = vadd.f32 1.0, %v5878_v60 }
 0x19b   :  { %5883 = vrcp.f32 %v1141_v61 }
 0x19c   :  { %5885 = vrcp.f32 %v1148_v15 }
 0x1a4   :  { %v5882_v4 = vpop.eup %5881 }
 0x1a5   :  { %v5884_v14 = vpop.eup %5883  ;;  %v1152_v1 = vmul.f32 %v5882_v4, %v5880_v3 }
 0x1a6   :  { %v1151_v18 = vmul.f32 0.0, %v5884_v14  ;;  %v5886_v17 = vpop.eup %5885 }
 0x1a8   :  { %v7588_v55 = vadd.f32 %v1152_v1, %v1151_v18 }
 0x1aa   :  { %5887 = vtanh.f32 %v7588_v55 }
 0x1b4   :  { %v5888_v19 = vpop.eup %5887 }
 0x1b5   :  { %v7591_v26 = vmul.f32 %v5888_v19, %v5886_v17 }
 0x1b7   :  { %1221 = vmatmul.mubr.f32.vlgmr.msra.gmra.mrb[4].mxu0 %v7591_v26  ;;  %1292 = vmatmul.mubr.f32.vlgmr.msra.gmra.mrb[4].mxu1 %v7591_v26 }
 0x1b8   :  { %4873 = vmatpush1.bf16.msra.mxu0 %v7269_v21  ;;  %4905 = vmatpush1.bf16.msra.mxu1 %v7272_v22 }
 0x1b9   :  { %4875 = vmatprep.subr.bf16.mxu0 %v7274_v23  ;;  %4907 = vmatprep.subr.bf16.mxu1 %v7286_v27 }
 0x1ba   :  { %1408 = vmatprep.mubr.f32.mxu0 %v6168_v16  ;;  %1479 = vmatprep.mubr.f32.mxu1 %v6168_v16 }
 0x1bc   :  { %4877 = vmatpush1.bf16.msra.mxu0 %v7304_v33  ;;  %4909 = vmatpush1.bf16.msra.mxu1 %v7308_v34 }
 0x1bd   :  { %4879 = vmatprep.subr.bf16.mxu0 %v7310_v35  ;;  %4911 = vmatprep.subr.bf16.mxu1 %v7322_v39 }
 0x1c0   :  { %4881 = vmatpush1.bf16.msra.mxu0 %v7342_v45  ;;  %4913 = vmatpush1.bf16.msra.mxu1 %v7346_v46 }
 0x1c1   :  { %4883 = vmatprep.subr.bf16.mxu0 %v7348_v47  ;;  %4915 = vmatprep.subr.bf16.mxu1 %v7360_v51 }
 0x1c4   :  { %4885 = vmatpush1.bf16.msra.mxu0 %v7378_v57  ;;  %4917 = vmatpush1.bf16.msra.mxu1 %v7382_v58 }
 0x1c5   :  { %4887 = vmatprep.subr.bf16.mxu0 %v7384_v59  ;;  %4919 = vmatprep.subr.bf16.mxu1 %v7396_v63 }
 0x1c8   :  { %4889 = vmatpush1.bf16.msra.mxu0 %v7414_v5  ;;  %4921 = vmatpush1.bf16.msra.mxu1 %v7418_v6 }
 0x1c9   :  { %4891 = vmatprep.subr.bf16.mxu0 %v7420_v7  ;;  %4923 = vmatprep.subr.bf16.mxu1 %v7432_v12 }
 0x1cc   :  { %4893 = vmatpush1.bf16.msra.mxu0 %v7450_v20  ;;  %4925 = vmatpush1.bf16.msra.mxu1 %v7454_v24 }
 0x1cd   :  { %4895 = vmatprep.subr.bf16.mxu0 %v7456_v25  ;;  %4927 = vmatprep.subr.bf16.mxu1 %v7468_v30 }
 0x1d0   :  { %4897 = vmatpush1.bf16.msra.mxu0 %v7486_v40  ;;  %4929 = vmatpush1.bf16.msra.mxu1 %v7490_v41 }
 0x1d1   :  { %4899 = vmatprep.subr.bf16.mxu0 %v7492_v42  ;;  %4931 = vmatprep.subr.bf16.mxu1 %v7501_v48 }
 0x1d4   :  { %4901 = vmatpush1.bf16.msra.mxu0 %v7510_v52  ;;  %4933 = vmatpush1.bf16.msra.mxu1 %v7514_v53 }
 0x1d5   :  { %4935 = vmatprep.subr.bf16.mxu0 %v7238_v9  ;;  %4967 = vmatprep.subr.bf16.mxu1 %v7249_v13 }
 0x28a   :  { %v1222_v28 = vpop.f32.mrb[4].mxu0  ;;  %v1293_v31 = vpop.f32.mrb[4].mxu1 }
 0x28b   :  { %v1302_v32 = vrot.slane %v1222_v28, 7  ;;  %v1224_v37 = vpop.f32.mrb[5].mxu0  ;;  %v1295_v38 = vpop.f32.mrb[5].mxu1  ;;  %v1304_v3 = vrot.slane %v1293_v31, 7 }
 0x28c   :  { %v1303_v44 = vrot.slane %v1224_v37, 7  ;;  %v1305_v61 = vrot.slane %v1295_v38, 7  ;;  %v1334_v37 = vrot.slane %v7588_v55, 7 }
 0x28d   :  { %v1310_v49 = vadd.f32 %v1302_v32, %v7571_v10  ;;  %v1312_v14 = vadd.f32 %v1304_v3, %v7585_v43 }
 0x28e   :  { %v1311_v50 = vadd.f32 %v1303_v44, %v7573_v11  ;;  %v1313_v60 = vadd.f32 %v1305_v61, %v7580_v36 }
 0x28f   :  { %v4441_v54 = vmul.f32 -1.442695, %v1310_v49 }
 0x290   :  { %v4442_v56 = vmul.f32 -1.442695, %v1311_v50  ;;  %v4443_v4 = vmul.f32 -1.442695, %v1313_v60 }
 0x291   :  { %5889 = vpow2.f32 %v4441_v54 }
 0x292   :  { %5891 = vpow2.f32 %v4442_v56 }
 0x293   :  { %5893 = vpow2.f32 %v4443_v4 }
 0x294   :  { %5895 = vtanh.f32 %v1312_v14 }
 0x29b   :  { %v5890_v1 = vpop.eup %5889 }
 0x29c   :  { %v5892_v15 = vpop.eup %5891  ;;  %v1317_v18 = vadd.f32 1.0, %v5890_v1 }
 0x29d   :  { %v1323_v17 = vadd.f32 1.0, %v5892_v15  ;;  %v5894_v19 = vpop.eup %5893 }
 0x29e   :  { %5897 = vrcp.f32 %v1317_v18  ;;  %v5896_v28 = vpop.eup %5895  ;;  %v1330_v49 = vadd.f32 1.0, %v5894_v19 }
 0x29f   :  { %5899 = vrcp.f32 %v1323_v17 }
 0x2a0   :  { %5901 = vrcp.f32 %v1330_v49 }
 0x2a8   :  { %v5898_v32 = vpop.eup %5897 }
 0x2a9   :  { %v5900_v38 = vpop.eup %5899  ;;  %v1337_v44 = vmul.f32 %v5898_v32, %v5896_v28 }
 0x2aa   :  { %v1336_v31 = vmul.f32 %v5900_v38, %v1334_v37  ;;  %v5902_v54 = vpop.eup %5901 }
 0x2ac   :  { %v7634_v50 = vadd.f32 %v1337_v44, %v1336_v31 }
 0x2ae   :  { %5903 = vtanh.f32 %v7634_v50 }
 0x2b8   :  { %v5904_v56 = vpop.eup %5903 }
 0x2b9   :  { %v7637_v61 = vmul.f32 %v5904_v56, %v5902_v54 }
 0x2bb   :  { %v1342_v60 = vrot.slane %v7637_v61, 1 }
 0x2bd   :  { %1409 = vmatmul.mubr.f32.vlgmr.msra.gmra.mrb[6].mxu0 %v1342_v60  ;;  %1480 = vmatmul.mubr.f32.vlgmr.msra.gmra.mrb[6].mxu1 %v1342_v60 }
 0x2be   :  { %4937 = vmatpush1.bf16.msra.mxu0 %v7269_v21  ;;  %4969 = vmatpush1.bf16.msra.mxu1 %v7272_v22 }
 0x2bf   :  { %4939 = vmatprep.subr.bf16.mxu0 %v7274_v23  ;;  %4971 = vmatprep.subr.bf16.mxu1 %v7286_v27 }
 0x2c0   :  { %1596 = vmatprep.mubr.f32.mxu0 %v6168_v16  ;;  %1667 = vmatprep.mubr.f32.mxu1 %v6168_v16 }
 0x2c2   :  { %4941 = vmatpush1.bf16.msra.mxu0 %v7304_v33  ;;  %4973 = vmatpush1.bf16.msra.mxu1 %v7308_v34 }
 0x2c3   :  { %4943 = vmatprep.subr.bf16.mxu0 %v7310_v35  ;;  %4975 = vmatprep.subr.bf16.mxu1 %v7322_v39 }
 0x2c6   :  { %4945 = vmatpush1.bf16.msra.mxu0 %v7342_v45  ;;  %4977 = vmatpush1.bf16.msra.mxu1 %v7346_v46 }
 0x2c7   :  { %4947 = vmatprep.subr.bf16.mxu0 %v7348_v47  ;;  %4979 = vmatprep.subr.bf16.mxu1 %v7360_v51 }
 0x2ca   :  { %4949 = vmatpush1.bf16.msra.mxu0 %v7378_v57  ;;  %4981 = vmatpush1.bf16.msra.mxu1 %v7382_v58 }
 0x2cb   :  { %4951 = vmatprep.subr.bf16.mxu0 %v7384_v59  ;;  %4983 = vmatprep.subr.bf16.mxu1 %v7396_v63 }
 0x2ce   :  { %4953 = vmatpush1.bf16.msra.mxu0 %v7414_v5  ;;  %4985 = vmatpush1.bf16.msra.mxu1 %v7418_v6 }
 0x2cf   :  { %4955 = vmatprep.subr.bf16.mxu0 %v7420_v7  ;;  %4987 = vmatprep.subr.bf16.mxu1 %v7432_v12 }
 0x2d2   :  { %4957 = vmatpush1.bf16.msra.mxu0 %v7450_v20  ;;  %4989 = vmatpush1.bf16.msra.mxu1 %v7454_v24 }
 0x2d3   :  { %4959 = vmatprep.subr.bf16.mxu0 %v7456_v25  ;;  %4991 = vmatprep.subr.bf16.mxu1 %v7468_v30 }
 0x2d6   :  { %4961 = vmatpush1.bf16.msra.mxu0 %v7486_v40  ;;  %4993 = vmatpush1.bf16.msra.mxu1 %v7490_v41 }
 0x2d7   :  { %4963 = vmatprep.subr.bf16.mxu0 %v7492_v42  ;;  %4995 = vmatprep.subr.bf16.mxu1 %v7501_v48 }
 0x2da   :  { %4965 = vmatpush1.bf16.msra.mxu0 %v7510_v52  ;;  %4997 = vmatpush1.bf16.msra.mxu1 %v7514_v53 }
 0x2db   :  { %4999 = vmatprep.subr.bf16.mxu0 %v7238_v9  ;;  %5031 = vmatprep.subr.bf16.mxu1 %v7249_v13 }
 0x390   :  { %v1410_v55 = vpop.f32.mrb[6].mxu0  ;;  %v1481_v3 = vpop.f32.mrb[6].mxu1 }
 0x391   :  { %v1490_v4 = vrot.slane %v1410_v55, 6  ;;  %v1412_v14 = vpop.f32.mrb[7].mxu0  ;;  %v1483_v1 = vpop.f32.mrb[7].mxu1  ;;  %v1492_v38 = vrot.slane %v1481_v3, 6 }
 0x392   :  { %v1491_v15 = vrot.slane %v1412_v14, 6  ;;  %v1493_v32 = vrot.slane %v1483_v1, 6  ;;  %v1522_v1 = vrot.slane %v7634_v50, 7 }
 0x393   :  { %v1498_v18 = vadd.f32 %v1490_v4, %v7571_v10  ;;  %v1500_v49 = vadd.f32 %v1492_v38, %v7585_v43  ;;  %v2469_v38 = vsel %vm185_vm0, %v7591_v26, %v7637_v61 }
 0x394   :  { %v1499_v17 = vadd.f32 %v1491_v15, %v7573_v11  ;;  %v1501_v37 = vadd.f32 %v1493_v32, %v7580_v36 }
 0x395   :  { %v4444_v19 = vmul.f32 -1.442695, %v1498_v18 }
 0x396   :  { %v4445_v28 = vmul.f32 -1.442695, %v1499_v17  ;;  %v4446_v44 = vmul.f32 -1.442695, %v1501_v37 }
 0x397   :  { %5905 = vpow2.f32 %v4444_v19 }
 0x398   :  { %5907 = vpow2.f32 %v4445_v28 }
 0x399   :  { %5909 = vpow2.f32 %v4446_v44 }
 0x39a   :  { %5911 = vtanh.f32 %v1500_v49 }
 0x3a1   :  { %v5906_v31 = vpop.eup %5905 }
 0x3a2   :  { %v5908_v54 = vpop.eup %5907  ;;  %v1505_v56 = vadd.f32 1.0, %v5906_v31 }
 0x3a3   :  { %v1511_v60 = vadd.f32 1.0, %v5908_v54  ;;  %v5910_v55 = vpop.eup %5909 }
 0x3a4   :  { %5913 = vrcp.f32 %v1505_v56  ;;  %v5912_v4 = vpop.eup %5911  ;;  %v1518_v17 = vadd.f32 1.0, %v5910_v55 }
 0x3a5   :  { %5915 = vrcp.f32 %v1511_v60 }
 0x3a6   :  { %5917 = vrcp.f32 %v1518_v17 }
 0x3ae   :  { %v5914_v14 = vpop.eup %5913 }
 0x3af   :  { %v5916_v15 = vpop.eup %5915  ;;  %v1525_v18 = vmul.f32 %v5914_v14, %v5912_v4 }
 0x3b0   :  { %v1524_v3 = vmul.f32 %v5916_v15, %v1522_v1  ;;  %v5918_v28 = vpop.eup %5917 }
 0x3b2   :  { %v7679_v19 = vadd.f32 %v1525_v18, %v1524_v3 }
 0x3b4   :  { %5919 = vtanh.f32 %v7679_v19 }
 0x3be   :  { %v5920_v32 = vpop.eup %5919 }
 0x3bf   :  { %v1528_v37 = vmul.f32 %v5920_v32, %v5918_v28 }
 0x3c1   :  { %v1530_v44 = vrot.slane %v1528_v37, 2  ;;  %v7686_v49 = vsel %vm189_vm1, %v2469_v38, %v1528_v37 }
 0x3c3   :  { %1597 = vmatmul.mubr.f32.vlgmr.msra.gmra.mrb[8].mxu0 %v1530_v44  ;;  %1668 = vmatmul.mubr.f32.vlgmr.msra.gmra.mrb[8].mxu1 %v1530_v44 }
 0x3c4   :  { %5001 = vmatpush1.bf16.msra.mxu0 %v7269_v21  ;;  %5033 = vmatpush1.bf16.msra.mxu1 %v7272_v22 }
 0x3c5   :  { %5003 = vmatprep.subr.bf16.mxu0 %v7274_v23  ;;  %5035 = vmatprep.subr.bf16.mxu1 %v7286_v27 }
 0x3c6   :  { %1784 = vmatprep.mubr.f32.mxu0 %v6168_v16  ;;  %1855 = vmatprep.mubr.f32.mxu1 %v6168_v16 }
 0x3c8   :  { %5005 = vmatpush1.bf16.msra.mxu0 %v7304_v33  ;;  %5037 = vmatpush1.bf16.msra.mxu1 %v7308_v34 }
 0x3c9   :  { %5007 = vmatprep.subr.bf16.mxu0 %v7310_v35  ;;  %5039 = vmatprep.subr.bf16.mxu1 %v7322_v39 }
 0x3cc   :  { %5009 = vmatpush1.bf16.msra.mxu0 %v7342_v45  ;;  %5041 = vmatpush1.bf16.msra.mxu1 %v7346_v46 }
 0x3cd   :  { %5011 = vmatprep.subr.bf16.mxu0 %v7348_v47  ;;  %5043 = vmatprep.subr.bf16.mxu1 %v7360_v51 }
 0x3d0   :  { %5013 = vmatpush1.bf16.msra.mxu0 %v7378_v57  ;;  %5045 = vmatpush1.bf16.msra.mxu1 %v7382_v58 }
 0x3d1   :  { %5015 = vmatprep.subr.bf16.mxu0 %v7384_v59  ;;  %5047 = vmatprep.subr.bf16.mxu1 %v7396_v63 }
 0x3d4   :  { %5017 = vmatpush1.bf16.msra.mxu0 %v7414_v5  ;;  %5049 = vmatpush1.bf16.msra.mxu1 %v7418_v6 }
 0x3d5   :  { %5019 = vmatprep.subr.bf16.mxu0 %v7420_v7  ;;  %5051 = vmatprep.subr.bf16.mxu1 %v7432_v12 }
 0x3d8   :  { %5021 = vmatpush1.bf16.msra.mxu0 %v7450_v20  ;;  %5053 = vmatpush1.bf16.msra.mxu1 %v7454_v24 }
 0x3d9   :  { %5023 = vmatprep.subr.bf16.mxu0 %v7456_v25  ;;  %5055 = vmatprep.subr.bf16.mxu1 %v7468_v30 }
 0x3dc   :  { %5025 = vmatpush1.bf16.msra.mxu0 %v7486_v40  ;;  %5057 = vmatpush1.bf16.msra.mxu1 %v7490_v41 }
 0x3dd   :  { %5027 = vmatprep.subr.bf16.mxu0 %v7492_v42  ;;  %5059 = vmatprep.subr.bf16.mxu1 %v7501_v48 }
 0x3e0   :  { %5029 = vmatpush1.bf16.msra.mxu0 %v7510_v52  ;;  %5061 = vmatpush1.bf16.msra.mxu1 %v7514_v53 }
 0x3e1   :  { %5063 = vmatprep.subr.bf16.mxu0 %v7238_v9  ;;  %5095 = vmatprep.subr.bf16.mxu1 %v7249_v13 }
 0x496   :  { %v1598_v26 = vpop.f32.mrb[8].mxu0  ;;  %v1669_v50 = vpop.f32.mrb[8].mxu1 }
 0x497   :  { %v1678_v61 = vrot.slane %v1598_v26, 5  ;;  %v1600_v31 = vpop.f32.mrb[9].mxu0  ;;  %v1671_v54 = vpop.f32.mrb[9].mxu1  ;;  %v1680_v18 = vrot.slane %v1669_v50, 5 }
 0x498   :  { %v1679_v56 = vrot.slane %v1600_v31, 5  ;;  %v1681_v1 = vrot.slane %v1671_v54, 5  ;;  %v1710_v31 = vrot.slane %v7679_v19, 7 }
 0x499   :  { %v1686_v60 = vadd.f32 %v1678_v61, %v7571_v10  ;;  %v1688_v3 = vadd.f32 %v1680_v18, %v7585_v43 }
 0x49a   :  { %v1687_v55 = vadd.f32 %v1679_v56, %v7573_v11  ;;  %v1689_v15 = vadd.f32 %v1681_v1, %v7580_v36 }
 0x49b   :  { %v4447_v4 = vmul.f32 -1.442695, %v1686_v60 }
 0x49c   :  { %v4448_v14 = vmul.f32 -1.442695, %v1687_v55  ;;  %v4449_v17 = vmul.f32 -1.442695, %v1689_v15 }
 0x49d   :  { %5921 = vpow2.f32 %v4447_v4 }
 0x49e   :  { %5923 = vpow2.f32 %v4448_v14 }
 0x49f   :  { %5925 = vpow2.f32 %v4449_v17 }
 0x4a0   :  { %5927 = vtanh.f32 %v1688_v3 }
 0x4a7   :  { %v5922_v28 = vpop.eup %5921 }
 0x4a8   :  { %v5924_v32 = vpop.eup %5923  ;;  %v1693_v37 = vadd.f32 1.0, %v5922_v28 }
 0x4a9   :  { %v1699_v38 = vadd.f32 1.0, %v5924_v32  ;;  %v5926_v44 = vpop.eup %5925 }
 0x4aa   :  { %5929 = vrcp.f32 %v1693_v37  ;;  %v5928_v26 = vpop.eup %5927  ;;  %v1706_v60 = vadd.f32 1.0, %v5926_v44 }
 0x4ab   :  { %5931 = vrcp.f32 %v1699_v38 }
 0x4ac   :  { %5933 = vrcp.f32 %v1706_v60 }
 0x4b4   :  { %v5930_v61 = vpop.eup %5929 }
 0x4b5   :  { %v5932_v54 = vpop.eup %5931  ;;  %v1713_v56 = vmul.f32 %v5930_v61, %v5928_v26 }
 0x4b6   :  { %v1712_v50 = vmul.f32 %v5932_v54, %v1710_v31  ;;  %v5934_v4 = vpop.eup %5933 }
 0x4b8   :  { %v7727_v55 = vadd.f32 %v1713_v56, %v1712_v50 }
 0x4ba   :  { %5935 = vtanh.f32 %v7727_v55 }
 0x4c4   :  { %v5936_v14 = vpop.eup %5935 }
 0x4c5   :  { %v1716_v1 = vmul.f32 %v5936_v14, %v5934_v4 }
 0x4c7   :  { %v1718_v15 = vrot.slane %v1716_v1, 3  ;;  %v7732_v18 = vsel %vm193_vm2, %v7686_v49, %v1716_v1 }
 0x4c9   :  { %1785 = vmatmul.mubr.f32.vlgmr.msra.gmra.mrb[10].mxu0 %v1718_v15  ;;  %1856 = vmatmul.mubr.f32.vlgmr.msra.gmra.mrb[10].mxu1 %v1718_v15 }
 0x4ca   :  { %5065 = vmatpush1.bf16.msra.mxu0 %v7269_v21  ;;  %5097 = vmatpush1.bf16.msra.mxu1 %v7272_v22 }
 0x4cb   :  { %5067 = vmatprep.subr.bf16.mxu0 %v7274_v23  ;;  %5099 = vmatprep.subr.bf16.mxu1 %v7286_v27 }
 0x4cc   :  { %1972 = vmatprep.mubr.f32.mxu0 %v6168_v16  ;;  %2043 = vmatprep.mubr.f32.mxu1 %v6168_v16 }
 0x4ce   :  { %5069 = vmatpush1.bf16.msra.mxu0 %v7304_v33  ;;  %5101 = vmatpush1.bf16.msra.mxu1 %v7308_v34 }
 0x4cf   :  { %5071 = vmatprep.subr.bf16.mxu0 %v7310_v35  ;;  %5103 = vmatprep.subr.bf16.mxu1 %v7322_v39 }
 0x4d2   :  { %5073 = vmatpush1.bf16.msra.mxu0 %v7342_v45  ;;  %5105 = vmatpush1.bf16.msra.mxu1 %v7346_v46 }
 0x4d3   :  { %5075 = vmatprep.subr.bf16.mxu0 %v7348_v47  ;;  %5107 = vmatprep.subr.bf16.mxu1 %v7360_v51 }
 0x4d6   :  { %5077 = vmatpush1.bf16.msra.mxu0 %v7378_v57  ;;  %5109 = vmatpush1.bf16.msra.mxu1 %v7382_v58 }
 0x4d7   :  { %5079 = vmatprep.subr.bf16.mxu0 %v7384_v59  ;;  %5111 = vmatprep.subr.bf16.mxu1 %v7396_v63 }
 0x4da   :  { %5081 = vmatpush1.bf16.msra.mxu0 %v7414_v5  ;;  %5113 = vmatpush1.bf16.msra.mxu1 %v7418_v6 }
 0x4db   :  { %5083 = vmatprep.subr.bf16.mxu0 %v7420_v7  ;;  %5115 = vmatprep.subr.bf16.mxu1 %v7432_v12 }
 0x4de   :  { %5085 = vmatpush1.bf16.msra.mxu0 %v7450_v20  ;;  %5117 = vmatpush1.bf16.msra.mxu1 %v7454_v24 }
 0x4df   :  { %5087 = vmatprep.subr.bf16.mxu0 %v7456_v25  ;;  %5119 = vmatprep.subr.bf16.mxu1 %v7468_v30 }
 0x4e2   :  { %5089 = vmatpush1.bf16.msra.mxu0 %v7486_v40  ;;  %5121 = vmatpush1.bf16.msra.mxu1 %v7490_v41 }
 0x4e3   :  { %5091 = vmatprep.subr.bf16.mxu0 %v7492_v42  ;;  %5123 = vmatprep.subr.bf16.mxu1 %v7501_v48 }
 0x4e6   :  { %5093 = vmatpush1.bf16.msra.mxu0 %v7510_v52  ;;  %5125 = vmatpush1.bf16.msra.mxu1 %v7514_v53 }
 0x4e7   :  { %5127 = vmatprep.subr.bf16.mxu0 %v7238_v9  ;;  %5159 = vmatprep.subr.bf16.mxu1 %v7249_v13 }
 0x59c   :  { %v1786_v19 = vpop.f32.mrb[10].mxu0  ;;  %v1857_v49 = vpop.f32.mrb[10].mxu1 }
 0x59d   :  { %v1866_v17 = vrot.slane %v1786_v19, 4  ;;  %v1788_v3 = vpop.f32.mrb[11].mxu0  ;;  %v1859_v28 = vpop.f32.mrb[11].mxu1  ;;  %v1868_v54 = vrot.slane %v1857_v49, 4 }
 0x59e   :  { %v1867_v32 = vrot.slane %v1788_v3, 4  ;;  %v1869_v61 = vrot.slane %v1859_v28, 4  ;;  %v1898_v3 = vrot.slane %v7727_v55, 7 }
 0x59f   :  { %v1874_v37 = vadd.f32 %v1866_v17, %v7571_v10  ;;  %v1876_v60 = vadd.f32 %v1868_v54, %v7585_v43 }
 0x5a0   :  { %v1875_v38 = vadd.f32 %v1867_v32, %v7573_v11  ;;  %v1877_v31 = vadd.f32 %v1869_v61, %v7580_v36 }
 0x5a1   :  { %v4450_v44 = vmul.f32 -1.442695, %v1874_v37 }
 0x5a2   :  { %v4451_v26 = vmul.f32 -1.442695, %v1875_v38  ;;  %v4452_v56 = vmul.f32 -1.442695, %v1877_v31 }
 0x5a3   :  { %5937 = vpow2.f32 %v4450_v44 }
 0x5a4   :  { %5939 = vpow2.f32 %v4451_v26 }
 0x5a5   :  { %5941 = vpow2.f32 %v4452_v56 }
 0x5a6   :  { %5943 = vtanh.f32 %v1876_v60 }
 0x5ad   :  { %v5938_v50 = vpop.eup %5937 }
 0x5ae   :  { %v5940_v4 = vpop.eup %5939  ;;  %v1881_v14 = vadd.f32 1.0, %v5938_v50 }
 0x5af   :  { %v1887_v1 = vadd.f32 1.0, %v5940_v4  ;;  %v5942_v15 = vpop.eup %5941 }
 0x5b0   :  { %5945 = vrcp.f32 %v1881_v14  ;;  %v5944_v19 = vpop.eup %5943  ;;  %v1894_v37 = vadd.f32 1.0, %v5942_v15 }
 0x5b1   :  { %5947 = vrcp.f32 %v1887_v1 }
 0x5b2   :  { %5949 = vrcp.f32 %v1894_v37 }
 0x5ba   :  { %v5946_v17 = vpop.eup %5945 }
 0x5bb   :  { %v5948_v28 = vpop.eup %5947  ;;  %v1901_v32 = vmul.f32 %v5946_v17, %v5944_v19 }
 0x5bc   :  { %v1900_v49 = vmul.f32 %v5948_v28, %v1898_v3  ;;  %v5950_v44 = vpop.eup %5949 }
 0x5be   :  { %v7773_v38 = vadd.f32 %v1901_v32, %v1900_v49 }
 0x5c0   :  { %5951 = vtanh.f32 %v7773_v38 }
 0x5ca   :  { %v5952_v26 = vpop.eup %5951 }
 0x5cb   :  { %v1904_v61 = vmul.f32 %v5952_v26, %v5950_v44 }
 0x5cd   :  { %v1906_v31 = vrot.slane %v1904_v61, 4  ;;  %v7778_v54 = vsel %vm197_vm3, %v7732_v18, %v1904_v61 }
 0x5cf   :  { %1973 = vmatmul.mubr.f32.vlgmr.msra.gmra.mrb[12].mxu0 %v1906_v31  ;;  %2044 = vmatmul.mubr.f32.vlgmr.msra.gmra.mrb[12].mxu1 %v1906_v31 }
 0x5d0   :  { %5129 = vmatpush1.bf16.msra.mxu0 %v7269_v21  ;;  %5161 = vmatpush1.bf16.msra.mxu1 %v7272_v22 }
 0x5d1   :  { %5131 = vmatprep.subr.bf16.mxu0 %v7274_v23  ;;  %5163 = vmatprep.subr.bf16.mxu1 %v7286_v27 }
 0x5d2   :  { %2160 = vmatprep.mubr.f32.mxu0 %v6168_v16  ;;  %2231 = vmatprep.mubr.f32.mxu1 %v6168_v16 }
 0x5d4   :  { %5133 = vmatpush1.bf16.msra.mxu0 %v7304_v33  ;;  %5165 = vmatpush1.bf16.msra.mxu1 %v7308_v34 }
 0x5d5   :  { %5135 = vmatprep.subr.bf16.mxu0 %v7310_v35  ;;  %5167 = vmatprep.subr.bf16.mxu1 %v7322_v39 }
 0x5d8   :  { %5137 = vmatpush1.bf16.msra.mxu0 %v7342_v45  ;;  %5169 = vmatpush1.bf16.msra.mxu1 %v7346_v46 }
 0x5d9   :  { %5139 = vmatprep.subr.bf16.mxu0 %v7348_v47  ;;  %5171 = vmatprep.subr.bf16.mxu1 %v7360_v51 }
 0x5dc   :  { %5141 = vmatpush1.bf16.msra.mxu0 %v7378_v57  ;;  %5173 = vmatpush1.bf16.msra.mxu1 %v7382_v58 }
 0x5dd   :  { %5143 = vmatprep.subr.bf16.mxu0 %v7384_v59  ;;  %5175 = vmatprep.subr.bf16.mxu1 %v7396_v63 }
 0x5e0   :  { %5145 = vmatpush1.bf16.msra.mxu0 %v7414_v5  ;;  %5177 = vmatpush1.bf16.msra.mxu1 %v7418_v6 }
 0x5e1   :  { %5147 = vmatprep.subr.bf16.mxu0 %v7420_v7  ;;  %5179 = vmatprep.subr.bf16.mxu1 %v7432_v12 }
 0x5e4   :  { %5149 = vmatpush1.bf16.msra.mxu0 %v7450_v20  ;;  %5181 = vmatpush1.bf16.msra.mxu1 %v7454_v24 }
 0x5e5   :  { %5151 = vmatprep.subr.bf16.mxu0 %v7456_v25  ;;  %5183 = vmatprep.subr.bf16.mxu1 %v7468_v30 }
 0x5e8   :  { %5153 = vmatpush1.bf16.msra.mxu0 %v7486_v40  ;;  %5185 = vmatpush1.bf16.msra.mxu1 %v7490_v41 }
 0x5e9   :  { %5155 = vmatprep.subr.bf16.mxu0 %v7492_v42  ;;  %5187 = vmatprep.subr.bf16.mxu1 %v7501_v48 }
 0x5ec   :  { %5157 = vmatpush1.bf16.msra.mxu0 %v7510_v52  ;;  %5189 = vmatpush1.bf16.msra.mxu1 %v7514_v53 }
 0x5ed   :  { %5191 = vmatprep.subr.bf16.mxu0 %v7238_v9  ;;  %5223 = vmatprep.subr.bf16.mxu1 %v7249_v13 }
 0x6a2   :  { %v1974_v55 = vpop.f32.mrb[12].mxu0  ;;  %v2045_v18 = vpop.f32.mrb[12].mxu1 }
 0x6a3   :  { %v2054_v56 = vrot.slane %v1974_v55, 3  ;;  %v1976_v60 = vpop.f32.mrb[13].mxu0  ;;  %v2047_v50 = vpop.f32.mrb[13].mxu1  ;;  %v2056_v9 = vrot.slane %v2045_v18, 3  ;;  %v2086_v55 = vrot.slane %v7773_v38, 7 }
 0x6a4   :  { %v2055_v4 = vrot.slane %v1976_v60, 3  ;;  %v2057_v17 = vrot.slane %v2047_v50, 3 }
 0x6a5   :  { %v2062_v14 = vadd.f32 %v2054_v56, %v7571_v10  ;;  %v2064_v13 = vadd.f32 %v2056_v9, %v7585_v43  ;;  %v2477_v9 = vld [vmem:[%s8859_s26 + $0x8] sm:$0xff] }
 0x6a6   :  { %v2063_v1 = vadd.f32 %v2055_v4, %v7573_v11  ;;  %v2065_v3 = vadd.f32 %v2057_v17, %v7580_v36 }
 0x6a7   :  { %v4453_v15 = vmul.f32 -1.442695, %v2062_v14 }
 0x6a8   :  { %v4454_v19 = vmul.f32 -1.442695, %v2063_v1  ;;  %v4455_v28 = vmul.f32 -1.442695, %v2065_v3 }
 0x6a9   :  { %5953 = vpow2.f32 %v4453_v15 }
 0x6aa   :  { %5955 = vpow2.f32 %v4454_v19 }
 0x6ab   :  { %5957 = vpow2.f32 %v4455_v28  ;;  %v2481_v28 = vld [vmem:[%s8859_s26 + $0x28] sm:$0xff] }
 0x6ac   :  { %5959 = vtanh.f32 %v2064_v13  ;;  %v2479_v13 = vld [vmem:[%s8859_s26 + $0x18] sm:$0xff] }
 0x6b3   :  { %v5954_v32 = vpop.eup %5953 }
 0x6b4   :  { %v5956_v37 = vpop.eup %5955  ;;  %v2069_v49 = vadd.f32 1.0, %v5954_v32  ;;  %v5254_v32 = vpack.c.bf16 %v2481_v28, %v2477_v9  ;;  %v2515_v9 = vld [vmem:[%s8859_s26 + $0x138] sm:$0xff]  ;;  %v2508_v28 = vld [vmem:[%s8859_s26 + $0x100] sm:$0xff] }
 0x6b5   :  { %v2075_v44 = vadd.f32 1.0, %v5956_v37  ;;  %v5958_v26 = vpop.eup %5957  ;;  %v2483_v37 = vld [vmem:[%s8859_s26 + $0x38] sm:$0xff] }
 0x6b6   :  { %5961 = vrcp.f32 %v2069_v49  ;;  %v5960_v61 = vpop.eup %5959  ;;  %v2082_v50 = vadd.f32 1.0, %v5958_v26  ;;  %v2476_v49 = vld [vmem:[%s8859_s26] sm:$0xff]  ;;  %v5286_v26 = vpack.c.bf16 %v2483_v37, %v2479_v13 }
 0x6b7   :  { %5963 = vrcp.f32 %v2075_v44  ;;  %v2480_v44 = vld [vmem:[%s8859_s26 + $0x20] sm:$0xff] }
 0x6b8   :  { %5965 = vrcp.f32 %v2082_v50  ;;  %v2489_v50 = vld [vmem:[%s8859_s26 + $0x68] sm:$0xff]  ;;  %v2512_v13 = vld [vmem:[%s8859_s26 + $0x120] sm:$0xff] }
 0x6b9   :  { %v5272_v37 = vpack.c.bf16 %v2512_v13, %v2508_v28 }
 0x6c0   :  { %v5962_v31 = vpop.eup %5961 }
 0x6c1   :  { %v5964_v56 = vpop.eup %5963  ;;  %v2089_v60 = vmul.f32 %v5962_v31, %v5960_v61  ;;  %v5256_v61 = vpack.c.bf16 %v2480_v44, %v2476_v49  ;;  %v2478_v31 = vld [vmem:[%s8859_s26 + $0x10] sm:$0xff] }
 0x6c2   :  { %v2088_v18 = vmul.f32 %v5964_v56, %v2086_v55  ;;  %v5966_v14 = vpop.eup %5965  ;;  %v2482_v55 = vld [vmem:[%s8859_s26 + $0x30] sm:$0xff] }
 0x6c3   :  { %v5288_v56 = vpack.c.bf16 %v2482_v55, %v2478_v31  ;;  %v2510_v49 = vld [vmem:[%s8859_s26 + $0x110] sm:$0xff]  ;;  %v2521_v31 = vld [vmem:[%s8859_s26 + $0x168] sm:$0xff]  ;;  %v2519_v55 = vld [vmem:[%s8859_s26 + $0x158] sm:$0xff] }
 0x6c4   :  { %v7819_v4 = vadd.f32 %v2089_v60, %v2088_v18  ;;  %v2485_v60 = vld [vmem:[%s8859_s26 + $0x48] sm:$0xff]  ;;  %v2487_v18 = vld [vmem:[%s8859_s26 + $0x58] sm:$0xff]  ;;  %v2514_v44 = vld [vmem:[%s8859_s26 + $0x130] sm:$0xff] }
 0x6c6   :  { %5967 = vtanh.f32 %v7819_v4 }
 0x6d0   :  { %v5968_v1 = vpop.eup %5967 }
 0x6d1   :  { %v2092_v15 = vmul.f32 %v5968_v1, %v5966_v14  ;;  %v2491_v14 = vld [vmem:[%s8859_s26 + $0x78] sm:$0xff]  ;;  %v2484_v1 = vld [vmem:[%s8859_s26 + $0x40] sm:$0xff] }
 0x6d3   :  { %v2094_v19 = vrot.slane %v2092_v15, 5  ;;  %v7824_v17 = vsel %vm201_vm4, %v7778_v54, %v2092_v15  ;;  %v2488_v15 = vld [vmem:[%s8859_s26 + $0x60] sm:$0xff] }
 0x6d5   :  { %2161 = vmatmul.mubr.f32.vlgmr.msra.gmra.mrb[14].mxu0 %v2094_v19  ;;  %2232 = vmatmul.mubr.f32.vlgmr.msra.gmra.mrb[14].mxu1 %v2094_v19  ;;  %v5290_v19 = vpack.c.bf16 %v2491_v14, %v2487_v18  ;;  %v2516_v18 = vld [vmem:[%s8859_s26 + $0x140] sm:$0xff]  ;;  %v2518_v14 = vld [vmem:[%s8859_s26 + $0x150] sm:$0xff] }
 0x6d6   :  { %5193 = vmatpush1.bf16.msra.mxu0 %v7269_v21  ;;  %5225 = vmatpush1.bf16.msra.mxu1 %v7272_v22 }
 0x6d7   :  { %5195 = vmatprep.subr.bf16.mxu0 %v7274_v23  ;;  %5227 = vmatprep.subr.bf16.mxu1 %v7286_v27 }
 0x6d8   :  { %2348 = vmatprep.mubr.f32.mxu0 %v6168_v16  ;;  %2419 = vmatprep.mubr.f32.mxu1 %v6168_v16 }
 0x6da   :  { %5197 = vmatpush1.bf16.msra.mxu0 %v7304_v33  ;;  %5229 = vmatpush1.bf16.msra.mxu1 %v7308_v34 }
 0x6db   :  { %5199 = vmatprep.subr.bf16.mxu0 %v7310_v35  ;;  %5231 = vmatprep.subr.bf16.mxu1 %v7322_v39 }
 0x6de   :  { %5201 = vmatpush1.bf16.msra.mxu0 %v7342_v45  ;;  %5233 = vmatpush1.bf16.msra.mxu1 %v7346_v46 }
 0x6df   :  { %5203 = vmatprep.subr.bf16.mxu0 %v7348_v47  ;;  %5235 = vmatprep.subr.bf16.mxu1 %v7360_v51 }
 0x6e2   :  { %5205 = vmatpush1.bf16.msra.mxu0 %v7378_v57  ;;  %5237 = vmatpush1.bf16.msra.mxu1 %v7382_v58 }
 0x6e3   :  { %5207 = vmatprep.subr.bf16.mxu0 %v7384_v59  ;;  %5239 = vmatprep.subr.bf16.mxu1 %v7396_v63 }
 0x6e6   :  { %5209 = vmatpush1.bf16.msra.mxu0 %v7414_v5  ;;  %5241 = vmatpush1.bf16.msra.mxu1 %v7418_v6 }
 0x6e7   :  { %5211 = vmatprep.subr.bf16.mxu0 %v7420_v7  ;;  %5243 = vmatprep.subr.bf16.mxu1 %v7432_v12 }
 0x6ea   :  { %5213 = vmatpush1.bf16.msra.mxu0 %v7450_v20  ;;  %5245 = vmatpush1.bf16.msra.mxu1 %v7454_v24 }
 0x6eb   :  { %5215 = vmatprep.subr.bf16.mxu0 %v7456_v25  ;;  %5247 = vmatprep.subr.bf16.mxu1 %v7468_v30  ;;  %v2274_v25 = vrot.slane %v7819_v4, 7  ;;  %v5258_v4 = vpack.c.bf16 %v2489_v50, %v2485_v60 }
 0x6ee   :  { %5217 = vmatpush1.bf16.msra.mxu0 %v7486_v40  ;;  %5249 = vmatpush1.bf16.msra.mxu1 %v7490_v41 }
 0x6ef   :  { %5219 = vmatprep.subr.bf16.mxu0 %v7492_v42  ;;  %5251 = vmatprep.subr.bf16.mxu1 %v7501_v48 }
 0x6f2   :  { %5221 = vmatpush1.bf16.msra.mxu0 %v7510_v52  ;;  %5253 = vmatpush1.bf16.msra.mxu1 %v7514_v53 }
 0x6f3   :  { %5255 = vmatprep.subr.bf16.mxu0 %v5254_v32  ;;  %5287 = vmatprep.subr.bf16.mxu1 %v5286_v26  ;;  %v2517_v26 = vld [vmem:[%s8859_s26 + $0x148] sm:$0xff] }
 0x6f4   :  { %v5274_v60 = vpack.c.bf16 %v2521_v31, %v2517_v26 }
 0x7a8   :  { %v2162_v21 = vpop.f32.mrb[14].mxu0  ;;  %v2233_v22 = vpop.f32.mrb[14].mxu1 }
 0x7a9   :  { %v2242_v23 = vrot.slane %v2162_v21, 2  ;;  %v2164_v27 = vpop.f32.mrb[15].mxu0  ;;  %v2235_v33 = vpop.f32.mrb[15].mxu1  ;;  %v2244_v57 = vrot.slane %v2233_v22, 2  ;;  %v2486_v21 = vld [vmem:[%s8859_s26 + $0x50] sm:$0xff] }
 0x7aa   :  { %v2243_v34 = vrot.slane %v2164_v27, 2  ;;  %v2245_v47 = vrot.slane %v2235_v33, 2  ;;  %v2490_v22 = vld [vmem:[%s8859_s26 + $0x70] sm:$0xff]  ;;  %v2493_v27 = vld [vmem:[%s8859_s26 + $0x88] sm:$0xff] }
 0x7ab   :  { %v2250_v35 = vadd.f32 %v2242_v23, %v7571_v10  ;;  %v2252_v59 = vadd.f32 %v2244_v57, %v7585_v43  ;;  %v5292_v23 = vpack.c.bf16 %v2490_v22, %v2486_v21  ;;  %v2497_v33 = vld [vmem:[%s8859_s26 + $0xa8] sm:$0xff]  ;;  %v2494_v57 = vld [vmem:[%s8859_s26 + $0x90] sm:$0xff] }
 0x7ac   :  { %v2251_v39 = vadd.f32 %v2243_v34, %v7573_v11  ;;  %v2253_v51 = vadd.f32 %v2245_v47, %v7580_v36  ;;  %v2495_v34 = vld [vmem:[%s8859_s26 + $0x98] sm:$0xff] }
 0x7ad   :  { %v4456_v45 = vmul.f32 -1.442695, %v2250_v35  ;;  %v5262_v35 = vpack.c.bf16 %v2497_v33, %v2493_v27  ;;  %v2531_v27 = vld [vmem:[%s8859_s26 + $0x1b8] sm:$0xff]  ;;  %v2524_v33 = vld [vmem:[%s8859_s26 + $0x180] sm:$0xff] }
 0x7ae   :  { %v4457_v46 = vmul.f32 -1.442695, %v2251_v39  ;;  %v4458_v58 = vmul.f32 -1.442695, %v2253_v51  ;;  %v2499_v39 = vld [vmem:[%s8859_s26 + $0xb8] sm:$0xff] }
 0x7af   :  { %5969 = vpow2.f32 %v4456_v45  ;;  %v2492_v45 = vld [vmem:[%s8859_s26 + $0x80] sm:$0xff]  ;;  %v5294_v47 = vpack.c.bf16 %v2499_v39, %v2495_v34  ;;  %v2526_v39 = vld [vmem:[%s8859_s26 + $0x190] sm:$0xff] }
 0x7b0   :  { %5971 = vpow2.f32 %v4457_v46  ;;  %v2496_v46 = vld [vmem:[%s8859_s26 + $0xa0] sm:$0xff] }
 0x7b1   :  { %5973 = vpow2.f32 %v4458_v58  ;;  %v5264_v51 = vpack.c.bf16 %v2496_v46, %v2492_v45  ;;  %v2498_v58 = vld [vmem:[%s8859_s26 + $0xb0] sm:$0xff] }
 0x7b2   :  { %5975 = vtanh.f32 %v2252_v59  ;;  %v5296_v59 = vpack.c.bf16 %v2498_v58, %v2494_v57  ;;  %v2530_v45 = vld [vmem:[%s8859_s26 + $0x1b0] sm:$0xff]  ;;  %v2535_v57 = vld [vmem:[%s8859_s26 + $0x1d8] sm:$0xff] }
 0x7b3   :  { %v5312_v58 = vpack.c.bf16 %v2530_v45, %v2526_v39  ;;  %v2715_v39 = vld [vmem:[%s8860_s1 + $0x58] sm:$0xff] }
 0x7b4   :  { %v2719_v45 = vld [vmem:[%s8860_s1 + $0x78] sm:$0xff] }
 0x7b9   :  { %v5970_v63 = vpop.eup %5969 }
 0x7ba   :  { %v5972_v5 = vpop.eup %5971  ;;  %v2257_v6 = vadd.f32 1.0, %v5970_v63  ;;  %v2501_v63 = vld [vmem:[%s8859_s26 + $0xc8] sm:$0xff] }
 0x7bb   :  { %v2263_v7 = vadd.f32 1.0, %v5972_v5  ;;  %v5974_v12 = vpop.eup %5973  ;;  %v2505_v5 = vld [vmem:[%s8859_s26 + $0xe8] sm:$0xff] }
 0x7bc   :  { %5977 = vrcp.f32 %v2257_v6  ;;  %v5976_v20 = vpop.eup %5975  ;;  %v2270_v41 = vadd.f32 1.0, %v5974_v12  ;;  %v2503_v6 = vld [vmem:[%s8859_s26 + $0xd8] sm:$0xff] }
 0x7bd   :  { %5979 = vrcp.f32 %v2263_v7  ;;  %v5266_v7 = vpack.c.bf16 %v2505_v5, %v2501_v63  ;;  %v2507_v12 = vld [vmem:[%s8859_s26 + $0xf8] sm:$0xff]  ;;  %v2532_v5 = vld [vmem:[%s8859_s26 + $0x1c0] sm:$0xff] }
 0x7be   :  { %5981 = vrcp.f32 %v2270_v41  ;;  %v2506_v41 = vld [vmem:[%s8859_s26 + $0xf0] sm:$0xff]  ;;  %v2539_v63 = vld [vmem:[%s8859_s26 + $0x1f8] sm:$0xff] }
 0x7c6   :  { %v5978_v24 = vpop.eup %5977 }
 0x7c7   :  { %v5980_v30 = vpop.eup %5979  ;;  %v2277_v40 = vmul.f32 %v5978_v24, %v5976_v20  ;;  %v2500_v20 = vld [vmem:[%s8859_s26 + $0xc0] sm:$0xff] }
 0x7c8   :  { %v2276_v42 = vmul.f32 %v5980_v30, %v2274_v25  ;;  %v5982_v52 = vpop.eup %5981  ;;  %v2504_v24 = vld [vmem:[%s8859_s26 + $0xe0] sm:$0xff]  ;;  %v5298_v25 = vpack.c.bf16 %v2507_v12, %v2503_v6  ;;  %v2534_v12 = vld [vmem:[%s8859_s26 + $0x1d0] sm:$0xff] }
 0x7c9   :  { %v5268_v30 = vpack.c.bf16 %v2504_v24, %v2500_v20  ;;  %v2536_v6 = vld [vmem:[%s8859_s26 + $0x1e0] sm:$0xff]  ;;  %v2538_v20 = vld [vmem:[%s8859_s26 + $0x1f0] sm:$0xff]  ;;  %v2705_v24 = vld [vmem:[%s8860_s1 + $0x8] sm:$0xff] }
 0x7ca   :  { %v7863_v48 = vadd.f32 %v2277_v40, %v2276_v42  ;;  %v2502_v40 = vld [vmem:[%s8859_s26 + $0xd0] sm:$0xff] }
 0x7cb   :  { %v5300_v42 = vpack.c.bf16 %v2506_v41, %v2502_v40  ;;  %v2711_v40 = vld [vmem:[%s8860_s1 + $0x38] sm:$0xff]  ;;  %v5284_v41 = vpack.c.bf16 %v2536_v6, %v2532_v5  ;;  %v8123_v5 = vpack.c.bf16 %v2719_v45, %v2715_v39  ;;  %v2714_v6 = vld [vmem:[%s8860_s1 + $0x50] sm:$0xff]  ;;  %v2748_v39 = vld [vmem:[%s8860_s1 + $0x160] sm:$0xff] }
 0x7cc   :  { %5983 = vtanh.f32 %v7863_v48 }
 0x7d6   :  { %v5984_v53 = vpop.eup %5983 }
 0x7d7   :  { %v2280_v38 = vmul.f32 %v5984_v53, %v5982_v52  ;;  %v2509_v52 = vld [vmem:[%s8859_s26 + $0x108] sm:$0xff] }
 0x7d8   :  { %v2513_v53 = vld [vmem:[%s8859_s26 + $0x128] sm:$0xff] }
 0x7d9   :  { %v2282_v54 = vrot.slane %v2280_v38, 6  ;;  %v7868_v3 = vsel %vm205_vm5, %v7824_v17, %v2280_v38  ;;  %v5260_v17 = vpack.c.bf16 %v2488_v15, %v2484_v1  ;;  %v2511_v38 = vld [vmem:[%s8859_s26 + $0x118] sm:$0xff]  ;;  %v2522_v15 = vld [vmem:[%s8859_s26 + $0x170] sm:$0xff] }
 0x7da   :  { %v5302_v32 = vpack.c.bf16 %v2515_v9, %v2511_v38  ;;  %v5308_v21 = vpack.c.bf16 %v2522_v15, %v2518_v14  ;;  %v2462_v15 = vrot.slane %v7863_v48, 7  ;;  %v2710_v48 = vld [vmem:[%s8860_s1 + $0x30] sm:$0xff] }
 0x7db   :  { %2349 = vmatmul.mubr.f32.vlgmr.msra.gmra.mrb[16].mxu0 %v2282_v54  ;;  %2420 = vmatmul.mubr.f32.vlgmr.msra.gmra.mrb[16].mxu1 %v2282_v54  ;;  %v5270_v54 = vpack.c.bf16 %v2513_v53, %v2509_v52 }
 0x7dc   :  { %2626 = vmatprep.mubr.f32.mxu0 %v6168_v16  ;;  %2697 = vmatprep.mubr.f32.mxu1 %v6168_v16 }
 0x7dd   :  { %5257 = vmatpush1.bf16.msra.mxu0 %v5256_v61  ;;  %5289 = vmatpush1.bf16.msra.mxu1 %v5288_v56  ;;  %v5304_v61 = vpack.c.bf16 %v2514_v44, %v2510_v49  ;;  %v2523_v56 = vld [vmem:[%s8859_s26 + $0x178] sm:$0xff] }
 0x7de   :  { %5259 = vmatprep.subr.bf16.mxu0 %v5258_v4  ;;  %5291 = vmatprep.subr.bf16.mxu1 %v5290_v19  ;;  %v5306_v50 = vpack.c.bf16 %v2523_v56, %v2519_v55  ;;  %v2520_v4 = vld [vmem:[%s8859_s26 + $0x160] sm:$0xff]  ;;  %v2525_v19 = vld [vmem:[%s8859_s26 + $0x188] sm:$0xff] }
 0x7df   :  { %v5276_v1 = vpack.c.bf16 %v2520_v4, %v2516_v18 }
 0x7e1   :  { %5261 = vmatpush1.bf16.msra.mxu0 %v5260_v17  ;;  %5293 = vmatpush1.bf16.msra.mxu1 %v5292_v23  ;;  %v2529_v17 = vld [vmem:[%s8859_s26 + $0x1a8] sm:$0xff]  ;;  %v2527_v23 = vld [vmem:[%s8859_s26 + $0x198] sm:$0xff] }
 0x7e2   :  { %5263 = vmatprep.subr.bf16.mxu0 %v5262_v35  ;;  %5295 = vmatprep.subr.bf16.mxu1 %v5294_v47  ;;  %v5278_v22 = vpack.c.bf16 %v2529_v17, %v2525_v19  ;;  %v5310_v34 = vpack.c.bf16 %v2531_v27, %v2527_v23  ;;  %v2528_v35 = vld [vmem:[%s8859_s26 + $0x1a0] sm:$0xff]  ;;  %v2533_v47 = vld [vmem:[%s8859_s26 + $0x1c8] sm:$0xff]  ;;  %v2706_v27 = vld [vmem:[%s8860_s1 + $0x10] sm:$0xff] }
 0x7e3   :  { %v5280_v46 = vpack.c.bf16 %v2528_v35, %v2524_v33  ;;  %v2708_v23 = vld [vmem:[%s8860_s1 + $0x20] sm:$0xff]  ;;  %v2713_v33 = vld [vmem:[%s8860_s1 + $0x48] sm:$0xff] }
 0x7e4   :  { %v2717_v35 = vld [vmem:[%s8860_s1 + $0x68] sm:$0xff] }
 0x7e5   :  { %5265 = vmatpush1.bf16.msra.mxu0 %v5264_v51  ;;  %5297 = vmatpush1.bf16.msra.mxu1 %v5296_v59  ;;  %v2537_v51 = vld [vmem:[%s8859_s26 + $0x1e8] sm:$0xff] }
 0x7e6   :  { %5267 = vmatprep.subr.bf16.mxu0 %v5266_v7  ;;  %5299 = vmatprep.subr.bf16.mxu1 %v5298_v25  ;;  %v5282_v59 = vpack.c.bf16 %v2537_v51, %v2533_v47  ;;  %v5314_v7 = vpack.c.bf16 %v2539_v63, %v2535_v57  ;;  %v2709_v25 = vld [vmem:[%s8860_s1 + $0x28] sm:$0xff]  ;;  %v8113_v57 = vpack.c.bf16 %v2710_v48, %v2706_v27  ;;  %v2747_v27 = vld [vmem:[%s8860_s1 + $0x158] sm:$0xff] }
 0x7e7   :  { %v8076_v52 = vpack.c.bf16 %v2709_v25, %v2705_v24  ;;  %v8121_v63 = vpack.c.bf16 %v2717_v35, %v2713_v33  ;;  %v2725_v24 = vld [vmem:[%s8860_s1 + $0xa8] sm:$0xff]  ;;  %v2723_v25 = vld [vmem:[%s8860_s1 + $0x98] sm:$0xff]  ;;  %v2744_v35 = vld [vmem:[%s8860_s1 + $0x140] sm:$0xff] }
 0x7e8   :  { %v2751_v48 = vld [vmem:[%s8860_s1 + $0x178] sm:$0xff] }
 0x7e9   :  { %5269 = vmatpush1.bf16.msra.mxu0 %v5268_v30  ;;  %5301 = vmatpush1.bf16.msra.mxu1 %v5300_v42  ;;  %v2707_v30 = vld [vmem:[%s8860_s1 + $0x18] sm:$0xff]  ;;  %v5316_v42 = vpack.c.bf16 %v2538_v20, %v2534_v12  ;;  %v2721_v12 = vld [vmem:[%s8860_s1 + $0x88] sm:$0xff] }
 0x7ea   :  { %5271 = vmatprep.subr.bf16.mxu0 %v5270_v54  ;;  %5303 = vmatprep.subr.bf16.mxu1 %v5302_v32  ;;  %v8078_v53 = vpack.c.bf16 %v2711_v40, %v2707_v30  ;;  %v2727_v30 = vld [vmem:[%s8860_s1 + $0xb8] sm:$0xff] }
 0x7ed   :  { %5273 = vmatpush1.bf16.msra.mxu0 %v5272_v37  ;;  %5305 = vmatpush1.bf16.msra.mxu1 %v5304_v61 }
 0x7ee   :  { %5275 = vmatprep.subr.bf16.mxu0 %v5274_v60  ;;  %5307 = vmatprep.subr.bf16.mxu1 %v5306_v50 }
 0x7f1   :  { %5277 = vmatpush1.bf16.msra.mxu0 %v5276_v1  ;;  %5309 = vmatpush1.bf16.msra.mxu1 %v5308_v21 }
 0x7f2   :  { %5279 = vmatprep.subr.bf16.mxu0 %v5278_v22  ;;  %5311 = vmatprep.subr.bf16.mxu1 %v5310_v34 }
 0x7f5   :  { %5281 = vmatpush1.bf16.msra.mxu0 %v5280_v46  ;;  %5313 = vmatpush1.bf16.msra.mxu1 %v5312_v58  ;;  %v2712_v58 = vld [vmem:[%s8860_s1 + $0x40] sm:$0xff] }
 0x7f6   :  { %5283 = vmatprep.subr.bf16.mxu0 %v5282_v59  ;;  %5315 = vmatprep.subr.bf16.mxu1 %v5314_v7  ;;  %v2716_v59 = vld [vmem:[%s8860_s1 + $0x60] sm:$0xff]  ;;  %v2718_v7 = vld [vmem:[%s8860_s1 + $0x70] sm:$0xff] }
 0x7f7   :  { %v8147_v40 = vpack.c.bf16 %v2716_v59, %v2712_v58  ;;  %v2750_v58 = vld [vmem:[%s8860_s1 + $0x170] sm:$0xff]  ;;  %v2753_v59 = vld [vmem:[%s8860_s1 + $0x188] sm:$0xff] }
 0x7f9   :  { %5285 = vmatpush1.bf16.msra.mxu0 %v5284_v41  ;;  %5317 = vmatpush1.bf16.msra.mxu1 %v5316_v42  ;;  %v2720_v41 = vld [vmem:[%s8860_s1 + $0x80] sm:$0xff] }
 0x7fa   :  { %5319 = vmatprep.subr.bf16.mxu0 %v8076_v52  ;;  %5351 = vmatprep.subr.bf16.mxu1 %v8078_v53  ;;  %v2724_v42 = vld [vmem:[%s8860_s1 + $0xa0] sm:$0xff] }
 0x8ae   :  { %v2350_v38 = vpop.f32.mrb[16].mxu0  ;;  %v2421_v54 = vpop.f32.mrb[16].mxu1 }
 0x8af   :  { %v2430_v9 = vrot.slane %v2350_v38, 1  ;;  %v2352_v28 = vpop.f32.mrb[17].mxu0  ;;  %v2423_v13 = vpop.f32.mrb[17].mxu1  ;;  %v2432_v55 = vrot.slane %v2421_v54, 1  ;;  %v8159_v38 = vpack.c.bf16 %v2725_v24, %v2721_v12  ;;  %v8161_v54 = vpack.c.bf16 %v2727_v30, %v2723_v25  ;;  %v2759_v12 = vld [vmem:[%s8860_s1 + $0x1b8] sm:$0xff]  ;;  %v2752_v25 = vld [vmem:[%s8860_s1 + $0x180] sm:$0xff] }
 0x8b0   :  { %v2431_v32 = vrot.slane %v2352_v28, 1  ;;  %v2433_v61 = vrot.slane %v2423_v13, 1  ;;  %v2726_v28 = vld [vmem:[%s8860_s1 + $0xb0] sm:$0xff]  ;;  %v2729_v13 = vld [vmem:[%s8860_s1 + $0xc8] sm:$0xff]  ;;  %v2756_v30 = vld [vmem:[%s8860_s1 + $0x1a0] sm:$0xff] }
 0x8b1   :  { %v2438_v37 = vadd.f32 %v2430_v9, %v7571_v10  ;;  %v2440_v60 = vadd.f32 %v2432_v55, %v7585_v43  ;;  %v2704_v43 = vld [vmem:[%s8860_s1] sm:$0xff]  ;;  %v2722_v9 = vld [vmem:[%s8860_s1 + $0x90] sm:$0xff] }
 0x8b2   :  { %v2439_v49 = vadd.f32 %v2431_v32, %v7573_v11  ;;  %v2441_v31 = vadd.f32 %v2433_v61, %v7580_v36  ;;  %v8111_v51 = vpack.c.bf16 %v2708_v23, %v2704_v43  ;;  %v2733_v32 = vld [vmem:[%s8860_s1 + $0xe8] sm:$0xff]  ;;  %v2728_v61 = vld [vmem:[%s8860_s1 + $0xc0] sm:$0xff] }
 0x8b3   :  { %v4459_v44 = vmul.f32 -1.442695, %v2438_v37  ;;  %v2731_v37 = vld [vmem:[%s8860_s1 + $0xd8] sm:$0xff]  ;;  %v8197_v55 = vpack.c.bf16 %v2733_v32, %v2729_v13  ;;  %v2745_v43 = vld [vmem:[%s8860_s1 + $0x148] sm:$0xff] }
 0x8b4   :  { %v4460_v26 = vmul.f32 -1.442695, %v2439_v49  ;;  %v4461_v56 = vmul.f32 -1.442695, %v2441_v31  ;;  %v2735_v49 = vld [vmem:[%s8860_s1 + $0xf8] sm:$0xff]  ;;  %v2732_v31 = vld [vmem:[%s8860_s1 + $0xe0] sm:$0xff] }
 0x8b5   :  { %5985 = vpow2.f32 %v4459_v44  ;;  %v8185_v44 = vpack.c.bf16 %v2724_v42, %v2720_v41  ;;  %v2749_v23 = vld [vmem:[%s8860_s1 + $0x168] sm:$0xff] }
 0x8b6   :  { %5987 = vpow2.f32 %v4460_v26  ;;  %v8187_v26 = vpack.c.bf16 %v2726_v28, %v2722_v9  ;;  %v8269_v45 = vpack.c.bf16 %v2749_v23, %v2745_v43  ;;  %v2754_v9 = vld [vmem:[%s8860_s1 + $0x190] sm:$0xff]  ;;  %v2761_v13 = vld [vmem:[%s8860_s1 + $0x1c8] sm:$0xff] }
 0x8b7   :  { %5989 = vpow2.f32 %v4461_v56  ;;  %v8199_v56 = vpack.c.bf16 %v2735_v49, %v2731_v37  ;;  %v2758_v28 = vld [vmem:[%s8860_s1 + $0x1b0] sm:$0xff]  ;;  %v2765_v32 = vld [vmem:[%s8860_s1 + $0x1e8] sm:$0xff]  ;;  %v2763_v37 = vld [vmem:[%s8860_s1 + $0x1d8] sm:$0xff] }
 0x8b8   :  { %5991 = vtanh.f32 %v2440_v60  ;;  %v2730_v60 = vld [vmem:[%s8860_s1 + $0xd0] sm:$0xff]  ;;  %v2767_v49 = vld [vmem:[%s8860_s1 + $0x1f8] sm:$0xff] }
 0x8bf   :  { %v5986_v50 = vpop.eup %5985 }
 0x8c0   :  { %v5988_v18 = vpop.eup %5987  ;;  %v2445_v4 = vadd.f32 1.0, %v5986_v50  ;;  %v2734_v50 = vld [vmem:[%s8860_s1 + $0xf0] sm:$0xff] }
 0x8c1   :  { %v2451_v14 = vadd.f32 1.0, %v5988_v18  ;;  %v5990_v10 = vpop.eup %5989  ;;  %v2737_v18 = vld [vmem:[%s8860_s1 + $0x108] sm:$0xff] }
 0x8c2   :  { %5993 = vrcp.f32 %v2445_v4  ;;  %v5992_v11 = vpop.eup %5991  ;;  %v2458_v36 = vadd.f32 1.0, %v5990_v10  ;;  %v2741_v4 = vld [vmem:[%s8860_s1 + $0x128] sm:$0xff]  ;;  %v2743_v10 = vld [vmem:[%s8860_s1 + $0x138] sm:$0xff] }
 0x8c3   :  { %5995 = vrcp.f32 %v2451_v14  ;;  %v2739_v14 = vld [vmem:[%s8860_s1 + $0x118] sm:$0xff] }
 0x8c4   :  { %5997 = vrcp.f32 %v2458_v36  ;;  %v8235_v36 = vpack.c.bf16 %v2743_v10, %v2739_v14  ;;  %v2762_v14 = vld [vmem:[%s8860_s1 + $0x1d0] sm:$0xff] }
 0x8c5   :  { %v2766_v10 = vld [vmem:[%s8860_s1 + $0x1f0] sm:$0xff] }
 0x8cc   :  { %v5994_v1 = vpop.eup %5993 }
 0x8cd   :  { %v5996_v19 = vpop.eup %5995  ;;  %v2465_v17 = vmul.f32 %v5994_v1, %v5992_v11  ;;  %v8221_v11 = vpack.c.bf16 %v2732_v31, %v2728_v61  ;;  %v8223_v1 = vpack.c.bf16 %v2734_v50, %v2730_v60  ;;  %v8329_v61 = vpack.c.bf16 %v2756_v30, %v2752_v25  ;;  %v2760_v60 = vld [vmem:[%s8860_s1 + $0x1c0] sm:$0xff] }
 0x8ce   :  { %v2464_v21 = vmul.f32 %v5996_v19, %v2462_v15  ;;  %v5998_v34 = vpop.eup %5997  ;;  %v2736_v15 = vld [vmem:[%s8860_s1 + $0x100] sm:$0xff]  ;;  %v8331_v31 = vpack.c.bf16 %v2758_v28, %v2754_v9  ;;  %v8338_v50 = vpack.c.bf16 %v2765_v32, %v2761_v13 }
 0x8cf   :  { %v2740_v19 = vld [vmem:[%s8860_s1 + $0x120] sm:$0xff] }
 0x8d0   :  { %v2466_v22 = vadd.f32 %v2465_v17, %v2464_v21  ;;  %v8233_v17 = vpack.c.bf16 %v2741_v4, %v2737_v18  ;;  %v2738_v21 = vld [vmem:[%s8860_s1 + $0x110] sm:$0xff]  ;;  %v8257_v33 = vpack.c.bf16 %v2740_v19, %v2736_v15  ;;  %v8340_v18 = vpack.c.bf16 %v2767_v49, %v2763_v37  ;;  %v2764_v4 = vld [vmem:[%s8860_s1 + $0x1e0] sm:$0xff] }
 0x8d1   :  { %v8353_v15 = vpack.c.bf16 %v2764_v4, %v2760_v60  ;;  %v8355_v19 = vpack.c.bf16 %v2766_v10, %v2762_v14 }
 0x8d2   :  { %5999 = vtanh.f32 %v2466_v22  ;;  %v2742_v22 = vld [vmem:[%s8860_s1 + $0x130] sm:$0xff] }
 0x8dc   :  { %v6000_v46 = vpop.eup %5999 }
 0x8dd   :  { %v2468_v47 = vmul.f32 %v6000_v46, %v5998_v34  ;;  %v8259_v34 = vpack.c.bf16 %v2742_v22, %v2738_v21  ;;  %v8271_v46 = vpack.c.bf16 %v2751_v48, %v2747_v27  ;;  %v2540_v27 = vld [vmem:[%s8861_s29] sm:$0xf] }
 0x8de   :  { %v2545_v48 = vrot.slane %v2540_v27, %v7560_v0  ;;  %v2557_v25 = vrot.slane %v2540_v27, %v912_v8  ;;  %v2553_v32 = vrot.slane %v2540_v27, %v908_v29 }
 0x8df   :  { %v2475_v20 = vsel %vm209_vm6, %v7868_v3, %v2468_v47  ;;  %v8149_v3 = vpack.c.bf16 %v2718_v7, %v2714_v6  ;;  %v2746_v47 = vld [vmem:[%s8860_s1 + $0x150] sm:$0xff]  ;;  %v2757_v6 = vld [vmem:[%s8860_s1 + $0x1a8] sm:$0xff]  ;;  %v2755_v7 = vld [vmem:[%s8860_s1 + $0x198] sm:$0xff] }
 0x8e0   :  { %2627 = vmatmul.mubr.f32.vlgmr.msra.gmra.mrb[18].mxu0 %v2475_v20  ;;  %2698 = vmatmul.mubr.f32.vlgmr.msra.gmra.mrb[18].mxu1 %v2475_v20  ;;  %v8293_v20 = vpack.c.bf16 %v2748_v39, %v2744_v35  ;;  %v8295_v24 = vpack.c.bf16 %v2750_v58, %v2746_v47  ;;  %v8305_v41 = vpack.c.bf16 %v2757_v6, %v2753_v59 }
 0x8e1   :  { %5321 = vmatpush1.bf16.msra.mxu0 %v8111_v51  ;;  %5353 = vmatpush1.bf16.msra.mxu1 %v8113_v57  ;;  %v8307_v42 = vpack.c.bf16 %v2759_v12, %v2755_v7  ;;  %v2549_v35 = vrot.slane %v2540_v27, %v7566_v2 }
 0x8e2   :  { %5323 = vmatprep.subr.bf16.mxu0 %v8121_v63  ;;  %5355 = vmatprep.subr.bf16.mxu1 %v8123_v5 }
 0x8e3   :  { %2832 = vmatprep.mubr.f32.mxu0 %v6168_v16  ;;  %2903 = vmatprep.mubr.f32.mxu1 %v6168_v16 }
 0x8e5   :  { %5325 = vmatpush1.bf16.msra.mxu0 %v8147_v40  ;;  %5357 = vmatpush1.bf16.msra.mxu1 %v8149_v3 }
 0x8e6   :  { %5327 = vmatprep.subr.bf16.mxu0 %v8159_v38  ;;  %5359 = vmatprep.subr.bf16.mxu1 %v8161_v54 }
 0x8e9   :  { %5329 = vmatpush1.bf16.msra.mxu0 %v8185_v44  ;;  %5361 = vmatpush1.bf16.msra.mxu1 %v8187_v26 }
 0x8ea   :  { %5331 = vmatprep.subr.bf16.mxu0 %v8197_v55  ;;  %5363 = vmatprep.subr.bf16.mxu1 %v8199_v56 }
 0x8ed   :  { %5333 = vmatpush1.bf16.msra.mxu0 %v8221_v11  ;;  %5365 = vmatpush1.bf16.msra.mxu1 %v8223_v1 }
 0x8ee   :  { %5335 = vmatprep.subr.bf16.mxu0 %v8233_v17  ;;  %5367 = vmatprep.subr.bf16.mxu1 %v8235_v36 }
 0x8f1   :  { %5337 = vmatpush1.bf16.msra.mxu0 %v8257_v33  ;;  %5369 = vmatpush1.bf16.msra.mxu1 %v8259_v34 }
 0x8f2   :  { %5339 = vmatprep.subr.bf16.mxu0 %v8269_v45  ;;  %5371 = vmatprep.subr.bf16.mxu1 %v8271_v46 }
 0x8f5   :  { %5341 = vmatpush1.bf16.msra.mxu0 %v8293_v20  ;;  %5373 = vmatpush1.bf16.msra.mxu1 %v8295_v24 }
 0x8f6   :  { %5343 = vmatprep.subr.bf16.mxu0 %v8305_v41  ;;  %5375 = vmatprep.subr.bf16.mxu1 %v8307_v42 }
 0x8f9   :  { %5345 = vmatpush1.bf16.msra.mxu0 %v8329_v61  ;;  %5377 = vmatpush1.bf16.msra.mxu1 %v8331_v31 }
 0x8fa   :  { %5347 = vmatprep.subr.bf16.mxu0 %v8338_v50  ;;  %5379 = vmatprep.subr.bf16.mxu1 %v8340_v18 }
 0x8fd   :  { %5349 = vmatpush1.bf16.msra.mxu0 %v8353_v15  ;;  %5381 = vmatpush1.bf16.msra.mxu1 %v8355_v19 }
 0x8fe   :  { %5383 = vmatprep.subr.bf16.mxu0 %v8076_v52  ;;  %5415 = vmatprep.subr.bf16.mxu1 %v8078_v53 }
 0x900   :  { %2833 = vmatmul.mubr.f32.vlgmr.msra.gmra.mrb[20].mxu0 %v6168_v16  ;;  %2904 = vmatmul.mubr.f32.vlgmr.msra.gmra.mrb[20].mxu1 %v6168_v16 }
 0x901   :  { %5385 = vmatpush1.bf16.msra.mxu0 %v8111_v51  ;;  %5417 = vmatpush1.bf16.msra.mxu1 %v8113_v57 }
 0x902   :  { %5387 = vmatprep.subr.bf16.mxu0 %v8121_v63  ;;  %5419 = vmatprep.subr.bf16.mxu1 %v8123_v5 }
 0x903   :  { %3002 = vmatprep.mubr.f32.mxu0 %v6168_v16  ;;  %3073 = vmatprep.mubr.f32.mxu1 %v6168_v16 }
 0x905   :  { %5389 = vmatpush1.bf16.msra.mxu0 %v8147_v40  ;;  %5421 = vmatpush1.bf16.msra.mxu1 %v8149_v3 }
 0x906   :  { %5391 = vmatprep.subr.bf16.mxu0 %v8159_v38  ;;  %5423 = vmatprep.subr.bf16.mxu1 %v8161_v54 }
 0x909   :  { %5393 = vmatpush1.bf16.msra.mxu0 %v8185_v44  ;;  %5425 = vmatpush1.bf16.msra.mxu1 %v8187_v26 }
 0x90a   :  { %5395 = vmatprep.subr.bf16.mxu0 %v8197_v55  ;;  %5427 = vmatprep.subr.bf16.mxu1 %v8199_v56 }
 0x90d   :  { %5397 = vmatpush1.bf16.msra.mxu0 %v8221_v11  ;;  %5429 = vmatpush1.bf16.msra.mxu1 %v8223_v1 }
 0x90e   :  { %5399 = vmatprep.subr.bf16.mxu0 %v8233_v17  ;;  %5431 = vmatprep.subr.bf16.mxu1 %v8235_v36 }
 0x911   :  { %5401 = vmatpush1.bf16.msra.mxu0 %v8257_v33  ;;  %5433 = vmatpush1.bf16.msra.mxu1 %v8259_v34 }
 0x912   :  { %5403 = vmatprep.subr.bf16.mxu0 %v8269_v45  ;;  %5435 = vmatprep.subr.bf16.mxu1 %v8271_v46 }
 0x915   :  { %5405 = vmatpush1.bf16.msra.mxu0 %v8293_v20  ;;  %5437 = vmatpush1.bf16.msra.mxu1 %v8295_v24 }
 0x916   :  { %5407 = vmatprep.subr.bf16.mxu0 %v8305_v41  ;;  %5439 = vmatprep.subr.bf16.mxu1 %v8307_v42 }
 0x919   :  { %5409 = vmatpush1.bf16.msra.mxu0 %v8329_v61  ;;  %5441 = vmatpush1.bf16.msra.mxu1 %v8331_v31 }
 0x91a   :  { %5411 = vmatprep.subr.bf16.mxu0 %v8338_v50  ;;  %5443 = vmatprep.subr.bf16.mxu1 %v8340_v18 }
 0x91d   :  { %5413 = vmatpush1.bf16.msra.mxu0 %v8353_v15  ;;  %5445 = vmatpush1.bf16.msra.mxu1 %v8355_v19 }
 0x91e   :  { %5447 = vmatprep.subr.bf16.mxu0 %v8076_v52  ;;  %5479 = vmatprep.subr.bf16.mxu1 %v8078_v53 }
 0x9b3   :  { %v2628_v21 = vpop.f32.mrb[18].mxu0  ;;  %v2699_v22 = vpop.f32.mrb[18].mxu1 }
 0x9b4   :  { %v2630_v43 = vpop.f32.mrb[19].mxu0  ;;  %v2701_v23 = vpop.f32.mrb[19].mxu1  ;;  %v8404_v39 = vadd.f32 %v2628_v21, %v2545_v48  ;;  %v8417_v49 = vadd.f32 %v2699_v22, %v2553_v32 }
 0x9b5   :  { %v8406_v47 = vadd.f32 %v2630_v43, %v2549_v35  ;;  %v8412_v13 = vadd.f32 %v2701_v23, %v2557_v25 }
 0x9d3   :  { %v2834_v58 = vpop.f32.mrb[20].mxu0  ;;  %v2905_v59 = vpop.f32.mrb[20].mxu1 }
 0x9d4   :  { %v2910_v6 = vadd.f32 %v2834_v58, %v8404_v39  ;;  %v2836_v7 = vpop.f32.mrb[21].mxu0  ;;  %v2907_v12 = vpop.f32.mrb[21].mxu1  ;;  %v2912_v4 = vadd.f32 %v2905_v59, %v8417_v49 }
 0x9d5   :  { %v2911_v30 = vadd.f32 %v2836_v7, %v8406_v47  ;;  %v2913_v37 = vadd.f32 %v2907_v12, %v8412_v13 }
 0x9d6   :  { %v4462_v9 = vmul.f32 -1.442695, %v2910_v6 }
 0x9d7   :  { %v4463_v28 = vmul.f32 -1.442695, %v2911_v30  ;;  %v4464_v60 = vmul.f32 -1.442695, %v2913_v37 }
 0x9d8   :  { %6001 = vpow2.f32 %v4462_v9 }
 0x9d9   :  { %6003 = vpow2.f32 %v4463_v28 }
 0x9da   :  { %6005 = vpow2.f32 %v4464_v60 }
 0x9db   :  { %6007 = vtanh.f32 %v2912_v4 }
 0x9e2   :  { %v6002_v14 = vpop.eup %6001 }
 0x9e3   :  { %v6004_v8 = vpop.eup %6003  ;;  %v2917_v10 = vadd.f32 1.0, %v6002_v14 }
 0x9e4   :  { %v2923_v21 = vadd.f32 1.0, %v6004_v8  ;;  %v6006_v43 = vpop.eup %6005 }
 0x9e5   :  { %6009 = vrcp.f32 %v2917_v10  ;;  %v6008_v23 = vpop.eup %6007  ;;  %v2930_v27 = vadd.f32 1.0, %v6006_v43 }
 0x9e6   :  { %6011 = vrcp.f32 %v2923_v21 }
 0x9e7   :  { %6013 = vrcp.f32 %v2930_v27 }
 0x9ef   :  { %v6010_v48 = vpop.eup %6009 }
 0x9f0   :  { %v6012_v62 = vpop.eup %6011  ;;  %v2934_v29 = vmul.f32 %v6010_v48, %v6008_v23 }
 0x9f1   :  { %v2933_v35 = vmul.f32 0.0, %v6012_v62  ;;  %v6014_v58 = vpop.eup %6013 }
 0x9f3   :  { %v8420_v22 = vadd.f32 %v2934_v29, %v2933_v35 }
 0x9f5   :  { %6015 = vtanh.f32 %v8420_v22 }
 0x9ff   :  { %v6016_v59 = vpop.eup %6015 }
 0xa00   :  { %v8423_v6 = vmul.f32 %v6016_v59, %v6014_v58  ;;  %v3116_v59 = vrot.slane %v8420_v22, 7 }
 0xa02   :  { %3003 = vmatmul.mubr.f32.vlgmr.msra.gmra.mrb[22].mxu0 %v8423_v6  ;;  %3074 = vmatmul.mubr.f32.vlgmr.msra.gmra.mrb[22].mxu1 %v8423_v6 }
 0xa03   :  { %5449 = vmatpush1.bf16.msra.mxu0 %v8111_v51  ;;  %5481 = vmatpush1.bf16.msra.mxu1 %v8113_v57 }
 0xa04   :  { %5451 = vmatprep.subr.bf16.mxu0 %v8121_v63  ;;  %5483 = vmatprep.subr.bf16.mxu1 %v8123_v5 }
 0xa05   :  { %3190 = vmatprep.mubr.f32.mxu0 %v6168_v16  ;;  %3261 = vmatprep.mubr.f32.mxu1 %v6168_v16 }
 0xa07   :  { %5453 = vmatpush1.bf16.msra.mxu0 %v8147_v40  ;;  %5485 = vmatpush1.bf16.msra.mxu1 %v8149_v3 }
 0xa08   :  { %5455 = vmatprep.subr.bf16.mxu0 %v8159_v38  ;;  %5487 = vmatprep.subr.bf16.mxu1 %v8161_v54 }
 0xa0b   :  { %5457 = vmatpush1.bf16.msra.mxu0 %v8185_v44  ;;  %5489 = vmatpush1.bf16.msra.mxu1 %v8187_v26 }
 0xa0c   :  { %5459 = vmatprep.subr.bf16.mxu0 %v8197_v55  ;;  %5491 = vmatprep.subr.bf16.mxu1 %v8199_v56 }
 0xa0f   :  { %5461 = vmatpush1.bf16.msra.mxu0 %v8221_v11  ;;  %5493 = vmatpush1.bf16.msra.mxu1 %v8223_v1 }
 0xa10   :  { %5463 = vmatprep.subr.bf16.mxu0 %v8233_v17  ;;  %5495 = vmatprep.subr.bf16.mxu1 %v8235_v36 }
 0xa13   :  { %5465 = vmatpush1.bf16.msra.mxu0 %v8257_v33  ;;  %5497 = vmatpush1.bf16.msra.mxu1 %v8259_v34 }
 0xa14   :  { %5467 = vmatprep.subr.bf16.mxu0 %v8269_v45  ;;  %5499 = vmatprep.subr.bf16.mxu1 %v8271_v46 }
 0xa17   :  { %5469 = vmatpush1.bf16.msra.mxu0 %v8293_v20  ;;  %5501 = vmatpush1.bf16.msra.mxu1 %v8295_v24 }
 0xa18   :  { %5471 = vmatprep.subr.bf16.mxu0 %v8305_v41  ;;  %5503 = vmatprep.subr.bf16.mxu1 %v8307_v42 }
 0xa1b   :  { %5473 = vmatpush1.bf16.msra.mxu0 %v8329_v61  ;;  %5505 = vmatpush1.bf16.msra.mxu1 %v8331_v31 }
 0xa1c   :  { %5475 = vmatprep.subr.bf16.mxu0 %v8338_v50  ;;  %5507 = vmatprep.subr.bf16.mxu1 %v8340_v18 }
 0xa1f   :  { %5477 = vmatpush1.bf16.msra.mxu0 %v8353_v15  ;;  %5509 = vmatpush1.bf16.msra.mxu1 %v8355_v19 }
 0xa20   :  { %5511 = vmatprep.subr.bf16.mxu0 %v8076_v52  ;;  %5543 = vmatprep.subr.bf16.mxu1 %v8078_v53 }
 0xad5   :  { %v3004_v7 = vpop.f32.mrb[22].mxu0  ;;  %v3075_v12 = vpop.f32.mrb[22].mxu1 }
 0xad6   :  { %v3084_v25 = vrot.slane %v3004_v7, 7  ;;  %v3006_v30 = vpop.f32.mrb[23].mxu0  ;;  %v3077_v9 = vpop.f32.mrb[23].mxu1  ;;  %v3086_v10 = vrot.slane %v3075_v12, 7 }
 0xad7   :  { %v3085_v28 = vrot.slane %v3006_v30, 7  ;;  %v3087_v14 = vrot.slane %v3077_v9, 7 }
 0xad8   :  { %v3092_v32 = vadd.f32 %v3084_v25, %v8404_v39  ;;  %v3094_v43 = vadd.f32 %v3086_v10, %v8417_v49 }
 0xad9   :  { %v3093_v37 = vadd.f32 %v3085_v28, %v8406_v47  ;;  %v3095_v8 = vadd.f32 %v3087_v14, %v8412_v13 }
 0xada   :  { %v4465_v60 = vmul.f32 -1.442695, %v3092_v32 }
 0xadb   :  { %v4466_v4 = vmul.f32 -1.442695, %v3093_v37  ;;  %v4467_v21 = vmul.f32 -1.442695, %v3095_v8 }
 0xadc   :  { %6017 = vpow2.f32 %v4465_v60 }
 0xadd   :  { %6019 = vpow2.f32 %v4466_v4 }
 0xade   :  { %6021 = vpow2.f32 %v4467_v21 }
 0xadf   :  { %6023 = vtanh.f32 %v3094_v43 }
 0xae6   :  { %v6018_v23 = vpop.eup %6017 }
 0xae7   :  { %v6020_v48 = vpop.eup %6019  ;;  %v3099_v62 = vadd.f32 1.0, %v6018_v23 }
 0xae8   :  { %v3105_v29 = vadd.f32 1.0, %v6020_v48  ;;  %v6022_v27 = vpop.eup %6021 }
 0xae9   :  { %6025 = vrcp.f32 %v3099_v62  ;;  %v6024_v35 = vpop.eup %6023  ;;  %v3112_v30 = vadd.f32 1.0, %v6022_v27 }
 0xaea   :  { %6027 = vrcp.f32 %v3105_v29 }
 0xaeb   :  { %6029 = vrcp.f32 %v3112_v30 }
 0xaf3   :  { %v6026_v58 = vpop.eup %6025 }
 0xaf4   :  { %v6028_v7 = vpop.eup %6027  ;;  %v3119_v25 = vmul.f32 %v6026_v58, %v6024_v35 }
 0xaf5   :  { %v3118_v12 = vmul.f32 %v6028_v7, %v3116_v59  ;;  %v6030_v28 = vpop.eup %6029 }
 0xaf7   :  { %v8466_v9 = vadd.f32 %v3119_v25, %v3118_v12 }
 0xaf9   :  { %6031 = vtanh.f32 %v8466_v9 }
 0xb03   :  { %v6032_v32 = vpop.eup %6031 }
 0xb04   :  { %v8469_v37 = vmul.f32 %v6032_v32, %v6030_v28 }
 0xb06   :  { %v3124_v60 = vrot.slane %v8469_v37, 1 }
 0xb08   :  { %3191 = vmatmul.mubr.f32.vlgmr.msra.gmra.mrb[24].mxu0 %v3124_v60  ;;  %3262 = vmatmul.mubr.f32.vlgmr.msra.gmra.mrb[24].mxu1 %v3124_v60 }
 0xb09   :  { %5513 = vmatpush1.bf16.msra.mxu0 %v8111_v51  ;;  %5545 = vmatpush1.bf16.msra.mxu1 %v8113_v57 }
 0xb0a   :  { %5515 = vmatprep.subr.bf16.mxu0 %v8121_v63  ;;  %5547 = vmatprep.subr.bf16.mxu1 %v8123_v5 }
 0xb0b   :  { %3378 = vmatprep.mubr.f32.mxu0 %v6168_v16  ;;  %3449 = vmatprep.mubr.f32.mxu1 %v6168_v16 }
 0xb0d   :  { %5517 = vmatpush1.bf16.msra.mxu0 %v8147_v40  ;;  %5549 = vmatpush1.bf16.msra.mxu1 %v8149_v3 }
 0xb0e   :  { %5519 = vmatprep.subr.bf16.mxu0 %v8159_v38  ;;  %5551 = vmatprep.subr.bf16.mxu1 %v8161_v54 }
 0xb11   :  { %5521 = vmatpush1.bf16.msra.mxu0 %v8185_v44  ;;  %5553 = vmatpush1.bf16.msra.mxu1 %v8187_v26 }
 0xb12   :  { %5523 = vmatprep.subr.bf16.mxu0 %v8197_v55  ;;  %5555 = vmatprep.subr.bf16.mxu1 %v8199_v56 }
 0xb15   :  { %5525 = vmatpush1.bf16.msra.mxu0 %v8221_v11  ;;  %5557 = vmatpush1.bf16.msra.mxu1 %v8223_v1 }
 0xb16   :  { %5527 = vmatprep.subr.bf16.mxu0 %v8233_v17  ;;  %5559 = vmatprep.subr.bf16.mxu1 %v8235_v36 }
 0xb19   :  { %5529 = vmatpush1.bf16.msra.mxu0 %v8257_v33  ;;  %5561 = vmatpush1.bf16.msra.mxu1 %v8259_v34 }
 0xb1a   :  { %5531 = vmatprep.subr.bf16.mxu0 %v8269_v45  ;;  %5563 = vmatprep.subr.bf16.mxu1 %v8271_v46 }
 0xb1d   :  { %5533 = vmatpush1.bf16.msra.mxu0 %v8293_v20  ;;  %5565 = vmatpush1.bf16.msra.mxu1 %v8295_v24 }
 0xb1e   :  { %5535 = vmatprep.subr.bf16.mxu0 %v8305_v41  ;;  %5567 = vmatprep.subr.bf16.mxu1 %v8307_v42 }
 0xb21   :  { %5537 = vmatpush1.bf16.msra.mxu0 %v8329_v61  ;;  %5569 = vmatpush1.bf16.msra.mxu1 %v8331_v31 }
 0xb22   :  { %5539 = vmatprep.subr.bf16.mxu0 %v8338_v50  ;;  %5571 = vmatprep.subr.bf16.mxu1 %v8340_v18 }
 0xb25   :  { %5541 = vmatpush1.bf16.msra.mxu0 %v8353_v15  ;;  %5573 = vmatpush1.bf16.msra.mxu1 %v8355_v19 }
 0xb26   :  { %5575 = vmatprep.subr.bf16.mxu0 %v8076_v52  ;;  %5607 = vmatprep.subr.bf16.mxu1 %v8078_v53 }
 0xbdb   :  { %v3192_v22 = vpop.f32.mrb[24].mxu0  ;;  %v3263_v4 = vpop.f32.mrb[24].mxu1 }
 0xbdc   :  { %v3272_v14 = vrot.slane %v3192_v22, 6  ;;  %v3194_v8 = vpop.f32.mrb[25].mxu0  ;;  %v3265_v10 = vpop.f32.mrb[25].mxu1  ;;  %v3274_v35 = vrot.slane %v3263_v4, 6  ;;  %v3304_v22 = vrot.slane %v8466_v9, 7 }
 0xbdd   :  { %v3273_v21 = vrot.slane %v3194_v8, 6  ;;  %v3275_v29 = vrot.slane %v3265_v10, 6 }
 0xbde   :  { %v3280_v43 = vadd.f32 %v3272_v14, %v8404_v39  ;;  %v3282_v59 = vadd.f32 %v3274_v35, %v8417_v49 }
 0xbdf   :  { %v3281_v23 = vadd.f32 %v3273_v21, %v8406_v47  ;;  %v3283_v27 = vadd.f32 %v3275_v29, %v8412_v13 }
 0xbe0   :  { %v4468_v48 = vmul.f32 -1.442695, %v3280_v43 }
 0xbe1   :  { %v4469_v62 = vmul.f32 -1.442695, %v3281_v23  ;;  %v4470_v58 = vmul.f32 -1.442695, %v3283_v27 }
 0xbe2   :  { %6033 = vpow2.f32 %v4468_v48 }
 0xbe3   :  { %6035 = vpow2.f32 %v4469_v62  ;;  %v4251_v62 = vsel %vm185_vm0, %v8423_v6, %v8469_v37 }
 0xbe4   :  { %6037 = vpow2.f32 %v4470_v58 }
 0xbe5   :  { %6039 = vtanh.f32 %v3282_v59 }
 0xbec   :  { %v6034_v7 = vpop.eup %6033 }
 0xbed   :  { %v6036_v25 = vpop.eup %6035  ;;  %v3287_v30 = vadd.f32 1.0, %v6034_v7 }
 0xbee   :  { %v3293_v12 = vadd.f32 1.0, %v6036_v25  ;;  %v6038_v28 = vpop.eup %6037 }
 0xbef   :  { %6041 = vrcp.f32 %v3287_v30  ;;  %v6040_v32 = vpop.eup %6039  ;;  %v3300_v10 = vadd.f32 1.0, %v6038_v28 }
 0xbf0   :  { %6043 = vrcp.f32 %v3293_v12 }
 0xbf1   :  { %6045 = vrcp.f32 %v3300_v10 }
 0xbf9   :  { %v6042_v60 = vpop.eup %6041 }
 0xbfa   :  { %v6044_v14 = vpop.eup %6043  ;;  %v3307_v8 = vmul.f32 %v6042_v60, %v6040_v32 }
 0xbfb   :  { %v3306_v4 = vmul.f32 %v6044_v14, %v3304_v22  ;;  %v6046_v43 = vpop.eup %6045 }
 0xbfd   :  { %v8511_v21 = vadd.f32 %v3307_v8, %v3306_v4 }
 0xbff   :  { %6047 = vtanh.f32 %v8511_v21 }
 0xc09   :  { %v6048_v23 = vpop.eup %6047 }
 0xc0a   :  { %v3310_v48 = vmul.f32 %v6048_v23, %v6046_v43 }
 0xc0c   :  { %v3312_v29 = vrot.slane %v3310_v48, 2  ;;  %v8518_v27 = vsel %vm189_vm1, %v4251_v62, %v3310_v48 }
 0xc0e   :  { %3379 = vmatmul.mubr.f32.vlgmr.msra.gmra.mrb[26].mxu0 %v3312_v29  ;;  %3450 = vmatmul.mubr.f32.vlgmr.msra.gmra.mrb[26].mxu1 %v3312_v29  ;;  %v3492_v29 = vrot.slane %v8511_v21, 7 }
 0xc0f   :  { %5577 = vmatpush1.bf16.msra.mxu0 %v8111_v51  ;;  %5609 = vmatpush1.bf16.msra.mxu1 %v8113_v57 }
 0xc10   :  { %5579 = vmatprep.subr.bf16.mxu0 %v8121_v63  ;;  %5611 = vmatprep.subr.bf16.mxu1 %v8123_v5 }
 0xc11   :  { %3566 = vmatprep.mubr.f32.mxu0 %v6168_v16  ;;  %3637 = vmatprep.mubr.f32.mxu1 %v6168_v16 }
 0xc13   :  { %5581 = vmatpush1.bf16.msra.mxu0 %v8147_v40  ;;  %5613 = vmatpush1.bf16.msra.mxu1 %v8149_v3 }
 0xc14   :  { %5583 = vmatprep.subr.bf16.mxu0 %v8159_v38  ;;  %5615 = vmatprep.subr.bf16.mxu1 %v8161_v54 }
 0xc17   :  { %5585 = vmatpush1.bf16.msra.mxu0 %v8185_v44  ;;  %5617 = vmatpush1.bf16.msra.mxu1 %v8187_v26 }
 0xc18   :  { %5587 = vmatprep.subr.bf16.mxu0 %v8197_v55  ;;  %5619 = vmatprep.subr.bf16.mxu1 %v8199_v56 }
 0xc1b   :  { %5589 = vmatpush1.bf16.msra.mxu0 %v8221_v11  ;;  %5621 = vmatpush1.bf16.msra.mxu1 %v8223_v1 }
 0xc1c   :  { %5591 = vmatprep.subr.bf16.mxu0 %v8233_v17  ;;  %5623 = vmatprep.subr.bf16.mxu1 %v8235_v36 }
 0xc1f   :  { %5593 = vmatpush1.bf16.msra.mxu0 %v8257_v33  ;;  %5625 = vmatpush1.bf16.msra.mxu1 %v8259_v34 }
 0xc20   :  { %5595 = vmatprep.subr.bf16.mxu0 %v8269_v45  ;;  %5627 = vmatprep.subr.bf16.mxu1 %v8271_v46 }
 0xc23   :  { %5597 = vmatpush1.bf16.msra.mxu0 %v8293_v20  ;;  %5629 = vmatpush1.bf16.msra.mxu1 %v8295_v24 }
 0xc24   :  { %5599 = vmatprep.subr.bf16.mxu0 %v8305_v41  ;;  %5631 = vmatprep.subr.bf16.mxu1 %v8307_v42 }
 0xc27   :  { %5601 = vmatpush1.bf16.msra.mxu0 %v8329_v61  ;;  %5633 = vmatpush1.bf16.msra.mxu1 %v8331_v31 }
 0xc28   :  { %5603 = vmatprep.subr.bf16.mxu0 %v8338_v50  ;;  %5635 = vmatprep.subr.bf16.mxu1 %v8340_v18 }
 0xc2b   :  { %5605 = vmatpush1.bf16.msra.mxu0 %v8353_v15  ;;  %5637 = vmatpush1.bf16.msra.mxu1 %v8355_v19 }
 0xc2c   :  { %5639 = vmatprep.subr.bf16.mxu0 %v8076_v52  ;;  %5671 = vmatprep.subr.bf16.mxu1 %v8078_v53 }
 0xce1   :  { %v3380_v6 = vpop.f32.mrb[26].mxu0  ;;  %v3451_v9 = vpop.f32.mrb[26].mxu1 }
 0xce2   :  { %v3460_v37 = vrot.slane %v3380_v6, 5  ;;  %v3382_v35 = vpop.f32.mrb[27].mxu0  ;;  %v3453_v58 = vpop.f32.mrb[27].mxu1  ;;  %v3462_v60 = vrot.slane %v3451_v9, 5 }
 0xce3   :  { %v3461_v59 = vrot.slane %v3382_v35, 5  ;;  %v3463_v28 = vrot.slane %v3453_v58, 5 }
 0xce4   :  { %v3468_v7 = vadd.f32 %v3460_v37, %v8404_v39  ;;  %v3470_v14 = vadd.f32 %v3462_v60, %v8417_v49 }
 0xce5   :  { %v3469_v25 = vadd.f32 %v3461_v59, %v8406_v47  ;;  %v3471_v32 = vadd.f32 %v3463_v28, %v8412_v13 }
 0xce6   :  { %v4471_v30 = vmul.f32 -1.442695, %v3468_v7 }
 0xce7   :  { %v4472_v12 = vmul.f32 -1.442695, %v3469_v25  ;;  %v4473_v22 = vmul.f32 -1.442695, %v3471_v32 }
 0xce8   :  { %6049 = vpow2.f32 %v4471_v30 }
 0xce9   :  { %6051 = vpow2.f32 %v4472_v12 }
 0xcea   :  { %6053 = vpow2.f32 %v4473_v22 }
 0xceb   :  { %6055 = vtanh.f32 %v3470_v14 }
 0xcf2   :  { %v6050_v8 = vpop.eup %6049 }
 0xcf3   :  { %v6052_v10 = vpop.eup %6051  ;;  %v3475_v4 = vadd.f32 1.0, %v6050_v8 }
 0xcf4   :  { %v3481_v43 = vadd.f32 1.0, %v6052_v10  ;;  %v6054_v23 = vpop.eup %6053 }
 0xcf5   :  { %6057 = vrcp.f32 %v3475_v4  ;;  %v6056_v48 = vpop.eup %6055  ;;  %v3488_v35 = vadd.f32 1.0, %v6054_v23 }
 0xcf6   :  { %6059 = vrcp.f32 %v3481_v43 }
 0xcf7   :  { %6061 = vrcp.f32 %v3488_v35 }
 0xcff   :  { %v6058_v62 = vpop.eup %6057 }
 0xd00   :  { %v6060_v6 = vpop.eup %6059  ;;  %v3495_v37 = vmul.f32 %v6058_v62, %v6056_v48 }
 0xd01   :  { %v3494_v9 = vmul.f32 %v6060_v6, %v3492_v29  ;;  %v6062_v59 = vpop.eup %6061 }
 0xd03   :  { %v8559_v58 = vadd.f32 %v3495_v37, %v3494_v9 }
 0xd05   :  { %6063 = vtanh.f32 %v8559_v58 }
 0xd0f   :  { %v6064_v7 = vpop.eup %6063 }
 0xd10   :  { %v3498_v25 = vmul.f32 %v6064_v7, %v6062_v59 }
 0xd12   :  { %v3500_v30 = vrot.slane %v3498_v25, 3  ;;  %v8564_v12 = vsel %vm193_vm2, %v8518_v27, %v3498_v25 }
 0xd14   :  { %3567 = vmatmul.mubr.f32.vlgmr.msra.gmra.mrb[28].mxu0 %v3500_v30  ;;  %3638 = vmatmul.mubr.f32.vlgmr.msra.gmra.mrb[28].mxu1 %v3500_v30  ;;  %v3680_v30 = vrot.slane %v8559_v58, 7 }
 0xd15   :  { %5641 = vmatpush1.bf16.msra.mxu0 %v8111_v51  ;;  %5673 = vmatpush1.bf16.msra.mxu1 %v8113_v57 }
 0xd16   :  { %5643 = vmatprep.subr.bf16.mxu0 %v8121_v63  ;;  %5675 = vmatprep.subr.bf16.mxu1 %v8123_v5 }
 0xd17   :  { %3754 = vmatprep.mubr.f32.mxu0 %v6168_v16  ;;  %3825 = vmatprep.mubr.f32.mxu1 %v6168_v16 }
 0xd19   :  { %5645 = vmatpush1.bf16.msra.mxu0 %v8147_v40  ;;  %5677 = vmatpush1.bf16.msra.mxu1 %v8149_v3 }
 0xd1a   :  { %5647 = vmatprep.subr.bf16.mxu0 %v8159_v38  ;;  %5679 = vmatprep.subr.bf16.mxu1 %v8161_v54 }
 0xd1d   :  { %5649 = vmatpush1.bf16.msra.mxu0 %v8185_v44  ;;  %5681 = vmatpush1.bf16.msra.mxu1 %v8187_v26 }
 0xd1e   :  { %5651 = vmatprep.subr.bf16.mxu0 %v8197_v55  ;;  %5683 = vmatprep.subr.bf16.mxu1 %v8199_v56 }
 0xd21   :  { %5653 = vmatpush1.bf16.msra.mxu0 %v8221_v11  ;;  %5685 = vmatpush1.bf16.msra.mxu1 %v8223_v1 }
 0xd22   :  { %5655 = vmatprep.subr.bf16.mxu0 %v8233_v17  ;;  %5687 = vmatprep.subr.bf16.mxu1 %v8235_v36 }
 0xd25   :  { %5657 = vmatpush1.bf16.msra.mxu0 %v8257_v33  ;;  %5689 = vmatpush1.bf16.msra.mxu1 %v8259_v34 }
 0xd26   :  { %5659 = vmatprep.subr.bf16.mxu0 %v8269_v45  ;;  %5691 = vmatprep.subr.bf16.mxu1 %v8271_v46 }
 0xd29   :  { %5661 = vmatpush1.bf16.msra.mxu0 %v8293_v20  ;;  %5693 = vmatpush1.bf16.msra.mxu1 %v8295_v24 }
 0xd2a   :  { %5663 = vmatprep.subr.bf16.mxu0 %v8305_v41  ;;  %5695 = vmatprep.subr.bf16.mxu1 %v8307_v42 }
 0xd2d   :  { %5665 = vmatpush1.bf16.msra.mxu0 %v8329_v61  ;;  %5697 = vmatpush1.bf16.msra.mxu1 %v8331_v31 }
 0xd2e   :  { %5667 = vmatprep.subr.bf16.mxu0 %v8338_v50  ;;  %5699 = vmatprep.subr.bf16.mxu1 %v8340_v18 }
 0xd31   :  { %5669 = vmatpush1.bf16.msra.mxu0 %v8353_v15  ;;  %5701 = vmatpush1.bf16.msra.mxu1 %v8355_v19 }
 0xd32   :  { %5703 = vmatprep.subr.bf16.mxu0 %v8076_v52  ;;  %5735 = vmatprep.subr.bf16.mxu1 %v8078_v53 }
 0xde7   :  { %v3568_v21 = vpop.f32.mrb[28].mxu0  ;;  %v3639_v27 = vpop.f32.mrb[28].mxu1 }
 0xde8   :  { %v3648_v28 = vrot.slane %v3568_v21, 4  ;;  %v3570_v32 = vpop.f32.mrb[29].mxu0  ;;  %v3641_v60 = vpop.f32.mrb[29].mxu1  ;;  %v3650_v48 = vrot.slane %v3639_v27, 4 }
 0xde9   :  { %v3649_v22 = vrot.slane %v3570_v32, 4  ;;  %v3651_v43 = vrot.slane %v3641_v60, 4 }
 0xdea   :  { %v3656_v14 = vadd.f32 %v3648_v28, %v8404_v39  ;;  %v3658_v29 = vadd.f32 %v3650_v48, %v8417_v49 }
 0xdeb   :  { %v3657_v8 = vadd.f32 %v3649_v22, %v8406_v47  ;;  %v3659_v23 = vadd.f32 %v3651_v43, %v8412_v13 }
 0xdec   :  { %v4474_v10 = vmul.f32 -1.442695, %v3656_v14 }
 0xded   :  { %v4475_v4 = vmul.f32 -1.442695, %v3657_v8  ;;  %v4476_v62 = vmul.f32 -1.442695, %v3659_v23 }
 0xdee   :  { %6065 = vpow2.f32 %v4474_v10 }
 0xdef   :  { %6067 = vpow2.f32 %v4475_v4 }
 0xdf0   :  { %6069 = vpow2.f32 %v4476_v62 }
 0xdf1   :  { %6071 = vtanh.f32 %v3658_v29 }
 0xdf8   :  { %v6066_v6 = vpop.eup %6065 }
 0xdf9   :  { %v6068_v37 = vpop.eup %6067  ;;  %v3663_v35 = vadd.f32 1.0, %v6066_v6 }
 0xdfa   :  { %v3669_v9 = vadd.f32 1.0, %v6068_v37  ;;  %v6070_v59 = vpop.eup %6069 }
 0xdfb   :  { %6073 = vrcp.f32 %v3663_v35  ;;  %v6072_v7 = vpop.eup %6071  ;;  %v3676_v32 = vadd.f32 1.0, %v6070_v59 }
 0xdfc   :  { %6075 = vrcp.f32 %v3669_v9 }
 0xdfd   :  { %6077 = vrcp.f32 %v3676_v32 }
 0xe05   :  { %v6074_v25 = vpop.eup %6073 }
 0xe06   :  { %v6076_v21 = vpop.eup %6075  ;;  %v3683_v28 = vmul.f32 %v6074_v25, %v6072_v7 }
 0xe07   :  { %v3682_v27 = vmul.f32 %v6076_v21, %v3680_v30  ;;  %v6078_v22 = vpop.eup %6077 }
 0xe09   :  { %v8605_v60 = vadd.f32 %v3683_v28, %v3682_v27 }
 0xe0b   :  { %6079 = vtanh.f32 %v8605_v60 }
 0xe15   :  { %v6080_v14 = vpop.eup %6079 }
 0xe16   :  { %v3686_v8 = vmul.f32 %v6080_v14, %v6078_v22  ;;  %v3868_v14 = vrot.slane %v8605_v60, 7 }
 0xe18   :  { %v3688_v10 = vrot.slane %v3686_v8, 4  ;;  %v8610_v4 = vsel %vm197_vm3, %v8564_v12, %v3686_v8 }
 0xe1a   :  { %3755 = vmatmul.mubr.f32.vlgmr.msra.gmra.mrb[30].mxu0 %v3688_v10  ;;  %3826 = vmatmul.mubr.f32.vlgmr.msra.gmra.mrb[30].mxu1 %v3688_v10 }
 0xe1b   :  { %5705 = vmatpush1.bf16.msra.mxu0 %v8111_v51  ;;  %5737 = vmatpush1.bf16.msra.mxu1 %v8113_v57 }
 0xe1c   :  { %5707 = vmatprep.subr.bf16.mxu0 %v8121_v63  ;;  %5739 = vmatprep.subr.bf16.mxu1 %v8123_v5 }
 0xe1d   :  { %3942 = vmatprep.mubr.f32.mxu0 %v6168_v16  ;;  %4013 = vmatprep.mubr.f32.mxu1 %v6168_v16 }
 0xe1f   :  { %5709 = vmatpush1.bf16.msra.mxu0 %v8147_v40  ;;  %5741 = vmatpush1.bf16.msra.mxu1 %v8149_v3 }
 0xe20   :  { %5711 = vmatprep.subr.bf16.mxu0 %v8159_v38  ;;  %5743 = vmatprep.subr.bf16.mxu1 %v8161_v54 }
 0xe23   :  { %5713 = vmatpush1.bf16.msra.mxu0 %v8185_v44  ;;  %5745 = vmatpush1.bf16.msra.mxu1 %v8187_v26 }
 0xe24   :  { %5715 = vmatprep.subr.bf16.mxu0 %v8197_v55  ;;  %5747 = vmatprep.subr.bf16.mxu1 %v8199_v56 }
 0xe27   :  { %5717 = vmatpush1.bf16.msra.mxu0 %v8221_v11  ;;  %5749 = vmatpush1.bf16.msra.mxu1 %v8223_v1 }
 0xe28   :  { %5719 = vmatprep.subr.bf16.mxu0 %v8233_v17  ;;  %5751 = vmatprep.subr.bf16.mxu1 %v8235_v36 }
 0xe2b   :  { %5721 = vmatpush1.bf16.msra.mxu0 %v8257_v33  ;;  %5753 = vmatpush1.bf16.msra.mxu1 %v8259_v34 }
 0xe2c   :  { %5723 = vmatprep.subr.bf16.mxu0 %v8269_v45  ;;  %5755 = vmatprep.subr.bf16.mxu1 %v8271_v46 }
 0xe2f   :  { %5725 = vmatpush1.bf16.msra.mxu0 %v8293_v20  ;;  %5757 = vmatpush1.bf16.msra.mxu1 %v8295_v24 }
 0xe30   :  { %5727 = vmatprep.subr.bf16.mxu0 %v8305_v41  ;;  %5759 = vmatprep.subr.bf16.mxu1 %v8307_v42 }
 0xe33   :  { %5729 = vmatpush1.bf16.msra.mxu0 %v8329_v61  ;;  %5761 = vmatpush1.bf16.msra.mxu1 %v8331_v31 }
 0xe34   :  { %5731 = vmatprep.subr.bf16.mxu0 %v8338_v50  ;;  %5763 = vmatprep.subr.bf16.mxu1 %v8340_v18 }
 0xe37   :  { %5733 = vmatpush1.bf16.msra.mxu0 %v8353_v15  ;;  %5765 = vmatpush1.bf16.msra.mxu1 %v8355_v19 }
 0xe38   :  { %5767 = vmatprep.subr.bf16.mxu0 %v8076_v52  ;;  %5799 = vmatprep.subr.bf16.mxu1 %v8078_v53 }
 0xeed   :  { %v3756_v58 = vpop.f32.mrb[30].mxu0  ;;  %v3827_v12 = vpop.f32.mrb[30].mxu1 }
 0xeee   :  { %v3836_v43 = vrot.slane %v3756_v58, 3  ;;  %v3758_v23 = vpop.f32.mrb[31].mxu0  ;;  %v3829_v48 = vpop.f32.mrb[31].mxu1  ;;  %v3838_v52 = vrot.slane %v3827_v12, 3 }
 0xeef   :  { %v3837_v62 = vrot.slane %v3758_v23, 3  ;;  %v3839_v9 = vrot.slane %v3829_v48, 3 }
 0xef0   :  { %v3844_v29 = vadd.f32 %v3836_v43, %v8404_v39  ;;  %v3846_v53 = vadd.f32 %v3838_v52, %v8417_v49  ;;  %v4260_v52 = vld [vmem:[%s8862_s22] sm:$0xff] }
 0xef1   :  { %v3845_v6 = vadd.f32 %v3837_v62, %v8406_v47  ;;  %v3847_v59 = vadd.f32 %v3839_v9, %v8412_v13  ;;  %v4263_v9 = vld [vmem:[%s8862_s22 + $0x18] sm:$0xff] }
 0xef2   :  { %v4477_v37 = vmul.f32 -1.442695, %v3844_v29 }
 0xef3   :  { %v4478_v35 = vmul.f32 -1.442695, %v3845_v6  ;;  %v4479_v7 = vmul.f32 -1.442695, %v3847_v59 }
 0xef4   :  { %6081 = vpow2.f32 %v4477_v37 }
 0xef5   :  { %6083 = vpow2.f32 %v4478_v35  ;;  %v4261_v35 = vld [vmem:[%s8862_s22 + $0x8] sm:$0xff] }
 0xef6   :  { %6085 = vpow2.f32 %v4479_v7  ;;  %v5830_v59 = vpack.c.bf16 %v4263_v9, %v4261_v35  ;;  %v4262_v7 = vld [vmem:[%s8862_s22 + $0x10] sm:$0xff] }
 0xef7   :  { %6087 = vtanh.f32 %v3846_v53  ;;  %v5832_v53 = vpack.c.bf16 %v4262_v7, %v4260_v52 }
 0xefe   :  { %v6082_v25 = vpop.eup %6081 }
 0xeff   :  { %v6084_v30 = vpop.eup %6083  ;;  %v3851_v21 = vadd.f32 1.0, %v6082_v25  ;;  %v4267_v25 = vld [vmem:[%s8862_s22 + $0x38] sm:$0xff] }
 0xf00   :  { %v3857_v28 = vadd.f32 1.0, %v6084_v30  ;;  %v6086_v32 = vpop.eup %6085 }
 0xf01   :  { %6089 = vrcp.f32 %v3851_v21  ;;  %v6088_v27 = vpop.eup %6087  ;;  %v3864_v58 = vadd.f32 1.0, %v6086_v32  ;;  %v4264_v21 = vld [vmem:[%s8862_s22 + $0x20] sm:$0xff] }
 0xf02   :  { %6091 = vrcp.f32 %v3857_v28  ;;  %v4266_v28 = vld [vmem:[%s8862_s22 + $0x30] sm:$0xff] }
 0xf03   :  { %6093 = vrcp.f32 %v3864_v58  ;;  %v5836_v32 = vpack.c.bf16 %v4266_v28, %v4264_v21 }
 0xf0b   :  { %v6090_v22 = vpop.eup %6089 }
 0xf0c   :  { %v6092_v8 = vpop.eup %6091  ;;  %v3871_v10 = vmul.f32 %v6090_v22, %v6088_v27  ;;  %v4269_v27 = vld [vmem:[%s8862_s22 + $0x48] sm:$0xff]  ;;  %v4271_v22 = vld [vmem:[%s8862_s22 + $0x58] sm:$0xff] }
 0xf0d   :  { %v3870_v12 = vmul.f32 %v6092_v8, %v3868_v14  ;;  %v6094_v23 = vpop.eup %6093  ;;  %v5838_v14 = vpack.c.bf16 %v4271_v22, %v4269_v27  ;;  %v4268_v8 = vld [vmem:[%s8862_s22 + $0x40] sm:$0xff] }
 0xf0f   :  { %v8651_v43 = vadd.f32 %v3871_v10, %v3870_v12  ;;  %v4270_v10 = vld [vmem:[%s8862_s22 + $0x50] sm:$0xff]  ;;  %v4273_v12 = vld [vmem:[%s8862_s22 + $0x68] sm:$0xff] }
 0xf10   :  { %v5840_v58 = vpack.c.bf16 %v4270_v10, %v4268_v8 }
 0xf11   :  { %6095 = vtanh.f32 %v8651_v43 }
 0xf1b   :  { %v6096_v48 = vpop.eup %6095 }
 0xf1c   :  { %v3874_v62 = vmul.f32 %v6096_v48, %v6094_v23  ;;  %v4272_v48 = vld [vmem:[%s8862_s22 + $0x60] sm:$0xff] }
 0xf1e   :  { %v3876_v29 = vrot.slane %v3874_v62, 5  ;;  %v8656_v6 = vsel %vm201_vm4, %v8610_v4, %v3874_v62  ;;  %v4274_v62 = vld [vmem:[%s8862_s22 + $0x70] sm:$0xff] }
 0xf20   :  { %3943 = vmatmul.mubr.f32.vlgmr.msra.gmra.mrb[32].mxu0 %v3876_v29  ;;  %4014 = vmatmul.mubr.f32.vlgmr.msra.gmra.mrb[32].mxu1 %v3876_v29  ;;  %v5844_v29 = vpack.c.bf16 %v4274_v62, %v4272_v48 }
 0xf21   :  { %5769 = vmatpush1.bf16.msra.mxu0 %v8111_v51  ;;  %5801 = vmatpush1.bf16.msra.mxu1 %v8113_v57 }
 0xf22   :  { %5771 = vmatprep.subr.bf16.mxu0 %v8121_v63  ;;  %5803 = vmatprep.subr.bf16.mxu1 %v8123_v5 }
 0xf23   :  { %4130 = vmatprep.mubr.f32.mxu0 %v6168_v16  ;;  %4201 = vmatprep.mubr.f32.mxu1 %v6168_v16 }
 0xf25   :  { %5773 = vmatpush1.bf16.msra.mxu0 %v8147_v40  ;;  %5805 = vmatpush1.bf16.msra.mxu1 %v8149_v3 }
 0xf26   :  { %5775 = vmatprep.subr.bf16.mxu0 %v8159_v38  ;;  %5807 = vmatprep.subr.bf16.mxu1 %v8161_v54 }
 0xf29   :  { %5777 = vmatpush1.bf16.msra.mxu0 %v8185_v44  ;;  %5809 = vmatpush1.bf16.msra.mxu1 %v8187_v26 }
 0xf2a   :  { %5779 = vmatprep.subr.bf16.mxu0 %v8197_v55  ;;  %5811 = vmatprep.subr.bf16.mxu1 %v8199_v56 }
 0xf2d   :  { %5781 = vmatpush1.bf16.msra.mxu0 %v8221_v11  ;;  %5813 = vmatpush1.bf16.msra.mxu1 %v8223_v1 }
 0xf2e   :  { %5783 = vmatprep.subr.bf16.mxu0 %v8233_v17  ;;  %5815 = vmatprep.subr.bf16.mxu1 %v8235_v36 }
 0xf31   :  { %5785 = vmatpush1.bf16.msra.mxu0 %v8257_v33  ;;  %5817 = vmatpush1.bf16.msra.mxu1 %v8259_v34 }
 0xf32   :  { %5787 = vmatprep.subr.bf16.mxu0 %v8269_v45  ;;  %5819 = vmatprep.subr.bf16.mxu1 %v8271_v46 }
 0xf35   :  { %5789 = vmatpush1.bf16.msra.mxu0 %v8293_v20  ;;  %5821 = vmatpush1.bf16.msra.mxu1 %v8295_v24 }
 0xf36   :  { %5791 = vmatprep.subr.bf16.mxu0 %v8305_v41  ;;  %5823 = vmatprep.subr.bf16.mxu1 %v8307_v42  ;;  %v4056_v41 = vrot.slane %v8651_v43, 7  ;;  %v4275_v43 = vld [vmem:[%s8862_s22 + $0x78] sm:$0xff] }
 0xf37   :  { %v5842_v23 = vpack.c.bf16 %v4275_v43, %v4273_v12 }
 0xf39   :  { %5793 = vmatpush1.bf16.msra.mxu0 %v8329_v61  ;;  %5825 = vmatpush1.bf16.msra.mxu1 %v8331_v31 }
 0xf3a   :  { %5795 = vmatprep.subr.bf16.mxu0 %v8338_v50  ;;  %5827 = vmatprep.subr.bf16.mxu1 %v8340_v18 }
 0xf3d   :  { %5797 = vmatpush1.bf16.msra.mxu0 %v8353_v15  ;;  %5829 = vmatpush1.bf16.msra.mxu1 %v8355_v19 }
 0xf3e   :  { %5831 = vmatprep.subr.bf16.mxu0 %v5830_v59 }
 0xff3   :  { %v3944_v51 = vpop.f32.mrb[32].mxu0  ;;  %v4015_v57 = vpop.f32.mrb[32].mxu1 }
 0xff4   :  { %v4024_v63 = vrot.slane %v3944_v51, 2  ;;  %v3946_v5 = vpop.f32.mrb[33].mxu0  ;;  %v4017_v40 = vpop.f32.mrb[33].mxu1  ;;  %v4026_v11 = vrot.slane %v4015_v57, 2  ;;  %v4279_v51 = vld [vmem:[%s8862_s22 + $0x98] sm:$0xff]  ;;  %v4276_v57 = vld [vmem:[%s8862_s22 + $0x80] sm:$0xff] }
 0xff5   :  { %v4025_v3 = vrot.slane %v3946_v5, 2  ;;  %v4027_v55 = vrot.slane %v4017_v40, 2  ;;  %v4278_v5 = vld [vmem:[%s8862_s22 + $0x90] sm:$0xff]  ;;  %v4281_v40 = vld [vmem:[%s8862_s22 + $0xa8] sm:$0xff] }
 0xff6   :  { %v4032_v38 = vadd.f32 %v4024_v63, %v8404_v39  ;;  %v4034_v17 = vadd.f32 %v4026_v11, %v8417_v49 }
 0xff7   :  { %v4033_v54 = vadd.f32 %v4025_v3, %v8406_v47  ;;  %v4035_v56 = vadd.f32 %v4027_v55, %v8412_v13  ;;  %v4283_v3 = vld [vmem:[%s8862_s22 + $0xb8] sm:$0xff]  ;;  %v4285_v55 = vld [vmem:[%s8862_s22 + $0xc8] sm:$0xff] }
 0xff8   :  { %v4480_v44 = vmul.f32 -1.442695, %v4032_v38  ;;  %v5848_v38 = vpack.c.bf16 %v4278_v5, %v4276_v57 }
 0xff9   :  { %v4481_v26 = vmul.f32 -1.442695, %v4033_v54  ;;  %v4482_v1 = vmul.f32 -1.442695, %v4035_v56  ;;  %v5850_v54 = vpack.c.bf16 %v4283_v3, %v4281_v40  ;;  %v4287_v56 = vld [vmem:[%s8862_s22 + $0xd8] sm:$0xff] }
 0xffa   :  { %6097 = vpow2.f32 %v4480_v44  ;;  %v4280_v44 = vld [vmem:[%s8862_s22 + $0xa0] sm:$0xff] }
 0xffb   :  { %6099 = vpow2.f32 %v4481_v26  ;;  %v4282_v26 = vld [vmem:[%s8862_s22 + $0xb0] sm:$0xff] }
 0xffc   :  { %6101 = vpow2.f32 %v4482_v1  ;;  %v5852_v11 = vpack.c.bf16 %v4282_v26, %v4280_v44  ;;  %v5854_v1 = vpack.c.bf16 %v4287_v56, %v4285_v55 }
 0xffd   :  { %6103 = vtanh.f32 %v4034_v17  ;;  %v4284_v17 = vld [vmem:[%s8862_s22 + $0xc0] sm:$0xff] }
0x1004   :  { %v6098_v36 = vpop.eup %6097 }
0x1005   :  { %v6100_v33 = vpop.eup %6099  ;;  %v4039_v34 = vadd.f32 1.0, %v6098_v36  ;;  %v4286_v36 = vld [vmem:[%s8862_s22 + $0xd0] sm:$0xff] }
0x1006   :  { %v4045_v45 = vadd.f32 1.0, %v6100_v33  ;;  %v6102_v46 = vpop.eup %6101  ;;  %v4289_v33 = vld [vmem:[%s8862_s22 + $0xe8] sm:$0xff] }
0x1007   :  { %6105 = vrcp.f32 %v4039_v34  ;;  %v6104_v20 = vpop.eup %6103  ;;  %v4052_v31 = vadd.f32 1.0, %v6102_v46  ;;  %v4291_v34 = vld [vmem:[%s8862_s22 + $0xf8] sm:$0xff] }
0x1008   :  { %6107 = vrcp.f32 %v4045_v45  ;;  %v5856_v45 = vpack.c.bf16 %v4286_v36, %v4284_v17  ;;  %v5858_v46 = vpack.c.bf16 %v4291_v34, %v4289_v33 }
0x1009   :  { %6109 = vrcp.f32 %v4052_v31 }
0x1011   :  { %v6106_v24 = vpop.eup %6105 }
0x1012   :  { %v6108_v42 = vpop.eup %6107  ;;  %v4059_v61 = vmul.f32 %v6106_v24, %v6104_v20  ;;  %v4288_v20 = vld [vmem:[%s8862_s22 + $0xe0] sm:$0xff]  ;;  %v4290_v24 = vld [vmem:[%s8862_s22 + $0xf0] sm:$0xff] }
0x1013   :  { %v4058_v50 = vmul.f32 %v6108_v42, %v4056_v41  ;;  %v6110_v15 = vpop.eup %6109  ;;  %v5860_v41 = vpack.c.bf16 %v4290_v24, %v4288_v20 }
0x1015   :  { %v8695_v18 = vadd.f32 %v4059_v61, %v4058_v50 }
0x1017   :  { %6111 = vtanh.f32 %v8695_v18  ;;  %v4244_v27 = vrot.slane %v8695_v18, 7 }
0x1021   :  { %v6112_v19 = vpop.eup %6111 }
0x1022   :  { %v4062_v60 = vmul.f32 %v6112_v19, %v6110_v15 }
0x1024   :  { %v4064_v4 = vrot.slane %v4062_v60, 6  ;;  %v8700_v37 = vsel %vm205_vm5, %v8656_v6, %v4062_v60  ;;  %v4277_v6 = vld [vmem:[%s8862_s22 + $0x88] sm:$0xff] }
0x1025   :  { %v5846_v63 = vpack.c.bf16 %v4279_v51, %v4277_v6 }
0x1026   :  { %4131 = vmatmul.mubr.f32.vlgmr.msra.gmra.mrb[34].mxu0 %v4064_v4  ;;  %4202 = vmatmul.mubr.f32.vlgmr.msra.gmra.mrb[34].mxu1 %v4064_v4 }
0x1027   :  { %4368 = vmatprep.mubr.f32.mxu0 %v6168_v16  ;;  %5833 = vmatpush1.bf16.msra.mxu0 %v5832_v53  ;;  %v4265_v16 = vld [vmem:[%s8862_s22 + $0x28] sm:$0xff] }
0x1028   :  { %v5834_v30 = vpack.c.bf16 %v4267_v25, %v4265_v16 }
0x102a   :  { %5835 = vmatprep.subr.bf16.mxu0 %v5834_v30 }
0x102b   :  { %5837 = vmatpush1.bf16.msra.mxu0 %v5836_v32 }
0x102c   :  { %5839 = vmatprep.subr.bf16.mxu0 %v5838_v14 }
0x102f   :  { %5841 = vmatpush1.bf16.msra.mxu0 %v5840_v58 }
0x1030   :  { %5843 = vmatprep.subr.bf16.mxu0 %v5842_v23  ;;  %v4292_v23 = vld [vmem:[%s8863_s3] sm:$0x3] }
0x1031   :  { %v4297_v18 = vrot.slane %v4292_v23, %v7560_v0  ;;  %v4301_v48 = vrot.slane %v4292_v23, %v7566_v2 }
0x1033   :  { %5845 = vmatpush1.bf16.msra.mxu0 %v5844_v29 }
0x1034   :  { %5847 = vmatprep.subr.bf16.mxu0 %v5846_v63 }
0x1037   :  { %5849 = vmatpush1.bf16.msra.mxu0 %v5848_v38 }
0x1038   :  { %5851 = vmatprep.subr.bf16.mxu0 %v5850_v54 }
0x103b   :  { %5853 = vmatpush1.bf16.msra.mxu0 %v5852_v11 }
0x103c   :  { %5855 = vmatprep.subr.bf16.mxu0 %v5854_v1 }
0x103f   :  { %5857 = vmatpush1.bf16.msra.mxu0 %v5856_v45 }
0x1040   :  { %5859 = vmatprep.subr.bf16.mxu0 %v5858_v46 }
0x1043   :  { %5861 = vmatpush1.bf16.msra.mxu0 %v5860_v41 }
0x10f9   :  { %v4132_v42 = vpop.f32.mrb[34].mxu0  ;;  %v4203_v61 = vpop.f32.mrb[34].mxu1 }
0x10fa   :  { %v4212_v31 = vrot.slane %v4132_v42, 1  ;;  %v4134_v50 = vpop.f32.mrb[35].mxu0  ;;  %v4205_v15 = vpop.f32.mrb[35].mxu1  ;;  %v4214_v7 = vrot.slane %v4203_v61, 1 }
0x10fb   :  { %v4213_v19 = vrot.slane %v4134_v50, 1  ;;  %v4215_v59 = vrot.slane %v4205_v15, 1 }
0x10fc   :  { %v4220_v60 = vadd.f32 %v4212_v31, %v8404_v39  ;;  %v4222_v16 = vadd.f32 %v4214_v7, %v8417_v49 }
0x10fd   :  { %v4221_v4 = vadd.f32 %v4213_v19, %v8406_v47  ;;  %v4223_v52 = vadd.f32 %v4215_v59, %v8412_v13 }
0x10fe   :  { %v4483_v35 = vmul.f32 -1.442695, %v4220_v60 }
0x10ff   :  { %v4484_v9 = vmul.f32 -1.442695, %v4221_v4  ;;  %v4485_v53 = vmul.f32 -1.442695, %v4223_v52 }
0x1100   :  { %6113 = vpow2.f32 %v4483_v35 }
0x1101   :  { %6115 = vpow2.f32 %v4484_v9 }
0x1102   :  { %6117 = vpow2.f32 %v4485_v53 }
0x1103   :  { %6119 = vtanh.f32 %v4222_v16 }
0x110a   :  { %v6114_v25 = vpop.eup %6113 }
0x110b   :  { %v6116_v30 = vpop.eup %6115  ;;  %v4227_v21 = vadd.f32 1.0, %v6114_v25 }
0x110c   :  { %v4233_v28 = vadd.f32 1.0, %v6116_v30  ;;  %v6118_v39 = vpop.eup %6117 }
0x110d   :  { %6121 = vrcp.f32 %v4227_v21  ;;  %v6120_v47 = vpop.eup %6119  ;;  %v4240_v13 = vadd.f32 1.0, %v6118_v39 }
0x110e   :  { %6123 = vrcp.f32 %v4233_v28 }
0x110f   :  { %6125 = vrcp.f32 %v4240_v13 }
0x1117   :  { %v6122_v32 = vpop.eup %6121 }
0x1118   :  { %v6124_v22 = vpop.eup %6123  ;;  %v4247_v14 = vmul.f32 %v6122_v32, %v6120_v47 }
0x1119   :  { %v4246_v8 = vmul.f32 %v6124_v22, %v4244_v27  ;;  %v6126_v49 = vpop.eup %6125 }
0x111b   :  { %v4248_v10 = vadd.f32 %v4247_v14, %v4246_v8 }
0x111d   :  { %6127 = vtanh.f32 %v4248_v10 }
0x1127   :  { %v6128_v58 = vpop.eup %6127 }
0x1128   :  { %v4250_v12 = vmul.f32 %v6128_v58, %v6126_v49 }
0x112a   :  { %v4257_v43 = vsel %vm209_vm6, %v8700_v37, %v4250_v12 }
0x112b   :  { %4369 = vmatmul.mubr.f32.vlgmr.msra.gmra.mrb[36].mxu0 %v4257_v43 }
0x11fe   :  { %v4370_v62 = vpop.f32.mrb[36].mxu0 }
0x11ff   :  { %v4371_v29 = vadd.f32 %v4370_v62, %v4297_v18  ;;  %v4372_v6 = vpop.f32.mrb[37].mxu0 }
0x1200   :  { %v4373_v51 = vadd.f32 %v4372_v6, %v4301_v48 }
0x1201   :  { %4375 = vst [vmem:[#allocation5] sm:$0xff] %v4371_v29 }
0x1202   :  { %4376 = vst [vmem:[#allocation5 + $0x8] sm:$0xff] %v4373_v51 }
0x1203   :  { %6152 = shalt.err (!%p6149_p9)
}
0x1204   :  { %s8864_s19 = sld [smem:[#allocation17_spill]] }
0x120a   :  { %s6153_s27 = scalar_lea.hbm %s8864_s19, 256 }
0x120b   :  { %p6154_p10 = scmp.ne.s32.totalorder %s8864_s19, %s6153_s27  ;;  %p6157_p11 = scmp.lt.u32.totalorder %s6153_s27, %s8864_s19 }
0x120d   :  { %p6159_p12 = pnand %p6157_p11, %p6154_p10 }
0x120f   :  { %6162 = shalt.err (!%p6159_p12)
}
0x1210   :  { %4386 = dma.vmem_to_hbm [thread:$0]  %s4384_s18, 256, %s8864_s19, [#allocation6]  }
0x1211   :  { %6165 = dma.done.wait [#allocation6], 256  }
0x1212   :  { %6166 = vsyncadd [#allocation6], 4294967040 }
0x1213   :  { %4390 = vsyncpa [#allocation6], 1 }

</bundles_post_ra>
